<compile_context>
chip_gen: v7x
topology: tpu7x:2x2x1
jax: 0.10.0
libtpu: 0.0.40
codegen_flags: <defaults>
</compile_context>

<pallas_src>
import functools
import math

import jax
import jax.numpy as jnp
import numpy as np
from jax.experimental import pallas as pl
from jax.experimental.pallas import tpu as pltpu


_NUM1 = math.exp(-4.0)   # e^-4   (torch: exp(1) ** -4)
_NUM2 = math.exp(4.0)    # e^+4


def _sgsl_kernel(alpha_ref, a_ref, x1_ref, x2t_ref, A_ref, mask_ref,
                 out_ref, pen_ref, *, col_tile):
    bt, nt, dim = x1_ref.shape
    n = x2t_ref.shape[2]
    num_jb = n // col_tile

    alpha = alpha_ref[0]                       # sigmoid(alpha_param), scalar
    one_minus_alpha = 1.0 - alpha

    # SMEM scalars; LeakyReLU(z, 0.1) = 0.55*z + 0.45*|z| split.
    a55 = [0.55 * a_ref[dd] for dd in range(dim)]
    a45 = [0.45 * a_ref[dd] for dd in range(dim)]

    pen_rows = jnp.zeros((nt, 1), jnp.float32)

    for b in range(bt):
        x1_b = x1_ref[b].astype(jnp.float32)                    # (nt, dim)
        x1_cols = [x1_b[:, dd:dd + 1] for dd in range(dim)]     # (nt, 1) each

        # rank-1 linear part from x1: 0.55 * (x1 @ a), per output row.
        lin1 = jnp.zeros((nt, 1), jnp.float32)
        for dd in range(dim):
            lin1 = lin1 + a55[dd] * x1_cols[dd]

        # ---- pass 1: unnormalized exp-scores + row sums, streamed over columns
        es_rowsum = jnp.zeros((nt, 1), jnp.float32)
        a_rowsum = jnp.zeros((nt, 1), jnp.float32)
        for jb in range(num_jb):
            j0 = jb * col_tile
            x2_blk = x2t_ref[b, :, j0:j0 + col_tile].astype(jnp.float32)  # (dim, tj)

            # rank-1 linear part from x2: 0.55 * (x2 @ a), per output column.
            lin2 = jnp.zeros((1, col_tile), jnp.float32)
            for dd in range(dim):
                lin2 = lin2 + a55[dd] * x2_blk[dd:dd + 1, :]

            # lane-dense (nt, tj) accumulation over the feature dimension.
            acc = lin1 + lin2
            for dd in range(dim):
                acc = acc + a45[dd] * jnp.abs(x1_cols[dd] + x2_blk[dd:dd + 1, :])

            s = jnp.tanh(acc * 0.125) * 8.0                     # tanh(score/8)*8
            m_blk = mask_ref[b, :, j0:j0 + col_tile].astype(jnp.float32)
            es = jnp.exp(s) * (m_blk + 1e-32)
            out_ref[b, :, j0:j0 + col_tile] = es.astype(out_ref.dtype)
            es_rowsum = es_rowsum + jnp.sum(es, axis=-1, keepdims=True)

            a_blk = A_ref[b, :, j0:j0 + col_tile].astype(jnp.float32)
            a_rowsum = a_rowsum + jnp.sum(a_blk, axis=-1, keepdims=True)

        # Exact reciprocals: only (nt, 1) elements, negligible cost.
        inv_es = 1.0 / es_rowsum
        inv_a = 1.0 / a_rowsum

        # ---- pass 2: normalize, penalty partial sums, mix with A (streamed) --
        for jb in range(num_jb):
            j0 = jb * col_tile
            es = out_ref[b, :, j0:j0 + col_tile].astype(jnp.float32)
            optA = es * inv_es
            s_val = jnp.where(optA > _NUM1, jnp.log(optA) + 5.0, _NUM2 * optA)
            pen_rows = pen_rows + jnp.sum(s_val, axis=-1, keepdims=True)
            a_blk = A_ref[b, :, j0:j0 + col_tile].astype(jnp.float32)
            out_ref[b, :, j0:j0 + col_tile] = (
                one_minus_alpha * (a_blk * inv_a) + alpha * optA
            ).astype(out_ref.dtype)

    pen_ref[0, 0] = jnp.sum(pen_rows)


def _largest_divisor(n, cap, multiple_of=1):
    """Largest d | n with d <= cap and (d % multiple_of == 0 or d == n)."""
    best = None
    for cand in range(1, min(n, cap) + 1):
        if n % cand == 0 and (cand % multiple_of == 0 or cand == n):
            best = cand
    return best


def _pick_col_tile(n, nt, budget_bytes):
    """Column tile so ~8 live (nt, tj) f32 slabs stay within the budget."""
    per_col = max(1, nt) * 4 * 8
    if n * per_col <= budget_bytes:
        return n
    cap = max(1, budget_bytes // per_col)
    for mult in (128, 8, 1):            # prefer lane-aligned column slices
        t = _largest_divisor(n, cap, multiple_of=mult)
        if t is not None:
            return t
    return n


def sgsl_forward(x, A, mask, w1, w2, a, alpha_param):
    B, N, D = x.shape
    f32 = jnp.float32
    hp = jax.lax.Precision.HIGHEST

    # Projections (O(B*N*D^2), tiny vs the O(B*N^2*D) pairwise work) computed
    # once per call; x2 is provided transposed so column tiles are lane-dense.
    xf = x.astype(f32)
    x1 = jnp.einsum("bnd,de->bne", xf, w1.astype(f32), precision=hp)
    x2 = jnp.einsum("bnd,de->bne", xf, w2.astype(f32), precision=hp)
    x2t = jnp.swapaxes(x2, 1, 2)                               # (B, D, N)

    alpha = jax.nn.sigmoid(alpha_param.astype(f32)).reshape(1)
    a_s = a.astype(f32).reshape(D)                             # SMEM scalars

    # ---- tile selection (chip-aware VMEM budget) ----------------------------
    try:
        vmem_cap = int(getattr(pltpu.get_tpu_info(), "vmem_capacity_bytes",
                               64 << 20))
    except Exception:
        vmem_cap = 64 << 20
    safe_cap = max(32 << 20, (vmem_cap * 3) // 4)   # headroom: ~48MiB v7x, ~96MiB v6e/v5e

    bt = _largest_divisor(B, cap=max(1, min(8, 1024 // max(N, 1)))) or 1
    slab_bytes = A.dtype.itemsize + mask.dtype.itemsize + 4     # A + mask + out
    nt_cap = max(8, min(1024, (safe_cap // 2) // max(1, 2 * bt * N * slab_bytes)))
    nt = (_largest_divisor(N, nt_cap, multiple_of=8)
          or _largest_divisor(N, nt_cap) or N)
    col_budget = (2 << 20) if safe_cap <= (48 << 20) else (6 << 20)
    col_tile = _pick_col_tile(N, nt, col_budget)
    gb, gi = B // bt, N // nt

    blk_bytes = bt * (nt * D * 4 + D * N * 4 + nt * N * slab_bytes)
    tmp_bytes = 10 * nt * col_tile * 4 + bt * D * N * 4
    vmem_limit = int(min(safe_cap,
                         max(16 << 20, 2 * blk_bytes + tmp_bytes + (4 << 20))))

    kernel = functools.partial(_sgsl_kernel, col_tile=col_tile)

    out, pen_parts = pl.pallas_call(
        kernel,
        out_shape=(
            jax.ShapeDtypeStruct((B, N, N), jnp.float32),
            jax.ShapeDtypeStruct((gb, gi), jnp.float32),
        ),
        grid_spec=pltpu.PrefetchScalarGridSpec(
            num_scalar_prefetch=0,
            grid=(gb, gi),
            in_specs=[
                # sigmoid(alpha): scalar in SMEM
                pl.BlockSpec(memory_space=pltpu.MemorySpace.SMEM),
                # a: per-feature scalars in SMEM
                pl.BlockSpec(memory_space=pltpu.MemorySpace.SMEM),
                # x@w1: rows of the current row tile
                pl.BlockSpec((bt, nt, D), lambda b, i: (b, i, 0)),
                # (x@w2)^T: constant over i -> re-DMA skipped on revisit
                pl.BlockSpec((bt, D, N), lambda b, i: (b, 0, 0)),
                # A, mask: row blocks, full N on the lane (minor) dim
                pl.BlockSpec((bt, nt, N), lambda b, i: (b, i, 0)),
                pl.BlockSpec((bt, nt, N), lambda b, i: (b, i, 0)),
            ],
            out_specs=(
                pl.BlockSpec((bt, nt, N), lambda b, i: (b, i, 0)),
                pl.BlockSpec((1, 1), lambda b, i: (b, i),
                             memory_space=pltpu.MemorySpace.SMEM),
            ),
        ),
        compiler_params=pltpu.CompilerParams(
            dimension_semantics=("parallel", "parallel"),
            vmem_limit_bytes=vmem_limit),
    )(alpha, a_s, x1, x2t, A, mask)

    penalty = jnp.sum(pen_parts) / float(B * N * N)   # torch.mean over (B,N,N)
    return out, [penalty]


def _reference(x, A, mask, w1, w2, a, alpha_param):
    """Pure-JAX mirror of the PyTorch forward (invariant=False, mask given)."""
    hp = jax.lax.Precision.HIGHEST
    x1 = jnp.einsum("bnd,de->bne", x, w1, precision=hp)
    x2 = jnp.einsum("bnd,de->bne", x, w2, precision=hp)
    e = x1[:, :, None, :] + x2[:, None, :, :]
    e = jnp.where(e >= 0.0, e, 0.1 * e)
    score = jnp.einsum("bijd,d->bij", e, a, precision=hp)
    s = jnp.tanh(score / 8.0) * 8.0
    es = jnp.exp(s) * (mask + 1e-32)
    optA = es / jnp.sum(es, -1, keepdims=True)
    s_val = jnp.where(optA > _NUM1, jnp.log(optA) + 5.0, _NUM2 * optA)
    pen = jnp.mean(s_val)
    alpha = jax.nn.sigmoid(alpha_param)[0]
    A_n = A / jnp.sum(A, -1, keepdims=True)
    out = (1.0 - alpha) * A_n + alpha * optA
    return out, pen


if __name__ == "__main__":
    key = jax.random.PRNGKey(0)
    B, N, D = 2, 8, 32       # batch, nodesize, dimension

    k = jax.random.split(key, 6)
    x = jax.random.normal(k[0], (B, N, D), jnp.float32)
    A = jax.random.uniform(k[1], (B, N, N), jnp.float32, minval=0.1, maxval=1.0)
    mask = (jax.random.uniform(k[2], (B, N, N)) > 0.3).astype(jnp.float32)

    # module __init__: randn(D, D), randn(D, D), randn(D), zeros(1)
    w1 = jax.random.normal(k[3], (D, D), jnp.float32)
    w2 = jax.random.normal(k[4], (D, D), jnp.float32)
    a = jax.random.normal(k[5], (D,), jnp.float32)
    alpha_param = jnp.zeros((1,), jnp.float32)

    optimized_A, penalty_term = sgsl_forward(x, A, mask, w1, w2, a, alpha_param)
    optimized_A = jax.block_until_ready(optimized_A)
    penalty = jax.block_until_ready(penalty_term[0])

    assert optimized_A.shape == (B, N, N)
    assert penalty.shape == ()

    out_ref, pen_ref = _reference(x, A, mask, w1, w2, a, alpha_param)
    assert np.allclose(np.asarray(optimized_A), np.asarray(out_ref),
                       rtol=5e-3, atol=5e-4), "optimized_A mismatch vs reference"
    assert np.allclose(float(penalty), float(pen_ref),
                       rtol=5e-3, atol=5e-4), "penalty mismatch vs reference"

    print("KERNEL_OK")
</pallas_src>

<mosaic_0001>
module attributes {stable_mosaic.version = 11 : i64} {
  func.func @_sgsl_kernel(%arg0: i32, %arg1: i32, %arg2: memref<1xf32, #tpu.memory_space<smem>>, %arg3: memref<32xf32, #tpu.memory_space<smem>>, %arg4: memref<2x8x32xf32, #tpu.memory_space<vmem>>, %arg5: memref<2x32x8xf32, #tpu.memory_space<vmem>>, %arg6: memref<2x8x8xf32, #tpu.memory_space<vmem>>, %arg7: memref<2x8x8xf32, #tpu.memory_space<vmem>>, %arg8: memref<2x8x8xf32, #tpu.memory_space<vmem>>, %arg9: memref<1x1xf32, #tpu.memory_space<smem>>) attributes {dimension_semantics = [#tpu.dimension_semantics<parallel>, #tpu.dimension_semantics<parallel>], iteration_bounds = array<i64: 1, 1>, scalar_prefetch = 0 : i64, scratch_operands = 0 : i64, tpu.core_type = #tpu.core_type<tc>, window_params = [{transform_indices = @transform_0, window_bounds = array<i64: 1>}, {transform_indices = @transform_1, window_bounds = array<i64: 32>}, {transform_indices = @transform_2, window_bounds = array<i64: 2, 8, 32>}, {transform_indices = @transform_3, window_bounds = array<i64: 2, 32, 8>}, {transform_indices = @transform_4, window_bounds = array<i64: 2, 8, 8>}, {transform_indices = @transform_5, window_bounds = array<i64: 2, 8, 8>}, {transform_indices = @transform_6, window_bounds = array<i64: 2, 8, 8>}, {transform_indices = @transform_7, window_bounds = array<i64: 1, 1>}]} {
    %c0 = arith.constant 0 : index
    %0 = memref.load %arg2[%c0] : memref<1xf32, #tpu.memory_space<smem>>
    %cst = arith.constant 1.000000e+00 : f32
    %1 = arith.subf %cst, %0 : f32
    %c0_0 = arith.constant 0 : index
    %2 = memref.load %arg3[%c0_0] : memref<32xf32, #tpu.memory_space<smem>>
    %cst_1 = arith.constant 5.500000e-01 : f32
    %3 = arith.mulf %cst_1, %2 : f32
    %c1 = arith.constant 1 : index
    %4 = memref.load %arg3[%c1] : memref<32xf32, #tpu.memory_space<smem>>
    %cst_2 = arith.constant 5.500000e-01 : f32
    %5 = arith.mulf %cst_2, %4 : f32
    %c2 = arith.constant 2 : index
    %6 = memref.load %arg3[%c2] : memref<32xf32, #tpu.memory_space<smem>>
    %cst_3 = arith.constant 5.500000e-01 : f32
    %7 = arith.mulf %cst_3, %6 : f32
    %c3 = arith.constant 3 : index
    %8 = memref.load %arg3[%c3] : memref<32xf32, #tpu.memory_space<smem>>
    %cst_4 = arith.constant 5.500000e-01 : f32
    %9 = arith.mulf %cst_4, %8 : f32
    %c4 = arith.constant 4 : index
    %10 = memref.load %arg3[%c4] : memref<32xf32, #tpu.memory_space<smem>>
    %cst_5 = arith.constant 5.500000e-01 : f32
    %11 = arith.mulf %cst_5, %10 : f32
    %c5 = arith.constant 5 : index
    %12 = memref.load %arg3[%c5] : memref<32xf32, #tpu.memory_space<smem>>
    %cst_6 = arith.constant 5.500000e-01 : f32
    %13 = arith.mulf %cst_6, %12 : f32
    %c6 = arith.constant 6 : index
    %14 = memref.load %arg3[%c6] : memref<32xf32, #tpu.memory_space<smem>>
    %cst_7 = arith.constant 5.500000e-01 : f32
    %15 = arith.mulf %cst_7, %14 : f32
    %c7 = arith.constant 7 : index
    %16 = memref.load %arg3[%c7] : memref<32xf32, #tpu.memory_space<smem>>
    %cst_8 = arith.constant 5.500000e-01 : f32
    %17 = arith.mulf %cst_8, %16 : f32
    %c8 = arith.constant 8 : index
    %18 = memref.load %arg3[%c8] : memref<32xf32, #tpu.memory_space<smem>>
    %cst_9 = arith.constant 5.500000e-01 : f32
    %19 = arith.mulf %cst_9, %18 : f32
    %c9 = arith.constant 9 : index
    %20 = memref.load %arg3[%c9] : memref<32xf32, #tpu.memory_space<smem>>
    %cst_10 = arith.constant 5.500000e-01 : f32
    %21 = arith.mulf %cst_10, %20 : f32
    %c10 = arith.constant 10 : index
    %22 = memref.load %arg3[%c10] : memref<32xf32, #tpu.memory_space<smem>>
    %cst_11 = arith.constant 5.500000e-01 : f32
    %23 = arith.mulf %cst_11, %22 : f32
    %c11 = arith.constant 11 : index
    %24 = memref.load %arg3[%c11] : memref<32xf32, #tpu.memory_space<smem>>
    %cst_12 = arith.constant 5.500000e-01 : f32
    %25 = arith.mulf %cst_12, %24 : f32
    %c12 = arith.constant 12 : index
    %26 = memref.load %arg3[%c12] : memref<32xf32, #tpu.memory_space<smem>>
    %cst_13 = arith.constant 5.500000e-01 : f32
    %27 = arith.mulf %cst_13, %26 : f32
    %c13 = arith.constant 13 : index
    %28 = memref.load %arg3[%c13] : memref<32xf32, #tpu.memory_space<smem>>
    %cst_14 = arith.constant 5.500000e-01 : f32
    %29 = arith.mulf %cst_14, %28 : f32
    %c14 = arith.constant 14 : index
    %30 = memref.load %arg3[%c14] : memref<32xf32, #tpu.memory_space<smem>>
    %cst_15 = arith.constant 5.500000e-01 : f32
    %31 = arith.mulf %cst_15, %30 : f32
    %c15 = arith.constant 15 : index
    %32 = memref.load %arg3[%c15] : memref<32xf32, #tpu.memory_space<smem>>
    %cst_16 = arith.constant 5.500000e-01 : f32
    %33 = arith.mulf %cst_16, %32 : f32
    %c16 = arith.constant 16 : index
    %34 = memref.load %arg3[%c16] : memref<32xf32, #tpu.memory_space<smem>>
    %cst_17 = arith.constant 5.500000e-01 : f32
    %35 = arith.mulf %cst_17, %34 : f32
    %c17 = arith.constant 17 : index
    %36 = memref.load %arg3[%c17] : memref<32xf32, #tpu.memory_space<smem>>
    %cst_18 = arith.constant 5.500000e-01 : f32
    %37 = arith.mulf %cst_18, %36 : f32
    %c18 = arith.constant 18 : index
    %38 = memref.load %arg3[%c18] : memref<32xf32, #tpu.memory_space<smem>>
    %cst_19 = arith.constant 5.500000e-01 : f32
    %39 = arith.mulf %cst_19, %38 : f32
    %c19 = arith.constant 19 : index
    %40 = memref.load %arg3[%c19] : memref<32xf32, #tpu.memory_space<smem>>
    %cst_20 = arith.constant 5.500000e-01 : f32
    %41 = arith.mulf %cst_20, %40 : f32
    %c20 = arith.constant 20 : index
    %42 = memref.load %arg3[%c20] : memref<32xf32, #tpu.memory_space<smem>>
    %cst_21 = arith.constant 5.500000e-01 : f32
    %43 = arith.mulf %cst_21, %42 : f32
    %c21 = arith.constant 21 : index
    %44 = memref.load %arg3[%c21] : memref<32xf32, #tpu.memory_space<smem>>
    %cst_22 = arith.constant 5.500000e-01 : f32
    %45 = arith.mulf %cst_22, %44 : f32
    %c22 = arith.constant 22 : index
    %46 = memref.load %arg3[%c22] : memref<32xf32, #tpu.memory_space<smem>>
    %cst_23 = arith.constant 5.500000e-01 : f32
    %47 = arith.mulf %cst_23, %46 : f32
    %c23 = arith.constant 23 : index
    %48 = memref.load %arg3[%c23] : memref<32xf32, #tpu.memory_space<smem>>
    %cst_24 = arith.constant 5.500000e-01 : f32
    %49 = arith.mulf %cst_24, %48 : f32
    %c24 = arith.constant 24 : index
    %50 = memref.load %arg3[%c24] : memref<32xf32, #tpu.memory_space<smem>>
    %cst_25 = arith.constant 5.500000e-01 : f32
    %51 = arith.mulf %cst_25, %50 : f32
    %c25 = arith.constant 25 : index
    %52 = memref.load %arg3[%c25] : memref<32xf32, #tpu.memory_space<smem>>
    %cst_26 = arith.constant 5.500000e-01 : f32
    %53 = arith.mulf %cst_26, %52 : f32
    %c26 = arith.constant 26 : index
    %54 = memref.load %arg3[%c26] : memref<32xf32, #tpu.memory_space<smem>>
    %cst_27 = arith.constant 5.500000e-01 : f32
    %55 = arith.mulf %cst_27, %54 : f32
    %c27 = arith.constant 27 : index
    %56 = memref.load %arg3[%c27] : memref<32xf32, #tpu.memory_space<smem>>
    %cst_28 = arith.constant 5.500000e-01 : f32
    %57 = arith.mulf %cst_28, %56 : f32
    %c28 = arith.constant 28 : index
    %58 = memref.load %arg3[%c28] : memref<32xf32, #tpu.memory_space<smem>>
    %cst_29 = arith.constant 5.500000e-01 : f32
    %59 = arith.mulf %cst_29, %58 : f32
    %c29 = arith.constant 29 : index
    %60 = memref.load %arg3[%c29] : memref<32xf32, #tpu.memory_space<smem>>
    %cst_30 = arith.constant 5.500000e-01 : f32
    %61 = arith.mulf %cst_30, %60 : f32
    %c30 = arith.constant 30 : index
    %62 = memref.load %arg3[%c30] : memref<32xf32, #tpu.memory_space<smem>>
    %cst_31 = arith.constant 5.500000e-01 : f32
    %63 = arith.mulf %cst_31, %62 : f32
    %c31 = arith.constant 31 : index
    %64 = memref.load %arg3[%c31] : memref<32xf32, #tpu.memory_space<smem>>
    %cst_32 = arith.constant 5.500000e-01 : f32
    %65 = arith.mulf %cst_32, %64 : f32
    %c0_33 = arith.constant 0 : index
    %66 = memref.load %arg3[%c0_33] : memref<32xf32, #tpu.memory_space<smem>>
    %cst_34 = arith.constant 4.500000e-01 : f32
    %67 = arith.mulf %cst_34, %66 : f32
    %c1_35 = arith.constant 1 : index
    %68 = memref.load %arg3[%c1_35] : memref<32xf32, #tpu.memory_space<smem>>
    %cst_36 = arith.constant 4.500000e-01 : f32
    %69 = arith.mulf %cst_36, %68 : f32
    %c2_37 = arith.constant 2 : index
    %70 = memref.load %arg3[%c2_37] : memref<32xf32, #tpu.memory_space<smem>>
    %cst_38 = arith.constant 4.500000e-01 : f32
    %71 = arith.mulf %cst_38, %70 : f32
    %c3_39 = arith.constant 3 : index
    %72 = memref.load %arg3[%c3_39] : memref<32xf32, #tpu.memory_space<smem>>
    %cst_40 = arith.constant 4.500000e-01 : f32
    %73 = arith.mulf %cst_40, %72 : f32
    %c4_41 = arith.constant 4 : index
    %74 = memref.load %arg3[%c4_41] : memref<32xf32, #tpu.memory_space<smem>>
    %cst_42 = arith.constant 4.500000e-01 : f32
    %75 = arith.mulf %cst_42, %74 : f32
    %c5_43 = arith.constant 5 : index
    %76 = memref.load %arg3[%c5_43] : memref<32xf32, #tpu.memory_space<smem>>
    %cst_44 = arith.constant 4.500000e-01 : f32
    %77 = arith.mulf %cst_44, %76 : f32
    %c6_45 = arith.constant 6 : index
    %78 = memref.load %arg3[%c6_45] : memref<32xf32, #tpu.memory_space<smem>>
    %cst_46 = arith.constant 4.500000e-01 : f32
    %79 = arith.mulf %cst_46, %78 : f32
    %c7_47 = arith.constant 7 : index
    %80 = memref.load %arg3[%c7_47] : memref<32xf32, #tpu.memory_space<smem>>
    %cst_48 = arith.constant 4.500000e-01 : f32
    %81 = arith.mulf %cst_48, %80 : f32
    %c8_49 = arith.constant 8 : index
    %82 = memref.load %arg3[%c8_49] : memref<32xf32, #tpu.memory_space<smem>>
    %cst_50 = arith.constant 4.500000e-01 : f32
    %83 = arith.mulf %cst_50, %82 : f32
    %c9_51 = arith.constant 9 : index
    %84 = memref.load %arg3[%c9_51] : memref<32xf32, #tpu.memory_space<smem>>
    %cst_52 = arith.constant 4.500000e-01 : f32
    %85 = arith.mulf %cst_52, %84 : f32
    %c10_53 = arith.constant 10 : index
    %86 = memref.load %arg3[%c10_53] : memref<32xf32, #tpu.memory_space<smem>>
    %cst_54 = arith.constant 4.500000e-01 : f32
    %87 = arith.mulf %cst_54, %86 : f32
    %c11_55 = arith.constant 11 : index
    %88 = memref.load %arg3[%c11_55] : memref<32xf32, #tpu.memory_space<smem>>
    %cst_56 = arith.constant 4.500000e-01 : f32
    %89 = arith.mulf %cst_56, %88 : f32
    %c12_57 = arith.constant 12 : index
    %90 = memref.load %arg3[%c12_57] : memref<32xf32, #tpu.memory_space<smem>>
    %cst_58 = arith.constant 4.500000e-01 : f32
    %91 = arith.mulf %cst_58, %90 : f32
    %c13_59 = arith.constant 13 : index
    %92 = memref.load %arg3[%c13_59] : memref<32xf32, #tpu.memory_space<smem>>
    %cst_60 = arith.constant 4.500000e-01 : f32
    %93 = arith.mulf %cst_60, %92 : f32
    %c14_61 = arith.constant 14 : index
    %94 = memref.load %arg3[%c14_61] : memref<32xf32, #tpu.memory_space<smem>>
    %cst_62 = arith.constant 4.500000e-01 : f32
    %95 = arith.mulf %cst_62, %94 : f32
    %c15_63 = arith.constant 15 : index
    %96 = memref.load %arg3[%c15_63] : memref<32xf32, #tpu.memory_space<smem>>
    %cst_64 = arith.constant 4.500000e-01 : f32
    %97 = arith.mulf %cst_64, %96 : f32
    %c16_65 = arith.constant 16 : index
    %98 = memref.load %arg3[%c16_65] : memref<32xf32, #tpu.memory_space<smem>>
    %cst_66 = arith.constant 4.500000e-01 : f32
    %99 = arith.mulf %cst_66, %98 : f32
    %c17_67 = arith.constant 17 : index
    %100 = memref.load %arg3[%c17_67] : memref<32xf32, #tpu.memory_space<smem>>
    %cst_68 = arith.constant 4.500000e-01 : f32
    %101 = arith.mulf %cst_68, %100 : f32
    %c18_69 = arith.constant 18 : index
    %102 = memref.load %arg3[%c18_69] : memref<32xf32, #tpu.memory_space<smem>>
    %cst_70 = arith.constant 4.500000e-01 : f32
    %103 = arith.mulf %cst_70, %102 : f32
    %c19_71 = arith.constant 19 : index
    %104 = memref.load %arg3[%c19_71] : memref<32xf32, #tpu.memory_space<smem>>
    %cst_72 = arith.constant 4.500000e-01 : f32
    %105 = arith.mulf %cst_72, %104 : f32
    %c20_73 = arith.constant 20 : index
    %106 = memref.load %arg3[%c20_73] : memref<32xf32, #tpu.memory_space<smem>>
    %cst_74 = arith.constant 4.500000e-01 : f32
    %107 = arith.mulf %cst_74, %106 : f32
    %c21_75 = arith.constant 21 : index
    %108 = memref.load %arg3[%c21_75] : memref<32xf32, #tpu.memory_space<smem>>
    %cst_76 = arith.constant 4.500000e-01 : f32
    %109 = arith.mulf %cst_76, %108 : f32
    %c22_77 = arith.constant 22 : index
    %110 = memref.load %arg3[%c22_77] : memref<32xf32, #tpu.memory_space<smem>>
    %cst_78 = arith.constant 4.500000e-01 : f32
    %111 = arith.mulf %cst_78, %110 : f32
    %c23_79 = arith.constant 23 : index
    %112 = memref.load %arg3[%c23_79] : memref<32xf32, #tpu.memory_space<smem>>
    %cst_80 = arith.constant 4.500000e-01 : f32
    %113 = arith.mulf %cst_80, %112 : f32
    %c24_81 = arith.constant 24 : index
    %114 = memref.load %arg3[%c24_81] : memref<32xf32, #tpu.memory_space<smem>>
    %cst_82 = arith.constant 4.500000e-01 : f32
    %115 = arith.mulf %cst_82, %114 : f32
    %c25_83 = arith.constant 25 : index
    %116 = memref.load %arg3[%c25_83] : memref<32xf32, #tpu.memory_space<smem>>
    %cst_84 = arith.constant 4.500000e-01 : f32
    %117 = arith.mulf %cst_84, %116 : f32
    %c26_85 = arith.constant 26 : index
    %118 = memref.load %arg3[%c26_85] : memref<32xf32, #tpu.memory_space<smem>>
    %cst_86 = arith.constant 4.500000e-01 : f32
    %119 = arith.mulf %cst_86, %118 : f32
    %c27_87 = arith.constant 27 : index
    %120 = memref.load %arg3[%c27_87] : memref<32xf32, #tpu.memory_space<smem>>
    %cst_88 = arith.constant 4.500000e-01 : f32
    %121 = arith.mulf %cst_88, %120 : f32
    %c28_89 = arith.constant 28 : index
    %122 = memref.load %arg3[%c28_89] : memref<32xf32, #tpu.memory_space<smem>>
    %cst_90 = arith.constant 4.500000e-01 : f32
    %123 = arith.mulf %cst_90, %122 : f32
    %c29_91 = arith.constant 29 : index
    %124 = memref.load %arg3[%c29_91] : memref<32xf32, #tpu.memory_space<smem>>
    %cst_92 = arith.constant 4.500000e-01 : f32
    %125 = arith.mulf %cst_92, %124 : f32
    %c30_93 = arith.constant 30 : index
    %126 = memref.load %arg3[%c30_93] : memref<32xf32, #tpu.memory_space<smem>>
    %cst_94 = arith.constant 4.500000e-01 : f32
    %127 = arith.mulf %cst_94, %126 : f32
    %c31_95 = arith.constant 31 : index
    %128 = memref.load %arg3[%c31_95] : memref<32xf32, #tpu.memory_space<smem>>
    %cst_96 = arith.constant 4.500000e-01 : f32
    %129 = arith.mulf %cst_96, %128 : f32
    %cst_97 = arith.constant 0.000000e+00 : f32
    %130 = vector.broadcast %cst_97 : f32 to vector<8x1xf32>
    %c0_98 = arith.constant 0 : index
    %c0_99 = arith.constant 0 : index
    %c0_100 = arith.constant 0 : index
    %131 = vector.load %arg4[%c0_98, %c0_99, %c0_100] : memref<2x8x32xf32, #tpu.memory_space<vmem>>, vector<1x8x32xf32>
    %132 = vector.shape_cast %131 : vector<1x8x32xf32> to vector<8x32xf32>
    %133 = vector.extract_strided_slice %132 {offsets = [0, 0], sizes = [8, 1], strides = [1, 1]} : vector<8x32xf32> to vector<8x1xf32>
    %134 = vector.extract_strided_slice %132 {offsets = [0, 1], sizes = [8, 1], strides = [1, 1]} : vector<8x32xf32> to vector<8x1xf32>
    %135 = vector.extract_strided_slice %132 {offsets = [0, 2], sizes = [8, 1], strides = [1, 1]} : vector<8x32xf32> to vector<8x1xf32>
    %136 = vector.extract_strided_slice %132 {offsets = [0, 3], sizes = [8, 1], strides = [1, 1]} : vector<8x32xf32> to vector<8x1xf32>
    %137 = vector.extract_strided_slice %132 {offsets = [0, 4], sizes = [8, 1], strides = [1, 1]} : vector<8x32xf32> to vector<8x1xf32>
    %138 = vector.extract_strided_slice %132 {offsets = [0, 5], sizes = [8, 1], strides = [1, 1]} : vector<8x32xf32> to vector<8x1xf32>
    %139 = vector.extract_strided_slice %132 {offsets = [0, 6], sizes = [8, 1], strides = [1, 1]} : vector<8x32xf32> to vector<8x1xf32>
    %140 = vector.extract_strided_slice %132 {offsets = [0, 7], sizes = [8, 1], strides = [1, 1]} : vector<8x32xf32> to vector<8x1xf32>
    %141 = vector.extract_strided_slice %132 {offsets = [0, 8], sizes = [8, 1], strides = [1, 1]} : vector<8x32xf32> to vector<8x1xf32>
    %142 = vector.extract_strided_slice %132 {offsets = [0, 9], sizes = [8, 1], strides = [1, 1]} : vector<8x32xf32> to vector<8x1xf32>
    %143 = vector.extract_strided_slice %132 {offsets = [0, 10], sizes = [8, 1], strides = [1, 1]} : vector<8x32xf32> to vector<8x1xf32>
    %144 = vector.extract_strided_slice %132 {offsets = [0, 11], sizes = [8, 1], strides = [1, 1]} : vector<8x32xf32> to vector<8x1xf32>
    %145 = vector.extract_strided_slice %132 {offsets = [0, 12], sizes = [8, 1], strides = [1, 1]} : vector<8x32xf32> to vector<8x1xf32>
    %146 = vector.extract_strided_slice %132 {offsets = [0, 13], sizes = [8, 1], strides = [1, 1]} : vector<8x32xf32> to vector<8x1xf32>
    %147 = vector.extract_strided_slice %132 {offsets = [0, 14], sizes = [8, 1], strides = [1, 1]} : vector<8x32xf32> to vector<8x1xf32>
    %148 = vector.extract_strided_slice %132 {offsets = [0, 15], sizes = [8, 1], strides = [1, 1]} : vector<8x32xf32> to vector<8x1xf32>
    %149 = vector.extract_strided_slice %132 {offsets = [0, 16], sizes = [8, 1], strides = [1, 1]} : vector<8x32xf32> to vector<8x1xf32>
    %150 = vector.extract_strided_slice %132 {offsets = [0, 17], sizes = [8, 1], strides = [1, 1]} : vector<8x32xf32> to vector<8x1xf32>
    %151 = vector.extract_strided_slice %132 {offsets = [0, 18], sizes = [8, 1], strides = [1, 1]} : vector<8x32xf32> to vector<8x1xf32>
    %152 = vector.extract_strided_slice %132 {offsets = [0, 19], sizes = [8, 1], strides = [1, 1]} : vector<8x32xf32> to vector<8x1xf32>
    %153 = vector.extract_strided_slice %132 {offsets = [0, 20], sizes = [8, 1], strides = [1, 1]} : vector<8x32xf32> to vector<8x1xf32>
    %154 = vector.extract_strided_slice %132 {offsets = [0, 21], sizes = [8, 1], strides = [1, 1]} : vector<8x32xf32> to vector<8x1xf32>
    %155 = vector.extract_strided_slice %132 {offsets = [0, 22], sizes = [8, 1], strides = [1, 1]} : vector<8x32xf32> to vector<8x1xf32>
    %156 = vector.extract_strided_slice %132 {offsets = [0, 23], sizes = [8, 1], strides = [1, 1]} : vector<8x32xf32> to vector<8x1xf32>
    %157 = vector.extract_strided_slice %132 {offsets = [0, 24], sizes = [8, 1], strides = [1, 1]} : vector<8x32xf32> to vector<8x1xf32>
    %158 = vector.extract_strided_slice %132 {offsets = [0, 25], sizes = [8, 1], strides = [1, 1]} : vector<8x32xf32> to vector<8x1xf32>
    %159 = vector.extract_strided_slice %132 {offsets = [0, 26], sizes = [8, 1], strides = [1, 1]} : vector<8x32xf32> to vector<8x1xf32>
    %160 = vector.extract_strided_slice %132 {offsets = [0, 27], sizes = [8, 1], strides = [1, 1]} : vector<8x32xf32> to vector<8x1xf32>
    %161 = vector.extract_strided_slice %132 {offsets = [0, 28], sizes = [8, 1], strides = [1, 1]} : vector<8x32xf32> to vector<8x1xf32>
    %162 = vector.extract_strided_slice %132 {offsets = [0, 29], sizes = [8, 1], strides = [1, 1]} : vector<8x32xf32> to vector<8x1xf32>
    %163 = vector.extract_strided_slice %132 {offsets = [0, 30], sizes = [8, 1], strides = [1, 1]} : vector<8x32xf32> to vector<8x1xf32>
    %164 = vector.extract_strided_slice %132 {offsets = [0, 31], sizes = [8, 1], strides = [1, 1]} : vector<8x32xf32> to vector<8x1xf32>
    %cst_101 = arith.constant 0.000000e+00 : f32
    %165 = vector.broadcast %cst_101 : f32 to vector<8x1xf32>
    %166 = vector.broadcast %3 : f32 to vector<8x1xf32>
    %167 = arith.mulf %166, %133 : vector<8x1xf32>
    %168 = arith.addf %165, %167 : vector<8x1xf32>
    %169 = vector.broadcast %5 : f32 to vector<8x1xf32>
    %170 = arith.mulf %169, %134 : vector<8x1xf32>
    %171 = arith.addf %168, %170 : vector<8x1xf32>
    %172 = vector.broadcast %7 : f32 to vector<8x1xf32>
    %173 = arith.mulf %172, %135 : vector<8x1xf32>
    %174 = arith.addf %171, %173 : vector<8x1xf32>
    %175 = vector.broadcast %9 : f32 to vector<8x1xf32>
    %176 = arith.mulf %175, %136 : vector<8x1xf32>
    %177 = arith.addf %174, %176 : vector<8x1xf32>
    %178 = vector.broadcast %11 : f32 to vector<8x1xf32>
    %179 = arith.mulf %178, %137 : vector<8x1xf32>
    %180 = arith.addf %177, %179 : vector<8x1xf32>
    %181 = vector.broadcast %13 : f32 to vector<8x1xf32>
    %182 = arith.mulf %181, %138 : vector<8x1xf32>
    %183 = arith.addf %180, %182 : vector<8x1xf32>
    %184 = vector.broadcast %15 : f32 to vector<8x1xf32>
    %185 = arith.mulf %184, %139 : vector<8x1xf32>
    %186 = arith.addf %183, %185 : vector<8x1xf32>
    %187 = vector.broadcast %17 : f32 to vector<8x1xf32>
    %188 = arith.mulf %187, %140 : vector<8x1xf32>
    %189 = arith.addf %186, %188 : vector<8x1xf32>
    %190 = vector.broadcast %19 : f32 to vector<8x1xf32>
    %191 = arith.mulf %190, %141 : vector<8x1xf32>
    %192 = arith.addf %189, %191 : vector<8x1xf32>
    %193 = vector.broadcast %21 : f32 to vector<8x1xf32>
    %194 = arith.mulf %193, %142 : vector<8x1xf32>
    %195 = arith.addf %192, %194 : vector<8x1xf32>
    %196 = vector.broadcast %23 : f32 to vector<8x1xf32>
    %197 = arith.mulf %196, %143 : vector<8x1xf32>
    %198 = arith.addf %195, %197 : vector<8x1xf32>
    %199 = vector.broadcast %25 : f32 to vector<8x1xf32>
    %200 = arith.mulf %199, %144 : vector<8x1xf32>
    %201 = arith.addf %198, %200 : vector<8x1xf32>
    %202 = vector.broadcast %27 : f32 to vector<8x1xf32>
    %203 = arith.mulf %202, %145 : vector<8x1xf32>
    %204 = arith.addf %201, %203 : vector<8x1xf32>
    %205 = vector.broadcast %29 : f32 to vector<8x1xf32>
    %206 = arith.mulf %205, %146 : vector<8x1xf32>
    %207 = arith.addf %204, %206 : vector<8x1xf32>
    %208 = vector.broadcast %31 : f32 to vector<8x1xf32>
    %209 = arith.mulf %208, %147 : vector<8x1xf32>
    %210 = arith.addf %207, %209 : vector<8x1xf32>
    %211 = vector.broadcast %33 : f32 to vector<8x1xf32>
    %212 = arith.mulf %211, %148 : vector<8x1xf32>
    %213 = arith.addf %210, %212 : vector<8x1xf32>
    %214 = vector.broadcast %35 : f32 to vector<8x1xf32>
    %215 = arith.mulf %214, %149 : vector<8x1xf32>
    %216 = arith.addf %213, %215 : vector<8x1xf32>
    %217 = vector.broadcast %37 : f32 to vector<8x1xf32>
    %218 = arith.mulf %217, %150 : vector<8x1xf32>
    %219 = arith.addf %216, %218 : vector<8x1xf32>
    %220 = vector.broadcast %39 : f32 to vector<8x1xf32>
    %221 = arith.mulf %220, %151 : vector<8x1xf32>
    %222 = arith.addf %219, %221 : vector<8x1xf32>
    %223 = vector.broadcast %41 : f32 to vector<8x1xf32>
    %224 = arith.mulf %223, %152 : vector<8x1xf32>
    %225 = arith.addf %222, %224 : vector<8x1xf32>
    %226 = vector.broadcast %43 : f32 to vector<8x1xf32>
    %227 = arith.mulf %226, %153 : vector<8x1xf32>
    %228 = arith.addf %225, %227 : vector<8x1xf32>
    %229 = vector.broadcast %45 : f32 to vector<8x1xf32>
    %230 = arith.mulf %229, %154 : vector<8x1xf32>
    %231 = arith.addf %228, %230 : vector<8x1xf32>
    %232 = vector.broadcast %47 : f32 to vector<8x1xf32>
    %233 = arith.mulf %232, %155 : vector<8x1xf32>
    %234 = arith.addf %231, %233 : vector<8x1xf32>
    %235 = vector.broadcast %49 : f32 to vector<8x1xf32>
    %236 = arith.mulf %235, %156 : vector<8x1xf32>
    %237 = arith.addf %234, %236 : vector<8x1xf32>
    %238 = vector.broadcast %51 : f32 to vector<8x1xf32>
    %239 = arith.mulf %238, %157 : vector<8x1xf32>
    %240 = arith.addf %237, %239 : vector<8x1xf32>
    %241 = vector.broadcast %53 : f32 to vector<8x1xf32>
    %242 = arith.mulf %241, %158 : vector<8x1xf32>
    %243 = arith.addf %240, %242 : vector<8x1xf32>
    %244 = vector.broadcast %55 : f32 to vector<8x1xf32>
    %245 = arith.mulf %244, %159 : vector<8x1xf32>
    %246 = arith.addf %243, %245 : vector<8x1xf32>
    %247 = vector.broadcast %57 : f32 to vector<8x1xf32>
    %248 = arith.mulf %247, %160 : vector<8x1xf32>
    %249 = arith.addf %246, %248 : vector<8x1xf32>
    %250 = vector.broadcast %59 : f32 to vector<8x1xf32>
    %251 = arith.mulf %250, %161 : vector<8x1xf32>
    %252 = arith.addf %249, %251 : vector<8x1xf32>
    %253 = vector.broadcast %61 : f32 to vector<8x1xf32>
    %254 = arith.mulf %253, %162 : vector<8x1xf32>
    %255 = arith.addf %252, %254 : vector<8x1xf32>
    %256 = vector.broadcast %63 : f32 to vector<8x1xf32>
    %257 = arith.mulf %256, %163 : vector<8x1xf32>
    %258 = arith.addf %255, %257 : vector<8x1xf32>
    %259 = vector.broadcast %65 : f32 to vector<8x1xf32>
    %260 = arith.mulf %259, %164 : vector<8x1xf32>
    %261 = arith.addf %258, %260 : vector<8x1xf32>
    %cst_102 = arith.constant 0.000000e+00 : f32
    %262 = vector.broadcast %cst_102 : f32 to vector<8x1xf32>
    %cst_103 = arith.constant 0.000000e+00 : f32
    %263 = vector.broadcast %cst_103 : f32 to vector<8x1xf32>
    %c0_104 = arith.constant 0 : index
    %c0_105 = arith.constant 0 : index
    %c0_106 = arith.constant 0 : index
    %264 = vector.load %arg5[%c0_104, %c0_105, %c0_106] : memref<2x32x8xf32, #tpu.memory_space<vmem>>, vector<1x32x8xf32>
    %265 = vector.shape_cast %264 : vector<1x32x8xf32> to vector<32x8xf32>
    %cst_107 = arith.constant 0.000000e+00 : f32
    %266 = vector.broadcast %cst_107 : f32 to vector<1x8xf32>
    %267 = vector.extract_strided_slice %265 {offsets = [0, 0], sizes = [1, 8], strides = [1, 1]} : vector<32x8xf32> to vector<1x8xf32>
    %268 = vector.broadcast %3 : f32 to vector<1x8xf32>
    %269 = arith.mulf %268, %267 : vector<1x8xf32>
    %270 = arith.addf %266, %269 : vector<1x8xf32>
    %271 = vector.extract_strided_slice %265 {offsets = [1, 0], sizes = [1, 8], strides = [1, 1]} : vector<32x8xf32> to vector<1x8xf32>
    %272 = vector.broadcast %5 : f32 to vector<1x8xf32>
    %273 = arith.mulf %272, %271 : vector<1x8xf32>
    %274 = arith.addf %270, %273 : vector<1x8xf32>
    %275 = vector.extract_strided_slice %265 {offsets = [2, 0], sizes = [1, 8], strides = [1, 1]} : vector<32x8xf32> to vector<1x8xf32>
    %276 = vector.broadcast %7 : f32 to vector<1x8xf32>
    %277 = arith.mulf %276, %275 : vector<1x8xf32>
    %278 = arith.addf %274, %277 : vector<1x8xf32>
    %279 = vector.extract_strided_slice %265 {offsets = [3, 0], sizes = [1, 8], strides = [1, 1]} : vector<32x8xf32> to vector<1x8xf32>
    %280 = vector.broadcast %9 : f32 to vector<1x8xf32>
    %281 = arith.mulf %280, %279 : vector<1x8xf32>
    %282 = arith.addf %278, %281 : vector<1x8xf32>
    %283 = vector.extract_strided_slice %265 {offsets = [4, 0], sizes = [1, 8], strides = [1, 1]} : vector<32x8xf32> to vector<1x8xf32>
    %284 = vector.broadcast %11 : f32 to vector<1x8xf32>
    %285 = arith.mulf %284, %283 : vector<1x8xf32>
    %286 = arith.addf %282, %285 : vector<1x8xf32>
    %287 = vector.extract_strided_slice %265 {offsets = [5, 0], sizes = [1, 8], strides = [1, 1]} : vector<32x8xf32> to vector<1x8xf32>
    %288 = vector.broadcast %13 : f32 to vector<1x8xf32>
    %289 = arith.mulf %288, %287 : vector<1x8xf32>
    %290 = arith.addf %286, %289 : vector<1x8xf32>
    %291 = vector.extract_strided_slice %265 {offsets = [6, 0], sizes = [1, 8], strides = [1, 1]} : vector<32x8xf32> to vector<1x8xf32>
    %292 = vector.broadcast %15 : f32 to vector<1x8xf32>
    %293 = arith.mulf %292, %291 : vector<1x8xf32>
    %294 = arith.addf %290, %293 : vector<1x8xf32>
    %295 = vector.extract_strided_slice %265 {offsets = [7, 0], sizes = [1, 8], strides = [1, 1]} : vector<32x8xf32> to vector<1x8xf32>
    %296 = vector.broadcast %17 : f32 to vector<1x8xf32>
    %297 = arith.mulf %296, %295 : vector<1x8xf32>
    %298 = arith.addf %294, %297 : vector<1x8xf32>
    %299 = vector.extract_strided_slice %265 {offsets = [8, 0], sizes = [1, 8], strides = [1, 1]} : vector<32x8xf32> to vector<1x8xf32>
    %300 = vector.broadcast %19 : f32 to vector<1x8xf32>
    %301 = arith.mulf %300, %299 : vector<1x8xf32>
    %302 = arith.addf %298, %301 : vector<1x8xf32>
    %303 = vector.extract_strided_slice %265 {offsets = [9, 0], sizes = [1, 8], strides = [1, 1]} : vector<32x8xf32> to vector<1x8xf32>
    %304 = vector.broadcast %21 : f32 to vector<1x8xf32>
    %305 = arith.mulf %304, %303 : vector<1x8xf32>
    %306 = arith.addf %302, %305 : vector<1x8xf32>
    %307 = vector.extract_strided_slice %265 {offsets = [10, 0], sizes = [1, 8], strides = [1, 1]} : vector<32x8xf32> to vector<1x8xf32>
    %308 = vector.broadcast %23 : f32 to vector<1x8xf32>
    %309 = arith.mulf %308, %307 : vector<1x8xf32>
    %310 = arith.addf %306, %309 : vector<1x8xf32>
    %311 = vector.extract_strided_slice %265 {offsets = [11, 0], sizes = [1, 8], strides = [1, 1]} : vector<32x8xf32> to vector<1x8xf32>
    %312 = vector.broadcast %25 : f32 to vector<1x8xf32>
    %313 = arith.mulf %312, %311 : vector<1x8xf32>
    %314 = arith.addf %310, %313 : vector<1x8xf32>
    %315 = vector.extract_strided_slice %265 {offsets = [12, 0], sizes = [1, 8], strides = [1, 1]} : vector<32x8xf32> to vector<1x8xf32>
    %316 = vector.broadcast %27 : f32 to vector<1x8xf32>
    %317 = arith.mulf %316, %315 : vector<1x8xf32>
    %318 = arith.addf %314, %317 : vector<1x8xf32>
    %319 = vector.extract_strided_slice %265 {offsets = [13, 0], sizes = [1, 8], strides = [1, 1]} : vector<32x8xf32> to vector<1x8xf32>
    %320 = vector.broadcast %29 : f32 to vector<1x8xf32>
    %321 = arith.mulf %320, %319 : vector<1x8xf32>
    %322 = arith.addf %318, %321 : vector<1x8xf32>
    %323 = vector.extract_strided_slice %265 {offsets = [14, 0], sizes = [1, 8], strides = [1, 1]} : vector<32x8xf32> to vector<1x8xf32>
    %324 = vector.broadcast %31 : f32 to vector<1x8xf32>
    %325 = arith.mulf %324, %323 : vector<1x8xf32>
    %326 = arith.addf %322, %325 : vector<1x8xf32>
    %327 = vector.extract_strided_slice %265 {offsets = [15, 0], sizes = [1, 8], strides = [1, 1]} : vector<32x8xf32> to vector<1x8xf32>
    %328 = vector.broadcast %33 : f32 to vector<1x8xf32>
    %329 = arith.mulf %328, %327 : vector<1x8xf32>
    %330 = arith.addf %326, %329 : vector<1x8xf32>
    %331 = vector.extract_strided_slice %265 {offsets = [16, 0], sizes = [1, 8], strides = [1, 1]} : vector<32x8xf32> to vector<1x8xf32>
    %332 = vector.broadcast %35 : f32 to vector<1x8xf32>
    %333 = arith.mulf %332, %331 : vector<1x8xf32>
    %334 = arith.addf %330, %333 : vector<1x8xf32>
    %335 = vector.extract_strided_slice %265 {offsets = [17, 0], sizes = [1, 8], strides = [1, 1]} : vector<32x8xf32> to vector<1x8xf32>
    %336 = vector.broadcast %37 : f32 to vector<1x8xf32>
    %337 = arith.mulf %336, %335 : vector<1x8xf32>
    %338 = arith.addf %334, %337 : vector<1x8xf32>
    %339 = vector.extract_strided_slice %265 {offsets = [18, 0], sizes = [1, 8], strides = [1, 1]} : vector<32x8xf32> to vector<1x8xf32>
    %340 = vector.broadcast %39 : f32 to vector<1x8xf32>
    %341 = arith.mulf %340, %339 : vector<1x8xf32>
    %342 = arith.addf %338, %341 : vector<1x8xf32>
    %343 = vector.extract_strided_slice %265 {offsets = [19, 0], sizes = [1, 8], strides = [1, 1]} : vector<32x8xf32> to vector<1x8xf32>
    %344 = vector.broadcast %41 : f32 to vector<1x8xf32>
    %345 = arith.mulf %344, %343 : vector<1x8xf32>
    %346 = arith.addf %342, %345 : vector<1x8xf32>
    %347 = vector.extract_strided_slice %265 {offsets = [20, 0], sizes = [1, 8], strides = [1, 1]} : vector<32x8xf32> to vector<1x8xf32>
    %348 = vector.broadcast %43 : f32 to vector<1x8xf32>
    %349 = arith.mulf %348, %347 : vector<1x8xf32>
    %350 = arith.addf %346, %349 : vector<1x8xf32>
    %351 = vector.extract_strided_slice %265 {offsets = [21, 0], sizes = [1, 8], strides = [1, 1]} : vector<32x8xf32> to vector<1x8xf32>
    %352 = vector.broadcast %45 : f32 to vector<1x8xf32>
    %353 = arith.mulf %352, %351 : vector<1x8xf32>
    %354 = arith.addf %350, %353 : vector<1x8xf32>
    %355 = vector.extract_strided_slice %265 {offsets = [22, 0], sizes = [1, 8], strides = [1, 1]} : vector<32x8xf32> to vector<1x8xf32>
    %356 = vector.broadcast %47 : f32 to vector<1x8xf32>
    %357 = arith.mulf %356, %355 : vector<1x8xf32>
    %358 = arith.addf %354, %357 : vector<1x8xf32>
    %359 = vector.extract_strided_slice %265 {offsets = [23, 0], sizes = [1, 8], strides = [1, 1]} : vector<32x8xf32> to vector<1x8xf32>
    %360 = vector.broadcast %49 : f32 to vector<1x8xf32>
    %361 = arith.mulf %360, %359 : vector<1x8xf32>
    %362 = arith.addf %358, %361 : vector<1x8xf32>
    %363 = vector.extract_strided_slice %265 {offsets = [24, 0], sizes = [1, 8], strides = [1, 1]} : vector<32x8xf32> to vector<1x8xf32>
    %364 = vector.broadcast %51 : f32 to vector<1x8xf32>
    %365 = arith.mulf %364, %363 : vector<1x8xf32>
    %366 = arith.addf %362, %365 : vector<1x8xf32>
    %367 = vector.extract_strided_slice %265 {offsets = [25, 0], sizes = [1, 8], strides = [1, 1]} : vector<32x8xf32> to vector<1x8xf32>
    %368 = vector.broadcast %53 : f32 to vector<1x8xf32>
    %369 = arith.mulf %368, %367 : vector<1x8xf32>
    %370 = arith.addf %366, %369 : vector<1x8xf32>
    %371 = vector.extract_strided_slice %265 {offsets = [26, 0], sizes = [1, 8], strides = [1, 1]} : vector<32x8xf32> to vector<1x8xf32>
    %372 = vector.broadcast %55 : f32 to vector<1x8xf32>
    %373 = arith.mulf %372, %371 : vector<1x8xf32>
    %374 = arith.addf %370, %373 : vector<1x8xf32>
    %375 = vector.extract_strided_slice %265 {offsets = [27, 0], sizes = [1, 8], strides = [1, 1]} : vector<32x8xf32> to vector<1x8xf32>
    %376 = vector.broadcast %57 : f32 to vector<1x8xf32>
    %377 = arith.mulf %376, %375 : vector<1x8xf32>
    %378 = arith.addf %374, %377 : vector<1x8xf32>
    %379 = vector.extract_strided_slice %265 {offsets = [28, 0], sizes = [1, 8], strides = [1, 1]} : vector<32x8xf32> to vector<1x8xf32>
    %380 = vector.broadcast %59 : f32 to vector<1x8xf32>
    %381 = arith.mulf %380, %379 : vector<1x8xf32>
    %382 = arith.addf %378, %381 : vector<1x8xf32>
    %383 = vector.extract_strided_slice %265 {offsets = [29, 0], sizes = [1, 8], strides = [1, 1]} : vector<32x8xf32> to vector<1x8xf32>
    %384 = vector.broadcast %61 : f32 to vector<1x8xf32>
    %385 = arith.mulf %384, %383 : vector<1x8xf32>
    %386 = arith.addf %382, %385 : vector<1x8xf32>
    %387 = vector.extract_strided_slice %265 {offsets = [30, 0], sizes = [1, 8], strides = [1, 1]} : vector<32x8xf32> to vector<1x8xf32>
    %388 = vector.broadcast %63 : f32 to vector<1x8xf32>
    %389 = arith.mulf %388, %387 : vector<1x8xf32>
    %390 = arith.addf %386, %389 : vector<1x8xf32>
    %391 = vector.extract_strided_slice %265 {offsets = [31, 0], sizes = [1, 8], strides = [1, 1]} : vector<32x8xf32> to vector<1x8xf32>
    %392 = vector.broadcast %65 : f32 to vector<1x8xf32>
    %393 = arith.mulf %392, %391 : vector<1x8xf32>
    %394 = arith.addf %390, %393 : vector<1x8xf32>
    %395 = vector.broadcast %261 : vector<8x1xf32> to vector<8x8xf32>
    %396 = vector.broadcast %394 : vector<1x8xf32> to vector<8x8xf32>
    %397 = arith.addf %395, %396 : vector<8x8xf32>
    %398 = vector.extract_strided_slice %265 {offsets = [0, 0], sizes = [1, 8], strides = [1, 1]} : vector<32x8xf32> to vector<1x8xf32>
    %399 = vector.broadcast %133 : vector<8x1xf32> to vector<8x8xf32>
    %400 = vector.broadcast %398 : vector<1x8xf32> to vector<8x8xf32>
    %401 = arith.addf %399, %400 : vector<8x8xf32>
    %402 = math.absf %401 : vector<8x8xf32>
    %403 = vector.broadcast %67 : f32 to vector<8x8xf32>
    %404 = arith.mulf %403, %402 : vector<8x8xf32>
    %405 = arith.addf %397, %404 : vector<8x8xf32>
    %406 = vector.extract_strided_slice %265 {offsets = [1, 0], sizes = [1, 8], strides = [1, 1]} : vector<32x8xf32> to vector<1x8xf32>
    %407 = vector.broadcast %134 : vector<8x1xf32> to vector<8x8xf32>
    %408 = vector.broadcast %406 : vector<1x8xf32> to vector<8x8xf32>
    %409 = arith.addf %407, %408 : vector<8x8xf32>
    %410 = math.absf %409 : vector<8x8xf32>
    %411 = vector.broadcast %69 : f32 to vector<8x8xf32>
    %412 = arith.mulf %411, %410 : vector<8x8xf32>
    %413 = arith.addf %405, %412 : vector<8x8xf32>
    %414 = vector.extract_strided_slice %265 {offsets = [2, 0], sizes = [1, 8], strides = [1, 1]} : vector<32x8xf32> to vector<1x8xf32>
    %415 = vector.broadcast %135 : vector<8x1xf32> to vector<8x8xf32>
    %416 = vector.broadcast %414 : vector<1x8xf32> to vector<8x8xf32>
    %417 = arith.addf %415, %416 : vector<8x8xf32>
    %418 = math.absf %417 : vector<8x8xf32>
    %419 = vector.broadcast %71 : f32 to vector<8x8xf32>
    %420 = arith.mulf %419, %418 : vector<8x8xf32>
    %421 = arith.addf %413, %420 : vector<8x8xf32>
    %422 = vector.extract_strided_slice %265 {offsets = [3, 0], sizes = [1, 8], strides = [1, 1]} : vector<32x8xf32> to vector<1x8xf32>
    %423 = vector.broadcast %136 : vector<8x1xf32> to vector<8x8xf32>
    %424 = vector.broadcast %422 : vector<1x8xf32> to vector<8x8xf32>
    %425 = arith.addf %423, %424 : vector<8x8xf32>
    %426 = math.absf %425 : vector<8x8xf32>
    %427 = vector.broadcast %73 : f32 to vector<8x8xf32>
    %428 = arith.mulf %427, %426 : vector<8x8xf32>
    %429 = arith.addf %421, %428 : vector<8x8xf32>
    %430 = vector.extract_strided_slice %265 {offsets = [4, 0], sizes = [1, 8], strides = [1, 1]} : vector<32x8xf32> to vector<1x8xf32>
    %431 = vector.broadcast %137 : vector<8x1xf32> to vector<8x8xf32>
    %432 = vector.broadcast %430 : vector<1x8xf32> to vector<8x8xf32>
    %433 = arith.addf %431, %432 : vector<8x8xf32>
    %434 = math.absf %433 : vector<8x8xf32>
    %435 = vector.broadcast %75 : f32 to vector<8x8xf32>
    %436 = arith.mulf %435, %434 : vector<8x8xf32>
    %437 = arith.addf %429, %436 : vector<8x8xf32>
    %438 = vector.extract_strided_slice %265 {offsets = [5, 0], sizes = [1, 8], strides = [1, 1]} : vector<32x8xf32> to vector<1x8xf32>
    %439 = vector.broadcast %138 : vector<8x1xf32> to vector<8x8xf32>
    %440 = vector.broadcast %438 : vector<1x8xf32> to vector<8x8xf32>
    %441 = arith.addf %439, %440 : vector<8x8xf32>
    %442 = math.absf %441 : vector<8x8xf32>
    %443 = vector.broadcast %77 : f32 to vector<8x8xf32>
    %444 = arith.mulf %443, %442 : vector<8x8xf32>
    %445 = arith.addf %437, %444 : vector<8x8xf32>
    %446 = vector.extract_strided_slice %265 {offsets = [6, 0], sizes = [1, 8], strides = [1, 1]} : vector<32x8xf32> to vector<1x8xf32>
    %447 = vector.broadcast %139 : vector<8x1xf32> to vector<8x8xf32>
    %448 = vector.broadcast %446 : vector<1x8xf32> to vector<8x8xf32>
    %449 = arith.addf %447, %448 : vector<8x8xf32>
    %450 = math.absf %449 : vector<8x8xf32>
    %451 = vector.broadcast %79 : f32 to vector<8x8xf32>
    %452 = arith.mulf %451, %450 : vector<8x8xf32>
    %453 = arith.addf %445, %452 : vector<8x8xf32>
    %454 = vector.extract_strided_slice %265 {offsets = [7, 0], sizes = [1, 8], strides = [1, 1]} : vector<32x8xf32> to vector<1x8xf32>
    %455 = vector.broadcast %140 : vector<8x1xf32> to vector<8x8xf32>
    %456 = vector.broadcast %454 : vector<1x8xf32> to vector<8x8xf32>
    %457 = arith.addf %455, %456 : vector<8x8xf32>
    %458 = math.absf %457 : vector<8x8xf32>
    %459 = vector.broadcast %81 : f32 to vector<8x8xf32>
    %460 = arith.mulf %459, %458 : vector<8x8xf32>
    %461 = arith.addf %453, %460 : vector<8x8xf32>
    %462 = vector.extract_strided_slice %265 {offsets = [8, 0], sizes = [1, 8], strides = [1, 1]} : vector<32x8xf32> to vector<1x8xf32>
    %463 = vector.broadcast %141 : vector<8x1xf32> to vector<8x8xf32>
    %464 = vector.broadcast %462 : vector<1x8xf32> to vector<8x8xf32>
    %465 = arith.addf %463, %464 : vector<8x8xf32>
    %466 = math.absf %465 : vector<8x8xf32>
    %467 = vector.broadcast %83 : f32 to vector<8x8xf32>
    %468 = arith.mulf %467, %466 : vector<8x8xf32>
    %469 = arith.addf %461, %468 : vector<8x8xf32>
    %470 = vector.extract_strided_slice %265 {offsets = [9, 0], sizes = [1, 8], strides = [1, 1]} : vector<32x8xf32> to vector<1x8xf32>
    %471 = vector.broadcast %142 : vector<8x1xf32> to vector<8x8xf32>
    %472 = vector.broadcast %470 : vector<1x8xf32> to vector<8x8xf32>
    %473 = arith.addf %471, %472 : vector<8x8xf32>
    %474 = math.absf %473 : vector<8x8xf32>
    %475 = vector.broadcast %85 : f32 to vector<8x8xf32>
    %476 = arith.mulf %475, %474 : vector<8x8xf32>
    %477 = arith.addf %469, %476 : vector<8x8xf32>
    %478 = vector.extract_strided_slice %265 {offsets = [10, 0], sizes = [1, 8], strides = [1, 1]} : vector<32x8xf32> to vector<1x8xf32>
    %479 = vector.broadcast %143 : vector<8x1xf32> to vector<8x8xf32>
    %480 = vector.broadcast %478 : vector<1x8xf32> to vector<8x8xf32>
    %481 = arith.addf %479, %480 : vector<8x8xf32>
    %482 = math.absf %481 : vector<8x8xf32>
    %483 = vector.broadcast %87 : f32 to vector<8x8xf32>
    %484 = arith.mulf %483, %482 : vector<8x8xf32>
    %485 = arith.addf %477, %484 : vector<8x8xf32>
    %486 = vector.extract_strided_slice %265 {offsets = [11, 0], sizes = [1, 8], strides = [1, 1]} : vector<32x8xf32> to vector<1x8xf32>
    %487 = vector.broadcast %144 : vector<8x1xf32> to vector<8x8xf32>
    %488 = vector.broadcast %486 : vector<1x8xf32> to vector<8x8xf32>
    %489 = arith.addf %487, %488 : vector<8x8xf32>
    %490 = math.absf %489 : vector<8x8xf32>
    %491 = vector.broadcast %89 : f32 to vector<8x8xf32>
    %492 = arith.mulf %491, %490 : vector<8x8xf32>
    %493 = arith.addf %485, %492 : vector<8x8xf32>
    %494 = vector.extract_strided_slice %265 {offsets = [12, 0], sizes = [1, 8], strides = [1, 1]} : vector<32x8xf32> to vector<1x8xf32>
    %495 = vector.broadcast %145 : vector<8x1xf32> to vector<8x8xf32>
    %496 = vector.broadcast %494 : vector<1x8xf32> to vector<8x8xf32>
    %497 = arith.addf %495, %496 : vector<8x8xf32>
    %498 = math.absf %497 : vector<8x8xf32>
    %499 = vector.broadcast %91 : f32 to vector<8x8xf32>
    %500 = arith.mulf %499, %498 : vector<8x8xf32>
    %501 = arith.addf %493, %500 : vector<8x8xf32>
    %502 = vector.extract_strided_slice %265 {offsets = [13, 0], sizes = [1, 8], strides = [1, 1]} : vector<32x8xf32> to vector<1x8xf32>
    %503 = vector.broadcast %146 : vector<8x1xf32> to vector<8x8xf32>
    %504 = vector.broadcast %502 : vector<1x8xf32> to vector<8x8xf32>
    %505 = arith.addf %503, %504 : vector<8x8xf32>
    %506 = math.absf %505 : vector<8x8xf32>
    %507 = vector.broadcast %93 : f32 to vector<8x8xf32>
    %508 = arith.mulf %507, %506 : vector<8x8xf32>
    %509 = arith.addf %501, %508 : vector<8x8xf32>
    %510 = vector.extract_strided_slice %265 {offsets = [14, 0], sizes = [1, 8], strides = [1, 1]} : vector<32x8xf32> to vector<1x8xf32>
    %511 = vector.broadcast %147 : vector<8x1xf32> to vector<8x8xf32>
    %512 = vector.broadcast %510 : vector<1x8xf32> to vector<8x8xf32>
    %513 = arith.addf %511, %512 : vector<8x8xf32>
    %514 = math.absf %513 : vector<8x8xf32>
    %515 = vector.broadcast %95 : f32 to vector<8x8xf32>
    %516 = arith.mulf %515, %514 : vector<8x8xf32>
    %517 = arith.addf %509, %516 : vector<8x8xf32>
    %518 = vector.extract_strided_slice %265 {offsets = [15, 0], sizes = [1, 8], strides = [1, 1]} : vector<32x8xf32> to vector<1x8xf32>
    %519 = vector.broadcast %148 : vector<8x1xf32> to vector<8x8xf32>
    %520 = vector.broadcast %518 : vector<1x8xf32> to vector<8x8xf32>
    %521 = arith.addf %519, %520 : vector<8x8xf32>
    %522 = math.absf %521 : vector<8x8xf32>
    %523 = vector.broadcast %97 : f32 to vector<8x8xf32>
    %524 = arith.mulf %523, %522 : vector<8x8xf32>
    %525 = arith.addf %517, %524 : vector<8x8xf32>
    %526 = vector.extract_strided_slice %265 {offsets = [16, 0], sizes = [1, 8], strides = [1, 1]} : vector<32x8xf32> to vector<1x8xf32>
    %527 = vector.broadcast %149 : vector<8x1xf32> to vector<8x8xf32>
    %528 = vector.broadcast %526 : vector<1x8xf32> to vector<8x8xf32>
    %529 = arith.addf %527, %528 : vector<8x8xf32>
    %530 = math.absf %529 : vector<8x8xf32>
    %531 = vector.broadcast %99 : f32 to vector<8x8xf32>
    %532 = arith.mulf %531, %530 : vector<8x8xf32>
    %533 = arith.addf %525, %532 : vector<8x8xf32>
    %534 = vector.extract_strided_slice %265 {offsets = [17, 0], sizes = [1, 8], strides = [1, 1]} : vector<32x8xf32> to vector<1x8xf32>
    %535 = vector.broadcast %150 : vector<8x1xf32> to vector<8x8xf32>
    %536 = vector.broadcast %534 : vector<1x8xf32> to vector<8x8xf32>
    %537 = arith.addf %535, %536 : vector<8x8xf32>
    %538 = math.absf %537 : vector<8x8xf32>
    %539 = vector.broadcast %101 : f32 to vector<8x8xf32>
    %540 = arith.mulf %539, %538 : vector<8x8xf32>
    %541 = arith.addf %533, %540 : vector<8x8xf32>
    %542 = vector.extract_strided_slice %265 {offsets = [18, 0], sizes = [1, 8], strides = [1, 1]} : vector<32x8xf32> to vector<1x8xf32>
    %543 = vector.broadcast %151 : vector<8x1xf32> to vector<8x8xf32>
    %544 = vector.broadcast %542 : vector<1x8xf32> to vector<8x8xf32>
    %545 = arith.addf %543, %544 : vector<8x8xf32>
    %546 = math.absf %545 : vector<8x8xf32>
    %547 = vector.broadcast %103 : f32 to vector<8x8xf32>
    %548 = arith.mulf %547, %546 : vector<8x8xf32>
    %549 = arith.addf %541, %548 : vector<8x8xf32>
    %550 = vector.extract_strided_slice %265 {offsets = [19, 0], sizes = [1, 8], strides = [1, 1]} : vector<32x8xf32> to vector<1x8xf32>
    %551 = vector.broadcast %152 : vector<8x1xf32> to vector<8x8xf32>
    %552 = vector.broadcast %550 : vector<1x8xf32> to vector<8x8xf32>
    %553 = arith.addf %551, %552 : vector<8x8xf32>
    %554 = math.absf %553 : vector<8x8xf32>
    %555 = vector.broadcast %105 : f32 to vector<8x8xf32>
    %556 = arith.mulf %555, %554 : vector<8x8xf32>
    %557 = arith.addf %549, %556 : vector<8x8xf32>
    %558 = vector.extract_strided_slice %265 {offsets = [20, 0], sizes = [1, 8], strides = [1, 1]} : vector<32x8xf32> to vector<1x8xf32>
    %559 = vector.broadcast %153 : vector<8x1xf32> to vector<8x8xf32>
    %560 = vector.broadcast %558 : vector<1x8xf32> to vector<8x8xf32>
    %561 = arith.addf %559, %560 : vector<8x8xf32>
    %562 = math.absf %561 : vector<8x8xf32>
    %563 = vector.broadcast %107 : f32 to vector<8x8xf32>
    %564 = arith.mulf %563, %562 : vector<8x8xf32>
    %565 = arith.addf %557, %564 : vector<8x8xf32>
    %566 = vector.extract_strided_slice %265 {offsets = [21, 0], sizes = [1, 8], strides = [1, 1]} : vector<32x8xf32> to vector<1x8xf32>
    %567 = vector.broadcast %154 : vector<8x1xf32> to vector<8x8xf32>
    %568 = vector.broadcast %566 : vector<1x8xf32> to vector<8x8xf32>
    %569 = arith.addf %567, %568 : vector<8x8xf32>
    %570 = math.absf %569 : vector<8x8xf32>
    %571 = vector.broadcast %109 : f32 to vector<8x8xf32>
    %572 = arith.mulf %571, %570 : vector<8x8xf32>
    %573 = arith.addf %565, %572 : vector<8x8xf32>
    %574 = vector.extract_strided_slice %265 {offsets = [22, 0], sizes = [1, 8], strides = [1, 1]} : vector<32x8xf32> to vector<1x8xf32>
    %575 = vector.broadcast %155 : vector<8x1xf32> to vector<8x8xf32>
    %576 = vector.broadcast %574 : vector<1x8xf32> to vector<8x8xf32>
    %577 = arith.addf %575, %576 : vector<8x8xf32>
    %578 = math.absf %577 : vector<8x8xf32>
    %579 = vector.broadcast %111 : f32 to vector<8x8xf32>
    %580 = arith.mulf %579, %578 : vector<8x8xf32>
    %581 = arith.addf %573, %580 : vector<8x8xf32>
    %582 = vector.extract_strided_slice %265 {offsets = [23, 0], sizes = [1, 8], strides = [1, 1]} : vector<32x8xf32> to vector<1x8xf32>
    %583 = vector.broadcast %156 : vector<8x1xf32> to vector<8x8xf32>
    %584 = vector.broadcast %582 : vector<1x8xf32> to vector<8x8xf32>
    %585 = arith.addf %583, %584 : vector<8x8xf32>
    %586 = math.absf %585 : vector<8x8xf32>
    %587 = vector.broadcast %113 : f32 to vector<8x8xf32>
    %588 = arith.mulf %587, %586 : vector<8x8xf32>
    %589 = arith.addf %581, %588 : vector<8x8xf32>
    %590 = vector.extract_strided_slice %265 {offsets = [24, 0], sizes = [1, 8], strides = [1, 1]} : vector<32x8xf32> to vector<1x8xf32>
    %591 = vector.broadcast %157 : vector<8x1xf32> to vector<8x8xf32>
    %592 = vector.broadcast %590 : vector<1x8xf32> to vector<8x8xf32>
    %593 = arith.addf %591, %592 : vector<8x8xf32>
    %594 = math.absf %593 : vector<8x8xf32>
    %595 = vector.broadcast %115 : f32 to vector<8x8xf32>
    %596 = arith.mulf %595, %594 : vector<8x8xf32>
    %597 = arith.addf %589, %596 : vector<8x8xf32>
    %598 = vector.extract_strided_slice %265 {offsets = [25, 0], sizes = [1, 8], strides = [1, 1]} : vector<32x8xf32> to vector<1x8xf32>
    %599 = vector.broadcast %158 : vector<8x1xf32> to vector<8x8xf32>
    %600 = vector.broadcast %598 : vector<1x8xf32> to vector<8x8xf32>
    %601 = arith.addf %599, %600 : vector<8x8xf32>
    %602 = math.absf %601 : vector<8x8xf32>
    %603 = vector.broadcast %117 : f32 to vector<8x8xf32>
    %604 = arith.mulf %603, %602 : vector<8x8xf32>
    %605 = arith.addf %597, %604 : vector<8x8xf32>
    %606 = vector.extract_strided_slice %265 {offsets = [26, 0], sizes = [1, 8], strides = [1, 1]} : vector<32x8xf32> to vector<1x8xf32>
    %607 = vector.broadcast %159 : vector<8x1xf32> to vector<8x8xf32>
    %608 = vector.broadcast %606 : vector<1x8xf32> to vector<8x8xf32>
    %609 = arith.addf %607, %608 : vector<8x8xf32>
    %610 = math.absf %609 : vector<8x8xf32>
    %611 = vector.broadcast %119 : f32 to vector<8x8xf32>
    %612 = arith.mulf %611, %610 : vector<8x8xf32>
    %613 = arith.addf %605, %612 : vector<8x8xf32>
    %614 = vector.extract_strided_slice %265 {offsets = [27, 0], sizes = [1, 8], strides = [1, 1]} : vector<32x8xf32> to vector<1x8xf32>
    %615 = vector.broadcast %160 : vector<8x1xf32> to vector<8x8xf32>
    %616 = vector.broadcast %614 : vector<1x8xf32> to vector<8x8xf32>
    %617 = arith.addf %615, %616 : vector<8x8xf32>
    %618 = math.absf %617 : vector<8x8xf32>
    %619 = vector.broadcast %121 : f32 to vector<8x8xf32>
    %620 = arith.mulf %619, %618 : vector<8x8xf32>
    %621 = arith.addf %613, %620 : vector<8x8xf32>
    %622 = vector.extract_strided_slice %265 {offsets = [28, 0], sizes = [1, 8], strides = [1, 1]} : vector<32x8xf32> to vector<1x8xf32>
    %623 = vector.broadcast %161 : vector<8x1xf32> to vector<8x8xf32>
    %624 = vector.broadcast %622 : vector<1x8xf32> to vector<8x8xf32>
    %625 = arith.addf %623, %624 : vector<8x8xf32>
    %626 = math.absf %625 : vector<8x8xf32>
    %627 = vector.broadcast %123 : f32 to vector<8x8xf32>
    %628 = arith.mulf %627, %626 : vector<8x8xf32>
    %629 = arith.addf %621, %628 : vector<8x8xf32>
    %630 = vector.extract_strided_slice %265 {offsets = [29, 0], sizes = [1, 8], strides = [1, 1]} : vector<32x8xf32> to vector<1x8xf32>
    %631 = vector.broadcast %162 : vector<8x1xf32> to vector<8x8xf32>
    %632 = vector.broadcast %630 : vector<1x8xf32> to vector<8x8xf32>
    %633 = arith.addf %631, %632 : vector<8x8xf32>
    %634 = math.absf %633 : vector<8x8xf32>
    %635 = vector.broadcast %125 : f32 to vector<8x8xf32>
    %636 = arith.mulf %635, %634 : vector<8x8xf32>
    %637 = arith.addf %629, %636 : vector<8x8xf32>
    %638 = vector.extract_strided_slice %265 {offsets = [30, 0], sizes = [1, 8], strides = [1, 1]} : vector<32x8xf32> to vector<1x8xf32>
    %639 = vector.broadcast %163 : vector<8x1xf32> to vector<8x8xf32>
    %640 = vector.broadcast %638 : vector<1x8xf32> to vector<8x8xf32>
    %641 = arith.addf %639, %640 : vector<8x8xf32>
    %642 = math.absf %641 : vector<8x8xf32>
    %643 = vector.broadcast %127 : f32 to vector<8x8xf32>
    %644 = arith.mulf %643, %642 : vector<8x8xf32>
    %645 = arith.addf %637, %644 : vector<8x8xf32>
    %646 = vector.extract_strided_slice %265 {offsets = [31, 0], sizes = [1, 8], strides = [1, 1]} : vector<32x8xf32> to vector<1x8xf32>
    %647 = vector.broadcast %164 : vector<8x1xf32> to vector<8x8xf32>
    %648 = vector.broadcast %646 : vector<1x8xf32> to vector<8x8xf32>
    %649 = arith.addf %647, %648 : vector<8x8xf32>
    %650 = math.absf %649 : vector<8x8xf32>
    %651 = vector.broadcast %129 : f32 to vector<8x8xf32>
    %652 = arith.mulf %651, %650 : vector<8x8xf32>
    %653 = arith.addf %645, %652 : vector<8x8xf32>
    %cst_108 = arith.constant 1.250000e-01 : f32
    %654 = vector.broadcast %cst_108 : f32 to vector<8x8xf32>
    %655 = arith.mulf %653, %654 : vector<8x8xf32>
    %656 = math.tanh %655 : vector<8x8xf32>
    %cst_109 = arith.constant 8.000000e+00 : f32
    %657 = vector.broadcast %cst_109 : f32 to vector<8x8xf32>
    %658 = arith.mulf %656, %657 : vector<8x8xf32>
    %c0_110 = arith.constant 0 : index
    %c0_111 = arith.constant 0 : index
    %c0_112 = arith.constant 0 : index
    %659 = vector.load %arg7[%c0_110, %c0_111, %c0_112] : memref<2x8x8xf32, #tpu.memory_space<vmem>>, vector<1x8x8xf32>
    %660 = vector.shape_cast %659 : vector<1x8x8xf32> to vector<8x8xf32>
    %661 = math.exp %658 : vector<8x8xf32>
    %cst_113 = arith.constant 1.000000e-32 : f32
    %662 = vector.broadcast %cst_113 : f32 to vector<8x8xf32>
    %663 = arith.addf %660, %662 : vector<8x8xf32>
    %664 = arith.mulf %661, %663 : vector<8x8xf32>
    %c0_114 = arith.constant 0 : index
    %c0_115 = arith.constant 0 : index
    %c0_116 = arith.constant 0 : index
    %665 = vector.load %arg8[%c0_114, %c0_115, %c0_116] : memref<2x8x8xf32, #tpu.memory_space<vmem>>, vector<1x8x8xf32>
    %666 = vector.shape_cast %665 : vector<1x8x8xf32> to vector<8x8xf32>
    %667 = vector.shape_cast %664 : vector<8x8xf32> to vector<1x8x8xf32>
    tpu.vector_store %arg8[%c0_114, %c0_115, %c0_116], %667 {strides = array<i32>} : memref<2x8x8xf32, #tpu.memory_space<vmem>>, vector<1x8x8xf32>,
    %cst_117 = arith.constant dense<0.000000e+00> : vector<8xf32>
    %668 = vector.multi_reduction <add>, %664, %cst_117 [1] : vector<8x8xf32> to vector<8xf32>
    %669 = vector.shape_cast %668 : vector<8xf32> to vector<8x1xf32>
    %670 = arith.addf %262, %669 : vector<8x1xf32>
    %c0_118 = arith.constant 0 : index
    %c0_119 = arith.constant 0 : index
    %c0_120 = arith.constant 0 : index
    %671 = vector.load %arg6[%c0_118, %c0_119, %c0_120] : memref<2x8x8xf32, #tpu.memory_space<vmem>>, vector<1x8x8xf32>
    %672 = vector.shape_cast %671 : vector<1x8x8xf32> to vector<8x8xf32>
    %cst_121 = arith.constant dense<0.000000e+00> : vector<8xf32>
    %673 = vector.multi_reduction <add>, %672, %cst_121 [1] : vector<8x8xf32> to vector<8xf32>
    %674 = vector.shape_cast %673 : vector<8xf32> to vector<8x1xf32>
    %675 = arith.addf %263, %674 : vector<8x1xf32>
    %cst_122 = arith.constant 1.000000e+00 : f32
    %676 = vector.broadcast %cst_122 : f32 to vector<8x1xf32>
    %677 = arith.divf %676, %670 : vector<8x1xf32>
    %cst_123 = arith.constant 1.000000e+00 : f32
    %678 = vector.broadcast %cst_123 : f32 to vector<8x1xf32>
    %679 = arith.divf %678, %675 : vector<8x1xf32>
    %c0_124 = arith.constant 0 : index
    %c0_125 = arith.constant 0 : index
    %c0_126 = arith.constant 0 : index
    %680 = vector.load %arg8[%c0_124, %c0_125, %c0_126] : memref<2x8x8xf32, #tpu.memory_space<vmem>>, vector<1x8x8xf32>
    %681 = vector.shape_cast %680 : vector<1x8x8xf32> to vector<8x8xf32>
    %682 = vector.broadcast %677 : vector<8x1xf32> to vector<8x8xf32>
    %683 = arith.mulf %681, %682 : vector<8x8xf32>
    %cst_127 = arith.constant 0.0183156393 : f32
    %684 = vector.broadcast %cst_127 : f32 to vector<8x8xf32>
    %685 = arith.cmpf ogt, %683, %684 : vector<8x8xf32>
    %686 = math.log %683 : vector<8x8xf32>
    %cst_128 = arith.constant 5.000000e+00 : f32
    %687 = vector.broadcast %cst_128 : f32 to vector<8x8xf32>
    %688 = arith.addf %686, %687 : vector<8x8xf32>
    %cst_129 = arith.constant 54.5981483 : f32
    %689 = vector.broadcast %cst_129 : f32 to vector<8x8xf32>
    %690 = arith.mulf %689, %683 : vector<8x8xf32>
    %691 = arith.select %685, %688, %690 : vector<8x8xi1>, vector<8x8xf32>
    %cst_130 = arith.constant dense<0.000000e+00> : vector<8xf32>
    %692 = vector.multi_reduction <add>, %691, %cst_130 [1] : vector<8x8xf32> to vector<8xf32>
    %693 = vector.shape_cast %692 : vector<8xf32> to vector<8x1xf32>
    %694 = arith.addf %130, %693 : vector<8x1xf32>
    %c0_131 = arith.constant 0 : index
    %c0_132 = arith.constant 0 : index
    %c0_133 = arith.constant 0 : index
    %695 = vector.load %arg6[%c0_131, %c0_132, %c0_133] : memref<2x8x8xf32, #tpu.memory_space<vmem>>, vector<1x8x8xf32>
    %696 = vector.shape_cast %695 : vector<1x8x8xf32> to vector<8x8xf32>
    %697 = vector.broadcast %679 : vector<8x1xf32> to vector<8x8xf32>
    %698 = arith.mulf %696, %697 : vector<8x8xf32>
    %699 = vector.broadcast %1 : f32 to vector<8x8xf32>
    %700 = arith.mulf %699, %698 : vector<8x8xf32>
    %701 = vector.broadcast %0 : f32 to vector<8x8xf32>
    %702 = arith.mulf %701, %683 : vector<8x8xf32>
    %703 = arith.addf %700, %702 : vector<8x8xf32>
    %c0_134 = arith.constant 0 : index
    %c0_135 = arith.constant 0 : index
    %c0_136 = arith.constant 0 : index
    %704 = vector.load %arg8[%c0_134, %c0_135, %c0_136] : memref<2x8x8xf32, #tpu.memory_space<vmem>>, vector<1x8x8xf32>
    %705 = vector.shape_cast %704 : vector<1x8x8xf32> to vector<8x8xf32>
    %706 = vector.shape_cast %703 : vector<8x8xf32> to vector<1x8x8xf32>
    tpu.vector_store %arg8[%c0_134, %c0_135, %c0_136], %706 {strides = array<i32>} : memref<2x8x8xf32, #tpu.memory_space<vmem>>, vector<1x8x8xf32>,
    %c1_137 = arith.constant 1 : index
    %c0_138 = arith.constant 0 : index
    %c0_139 = arith.constant 0 : index
    %707 = vector.load %arg4[%c1_137, %c0_138, %c0_139] : memref<2x8x32xf32, #tpu.memory_space<vmem>>, vector<1x8x32xf32>
    %708 = vector.shape_cast %707 : vector<1x8x32xf32> to vector<8x32xf32>
    %709 = vector.extract_strided_slice %708 {offsets = [0, 0], sizes = [8, 1], strides = [1, 1]} : vector<8x32xf32> to vector<8x1xf32>
    %710 = vector.extract_strided_slice %708 {offsets = [0, 1], sizes = [8, 1], strides = [1, 1]} : vector<8x32xf32> to vector<8x1xf32>
    %711 = vector.extract_strided_slice %708 {offsets = [0, 2], sizes = [8, 1], strides = [1, 1]} : vector<8x32xf32> to vector<8x1xf32>
    %712 = vector.extract_strided_slice %708 {offsets = [0, 3], sizes = [8, 1], strides = [1, 1]} : vector<8x32xf32> to vector<8x1xf32>
    %713 = vector.extract_strided_slice %708 {offsets = [0, 4], sizes = [8, 1], strides = [1, 1]} : vector<8x32xf32> to vector<8x1xf32>
    %714 = vector.extract_strided_slice %708 {offsets = [0, 5], sizes = [8, 1], strides = [1, 1]} : vector<8x32xf32> to vector<8x1xf32>
    %715 = vector.extract_strided_slice %708 {offsets = [0, 6], sizes = [8, 1], strides = [1, 1]} : vector<8x32xf32> to vector<8x1xf32>
    %716 = vector.extract_strided_slice %708 {offsets = [0, 7], sizes = [8, 1], strides = [1, 1]} : vector<8x32xf32> to vector<8x1xf32>
    %717 = vector.extract_strided_slice %708 {offsets = [0, 8], sizes = [8, 1], strides = [1, 1]} : vector<8x32xf32> to vector<8x1xf32>
    %718 = vector.extract_strided_slice %708 {offsets = [0, 9], sizes = [8, 1], strides = [1, 1]} : vector<8x32xf32> to vector<8x1xf32>
    %719 = vector.extract_strided_slice %708 {offsets = [0, 10], sizes = [8, 1], strides = [1, 1]} : vector<8x32xf32> to vector<8x1xf32>
    %720 = vector.extract_strided_slice %708 {offsets = [0, 11], sizes = [8, 1], strides = [1, 1]} : vector<8x32xf32> to vector<8x1xf32>
    %721 = vector.extract_strided_slice %708 {offsets = [0, 12], sizes = [8, 1], strides = [1, 1]} : vector<8x32xf32> to vector<8x1xf32>
    %722 = vector.extract_strided_slice %708 {offsets = [0, 13], sizes = [8, 1], strides = [1, 1]} : vector<8x32xf32> to vector<8x1xf32>
    %723 = vector.extract_strided_slice %708 {offsets = [0, 14], sizes = [8, 1], strides = [1, 1]} : vector<8x32xf32> to vector<8x1xf32>
    %724 = vector.extract_strided_slice %708 {offsets = [0, 15], sizes = [8, 1], strides = [1, 1]} : vector<8x32xf32> to vector<8x1xf32>
    %725 = vector.extract_strided_slice %708 {offsets = [0, 16], sizes = [8, 1], strides = [1, 1]} : vector<8x32xf32> to vector<8x1xf32>
    %726 = vector.extract_strided_slice %708 {offsets = [0, 17], sizes = [8, 1], strides = [1, 1]} : vector<8x32xf32> to vector<8x1xf32>
    %727 = vector.extract_strided_slice %708 {offsets = [0, 18], sizes = [8, 1], strides = [1, 1]} : vector<8x32xf32> to vector<8x1xf32>
    %728 = vector.extract_strided_slice %708 {offsets = [0, 19], sizes = [8, 1], strides = [1, 1]} : vector<8x32xf32> to vector<8x1xf32>
    %729 = vector.extract_strided_slice %708 {offsets = [0, 20], sizes = [8, 1], strides = [1, 1]} : vector<8x32xf32> to vector<8x1xf32>
    %730 = vector.extract_strided_slice %708 {offsets = [0, 21], sizes = [8, 1], strides = [1, 1]} : vector<8x32xf32> to vector<8x1xf32>
    %731 = vector.extract_strided_slice %708 {offsets = [0, 22], sizes = [8, 1], strides = [1, 1]} : vector<8x32xf32> to vector<8x1xf32>
    %732 = vector.extract_strided_slice %708 {offsets = [0, 23], sizes = [8, 1], strides = [1, 1]} : vector<8x32xf32> to vector<8x1xf32>
    %733 = vector.extract_strided_slice %708 {offsets = [0, 24], sizes = [8, 1], strides = [1, 1]} : vector<8x32xf32> to vector<8x1xf32>
    %734 = vector.extract_strided_slice %708 {offsets = [0, 25], sizes = [8, 1], strides = [1, 1]} : vector<8x32xf32> to vector<8x1xf32>
    %735 = vector.extract_strided_slice %708 {offsets = [0, 26], sizes = [8, 1], strides = [1, 1]} : vector<8x32xf32> to vector<8x1xf32>
    %736 = vector.extract_strided_slice %708 {offsets = [0, 27], sizes = [8, 1], strides = [1, 1]} : vector<8x32xf32> to vector<8x1xf32>
    %737 = vector.extract_strided_slice %708 {offsets = [0, 28], sizes = [8, 1], strides = [1, 1]} : vector<8x32xf32> to vector<8x1xf32>
    %738 = vector.extract_strided_slice %708 {offsets = [0, 29], sizes = [8, 1], strides = [1, 1]} : vector<8x32xf32> to vector<8x1xf32>
    %739 = vector.extract_strided_slice %708 {offsets = [0, 30], sizes = [8, 1], strides = [1, 1]} : vector<8x32xf32> to vector<8x1xf32>
    %740 = vector.extract_strided_slice %708 {offsets = [0, 31], sizes = [8, 1], strides = [1, 1]} : vector<8x32xf32> to vector<8x1xf32>
    %cst_140 = arith.constant 0.000000e+00 : f32
    %741 = vector.broadcast %cst_140 : f32 to vector<8x1xf32>
    %742 = vector.broadcast %3 : f32 to vector<8x1xf32>
    %743 = arith.mulf %742, %709 : vector<8x1xf32>
    %744 = arith.addf %741, %743 : vector<8x1xf32>
    %745 = vector.broadcast %5 : f32 to vector<8x1xf32>
    %746 = arith.mulf %745, %710 : vector<8x1xf32>
    %747 = arith.addf %744, %746 : vector<8x1xf32>
    %748 = vector.broadcast %7 : f32 to vector<8x1xf32>
    %749 = arith.mulf %748, %711 : vector<8x1xf32>
    %750 = arith.addf %747, %749 : vector<8x1xf32>
    %751 = vector.broadcast %9 : f32 to vector<8x1xf32>
    %752 = arith.mulf %751, %712 : vector<8x1xf32>
    %753 = arith.addf %750, %752 : vector<8x1xf32>
    %754 = vector.broadcast %11 : f32 to vector<8x1xf32>
    %755 = arith.mulf %754, %713 : vector<8x1xf32>
    %756 = arith.addf %753, %755 : vector<8x1xf32>
    %757 = vector.broadcast %13 : f32 to vector<8x1xf32>
    %758 = arith.mulf %757, %714 : vector<8x1xf32>
    %759 = arith.addf %756, %758 : vector<8x1xf32>
    %760 = vector.broadcast %15 : f32 to vector<8x1xf32>
    %761 = arith.mulf %760, %715 : vector<8x1xf32>
    %762 = arith.addf %759, %761 : vector<8x1xf32>
    %763 = vector.broadcast %17 : f32 to vector<8x1xf32>
    %764 = arith.mulf %763, %716 : vector<8x1xf32>
    %765 = arith.addf %762, %764 : vector<8x1xf32>
    %766 = vector.broadcast %19 : f32 to vector<8x1xf32>
    %767 = arith.mulf %766, %717 : vector<8x1xf32>
    %768 = arith.addf %765, %767 : vector<8x1xf32>
    %769 = vector.broadcast %21 : f32 to vector<8x1xf32>
    %770 = arith.mulf %769, %718 : vector<8x1xf32>
    %771 = arith.addf %768, %770 : vector<8x1xf32>
    %772 = vector.broadcast %23 : f32 to vector<8x1xf32>
    %773 = arith.mulf %772, %719 : vector<8x1xf32>
    %774 = arith.addf %771, %773 : vector<8x1xf32>
    %775 = vector.broadcast %25 : f32 to vector<8x1xf32>
    %776 = arith.mulf %775, %720 : vector<8x1xf32>
    %777 = arith.addf %774, %776 : vector<8x1xf32>
    %778 = vector.broadcast %27 : f32 to vector<8x1xf32>
    %779 = arith.mulf %778, %721 : vector<8x1xf32>
    %780 = arith.addf %777, %779 : vector<8x1xf32>
    %781 = vector.broadcast %29 : f32 to vector<8x1xf32>
    %782 = arith.mulf %781, %722 : vector<8x1xf32>
    %783 = arith.addf %780, %782 : vector<8x1xf32>
    %784 = vector.broadcast %31 : f32 to vector<8x1xf32>
    %785 = arith.mulf %784, %723 : vector<8x1xf32>
    %786 = arith.addf %783, %785 : vector<8x1xf32>
    %787 = vector.broadcast %33 : f32 to vector<8x1xf32>
    %788 = arith.mulf %787, %724 : vector<8x1xf32>
    %789 = arith.addf %786, %788 : vector<8x1xf32>
    %790 = vector.broadcast %35 : f32 to vector<8x1xf32>
    %791 = arith.mulf %790, %725 : vector<8x1xf32>
    %792 = arith.addf %789, %791 : vector<8x1xf32>
    %793 = vector.broadcast %37 : f32 to vector<8x1xf32>
    %794 = arith.mulf %793, %726 : vector<8x1xf32>
    %795 = arith.addf %792, %794 : vector<8x1xf32>
    %796 = vector.broadcast %39 : f32 to vector<8x1xf32>
    %797 = arith.mulf %796, %727 : vector<8x1xf32>
    %798 = arith.addf %795, %797 : vector<8x1xf32>
    %799 = vector.broadcast %41 : f32 to vector<8x1xf32>
    %800 = arith.mulf %799, %728 : vector<8x1xf32>
    %801 = arith.addf %798, %800 : vector<8x1xf32>
    %802 = vector.broadcast %43 : f32 to vector<8x1xf32>
    %803 = arith.mulf %802, %729 : vector<8x1xf32>
    %804 = arith.addf %801, %803 : vector<8x1xf32>
    %805 = vector.broadcast %45 : f32 to vector<8x1xf32>
    %806 = arith.mulf %805, %730 : vector<8x1xf32>
    %807 = arith.addf %804, %806 : vector<8x1xf32>
    %808 = vector.broadcast %47 : f32 to vector<8x1xf32>
    %809 = arith.mulf %808, %731 : vector<8x1xf32>
    %810 = arith.addf %807, %809 : vector<8x1xf32>
    %811 = vector.broadcast %49 : f32 to vector<8x1xf32>
    %812 = arith.mulf %811, %732 : vector<8x1xf32>
    %813 = arith.addf %810, %812 : vector<8x1xf32>
    %814 = vector.broadcast %51 : f32 to vector<8x1xf32>
    %815 = arith.mulf %814, %733 : vector<8x1xf32>
    %816 = arith.addf %813, %815 : vector<8x1xf32>
    %817 = vector.broadcast %53 : f32 to vector<8x1xf32>
    %818 = arith.mulf %817, %734 : vector<8x1xf32>
    %819 = arith.addf %816, %818 : vector<8x1xf32>
    %820 = vector.broadcast %55 : f32 to vector<8x1xf32>
    %821 = arith.mulf %820, %735 : vector<8x1xf32>
    %822 = arith.addf %819, %821 : vector<8x1xf32>
    %823 = vector.broadcast %57 : f32 to vector<8x1xf32>
    %824 = arith.mulf %823, %736 : vector<8x1xf32>
    %825 = arith.addf %822, %824 : vector<8x1xf32>
    %826 = vector.broadcast %59 : f32 to vector<8x1xf32>
    %827 = arith.mulf %826, %737 : vector<8x1xf32>
    %828 = arith.addf %825, %827 : vector<8x1xf32>
    %829 = vector.broadcast %61 : f32 to vector<8x1xf32>
    %830 = arith.mulf %829, %738 : vector<8x1xf32>
    %831 = arith.addf %828, %830 : vector<8x1xf32>
    %832 = vector.broadcast %63 : f32 to vector<8x1xf32>
    %833 = arith.mulf %832, %739 : vector<8x1xf32>
    %834 = arith.addf %831, %833 : vector<8x1xf32>
    %835 = vector.broadcast %65 : f32 to vector<8x1xf32>
    %836 = arith.mulf %835, %740 : vector<8x1xf32>
    %837 = arith.addf %834, %836 : vector<8x1xf32>
    %cst_141 = arith.constant 0.000000e+00 : f32
    %838 = vector.broadcast %cst_141 : f32 to vector<8x1xf32>
    %cst_142 = arith.constant 0.000000e+00 : f32
    %839 = vector.broadcast %cst_142 : f32 to vector<8x1xf32>
    %c1_143 = arith.constant 1 : index
    %c0_144 = arith.constant 0 : index
    %c0_145 = arith.constant 0 : index
    %840 = vector.load %arg5[%c1_143, %c0_144, %c0_145] : memref<2x32x8xf32, #tpu.memory_space<vmem>>, vector<1x32x8xf32>
    %841 = vector.shape_cast %840 : vector<1x32x8xf32> to vector<32x8xf32>
    %cst_146 = arith.constant 0.000000e+00 : f32
    %842 = vector.broadcast %cst_146 : f32 to vector<1x8xf32>
    %843 = vector.extract_strided_slice %841 {offsets = [0, 0], sizes = [1, 8], strides = [1, 1]} : vector<32x8xf32> to vector<1x8xf32>
    %844 = vector.broadcast %3 : f32 to vector<1x8xf32>
    %845 = arith.mulf %844, %843 : vector<1x8xf32>
    %846 = arith.addf %842, %845 : vector<1x8xf32>
    %847 = vector.extract_strided_slice %841 {offsets = [1, 0], sizes = [1, 8], strides = [1, 1]} : vector<32x8xf32> to vector<1x8xf32>
    %848 = vector.broadcast %5 : f32 to vector<1x8xf32>
    %849 = arith.mulf %848, %847 : vector<1x8xf32>
    %850 = arith.addf %846, %849 : vector<1x8xf32>
    %851 = vector.extract_strided_slice %841 {offsets = [2, 0], sizes = [1, 8], strides = [1, 1]} : vector<32x8xf32> to vector<1x8xf32>
    %852 = vector.broadcast %7 : f32 to vector<1x8xf32>
    %853 = arith.mulf %852, %851 : vector<1x8xf32>
    %854 = arith.addf %850, %853 : vector<1x8xf32>
    %855 = vector.extract_strided_slice %841 {offsets = [3, 0], sizes = [1, 8], strides = [1, 1]} : vector<32x8xf32> to vector<1x8xf32>
    %856 = vector.broadcast %9 : f32 to vector<1x8xf32>
    %857 = arith.mulf %856, %855 : vector<1x8xf32>
    %858 = arith.addf %854, %857 : vector<1x8xf32>
    %859 = vector.extract_strided_slice %841 {offsets = [4, 0], sizes = [1, 8], strides = [1, 1]} : vector<32x8xf32> to vector<1x8xf32>
    %860 = vector.broadcast %11 : f32 to vector<1x8xf32>
    %861 = arith.mulf %860, %859 : vector<1x8xf32>
    %862 = arith.addf %858, %861 : vector<1x8xf32>
    %863 = vector.extract_strided_slice %841 {offsets = [5, 0], sizes = [1, 8], strides = [1, 1]} : vector<32x8xf32> to vector<1x8xf32>
    %864 = vector.broadcast %13 : f32 to vector<1x8xf32>
    %865 = arith.mulf %864, %863 : vector<1x8xf32>
    %866 = arith.addf %862, %865 : vector<1x8xf32>
    %867 = vector.extract_strided_slice %841 {offsets = [6, 0], sizes = [1, 8], strides = [1, 1]} : vector<32x8xf32> to vector<1x8xf32>
    %868 = vector.broadcast %15 : f32 to vector<1x8xf32>
    %869 = arith.mulf %868, %867 : vector<1x8xf32>
    %870 = arith.addf %866, %869 : vector<1x8xf32>
    %871 = vector.extract_strided_slice %841 {offsets = [7, 0], sizes = [1, 8], strides = [1, 1]} : vector<32x8xf32> to vector<1x8xf32>
    %872 = vector.broadcast %17 : f32 to vector<1x8xf32>
    %873 = arith.mulf %872, %871 : vector<1x8xf32>
    %874 = arith.addf %870, %873 : vector<1x8xf32>
    %875 = vector.extract_strided_slice %841 {offsets = [8, 0], sizes = [1, 8], strides = [1, 1]} : vector<32x8xf32> to vector<1x8xf32>
    %876 = vector.broadcast %19 : f32 to vector<1x8xf32>
    %877 = arith.mulf %876, %875 : vector<1x8xf32>
    %878 = arith.addf %874, %877 : vector<1x8xf32>
    %879 = vector.extract_strided_slice %841 {offsets = [9, 0], sizes = [1, 8], strides = [1, 1]} : vector<32x8xf32> to vector<1x8xf32>
    %880 = vector.broadcast %21 : f32 to vector<1x8xf32>
    %881 = arith.mulf %880, %879 : vector<1x8xf32>
    %882 = arith.addf %878, %881 : vector<1x8xf32>
    %883 = vector.extract_strided_slice %841 {offsets = [10, 0], sizes = [1, 8], strides = [1, 1]} : vector<32x8xf32> to vector<1x8xf32>
    %884 = vector.broadcast %23 : f32 to vector<1x8xf32>
    %885 = arith.mulf %884, %883 : vector<1x8xf32>
    %886 = arith.addf %882, %885 : vector<1x8xf32>
    %887 = vector.extract_strided_slice %841 {offsets = [11, 0], sizes = [1, 8], strides = [1, 1]} : vector<32x8xf32> to vector<1x8xf32>
    %888 = vector.broadcast %25 : f32 to vector<1x8xf32>
    %889 = arith.mulf %888, %887 : vector<1x8xf32>
    %890 = arith.addf %886, %889 : vector<1x8xf32>
    %891 = vector.extract_strided_slice %841 {offsets = [12, 0], sizes = [1, 8], strides = [1, 1]} : vector<32x8xf32> to vector<1x8xf32>
    %892 = vector.broadcast %27 : f32 to vector<1x8xf32>
    %893 = arith.mulf %892, %891 : vector<1x8xf32>
    %894 = arith.addf %890, %893 : vector<1x8xf32>
    %895 = vector.extract_strided_slice %841 {offsets = [13, 0], sizes = [1, 8], strides = [1, 1]} : vector<32x8xf32> to vector<1x8xf32>
    %896 = vector.broadcast %29 : f32 to vector<1x8xf32>
    %897 = arith.mulf %896, %895 : vector<1x8xf32>
    %898 = arith.addf %894, %897 : vector<1x8xf32>
    %899 = vector.extract_strided_slice %841 {offsets = [14, 0], sizes = [1, 8], strides = [1, 1]} : vector<32x8xf32> to vector<1x8xf32>
    %900 = vector.broadcast %31 : f32 to vector<1x8xf32>
    %901 = arith.mulf %900, %899 : vector<1x8xf32>
    %902 = arith.addf %898, %901 : vector<1x8xf32>
    %903 = vector.extract_strided_slice %841 {offsets = [15, 0], sizes = [1, 8], strides = [1, 1]} : vector<32x8xf32> to vector<1x8xf32>
    %904 = vector.broadcast %33 : f32 to vector<1x8xf32>
    %905 = arith.mulf %904, %903 : vector<1x8xf32>
    %906 = arith.addf %902, %905 : vector<1x8xf32>
    %907 = vector.extract_strided_slice %841 {offsets = [16, 0], sizes = [1, 8], strides = [1, 1]} : vector<32x8xf32> to vector<1x8xf32>
    %908 = vector.broadcast %35 : f32 to vector<1x8xf32>
    %909 = arith.mulf %908, %907 : vector<1x8xf32>
    %910 = arith.addf %906, %909 : vector<1x8xf32>
    %911 = vector.extract_strided_slice %841 {offsets = [17, 0], sizes = [1, 8], strides = [1, 1]} : vector<32x8xf32> to vector<1x8xf32>
    %912 = vector.broadcast %37 : f32 to vector<1x8xf32>
    %913 = arith.mulf %912, %911 : vector<1x8xf32>
    %914 = arith.addf %910, %913 : vector<1x8xf32>
    %915 = vector.extract_strided_slice %841 {offsets = [18, 0], sizes = [1, 8], strides = [1, 1]} : vector<32x8xf32> to vector<1x8xf32>
    %916 = vector.broadcast %39 : f32 to vector<1x8xf32>
    %917 = arith.mulf %916, %915 : vector<1x8xf32>
    %918 = arith.addf %914, %917 : vector<1x8xf32>
    %919 = vector.extract_strided_slice %841 {offsets = [19, 0], sizes = [1, 8], strides = [1, 1]} : vector<32x8xf32> to vector<1x8xf32>
    %920 = vector.broadcast %41 : f32 to vector<1x8xf32>
    %921 = arith.mulf %920, %919 : vector<1x8xf32>
    %922 = arith.addf %918, %921 : vector<1x8xf32>
    %923 = vector.extract_strided_slice %841 {offsets = [20, 0], sizes = [1, 8], strides = [1, 1]} : vector<32x8xf32> to vector<1x8xf32>
    %924 = vector.broadcast %43 : f32 to vector<1x8xf32>
    %925 = arith.mulf %924, %923 : vector<1x8xf32>
    %926 = arith.addf %922, %925 : vector<1x8xf32>
    %927 = vector.extract_strided_slice %841 {offsets = [21, 0], sizes = [1, 8], strides = [1, 1]} : vector<32x8xf32> to vector<1x8xf32>
    %928 = vector.broadcast %45 : f32 to vector<1x8xf32>
    %929 = arith.mulf %928, %927 : vector<1x8xf32>
    %930 = arith.addf %926, %929 : vector<1x8xf32>
    %931 = vector.extract_strided_slice %841 {offsets = [22, 0], sizes = [1, 8], strides = [1, 1]} : vector<32x8xf32> to vector<1x8xf32>
    %932 = vector.broadcast %47 : f32 to vector<1x8xf32>
    %933 = arith.mulf %932, %931 : vector<1x8xf32>
    %934 = arith.addf %930, %933 : vector<1x8xf32>
    %935 = vector.extract_strided_slice %841 {offsets = [23, 0], sizes = [1, 8], strides = [1, 1]} : vector<32x8xf32> to vector<1x8xf32>
    %936 = vector.broadcast %49 : f32 to vector<1x8xf32>
    %937 = arith.mulf %936, %935 : vector<1x8xf32>
    %938 = arith.addf %934, %937 : vector<1x8xf32>
    %939 = vector.extract_strided_slice %841 {offsets = [24, 0], sizes = [1, 8], strides = [1, 1]} : vector<32x8xf32> to vector<1x8xf32>
    %940 = vector.broadcast %51 : f32 to vector<1x8xf32>
    %941 = arith.mulf %940, %939 : vector<1x8xf32>
    %942 = arith.addf %938, %941 : vector<1x8xf32>
    %943 = vector.extract_strided_slice %841 {offsets = [25, 0], sizes = [1, 8], strides = [1, 1]} : vector<32x8xf32> to vector<1x8xf32>
    %944 = vector.broadcast %53 : f32 to vector<1x8xf32>
    %945 = arith.mulf %944, %943 : vector<1x8xf32>
    %946 = arith.addf %942, %945 : vector<1x8xf32>
    %947 = vector.extract_strided_slice %841 {offsets = [26, 0], sizes = [1, 8], strides = [1, 1]} : vector<32x8xf32> to vector<1x8xf32>
    %948 = vector.broadcast %55 : f32 to vector<1x8xf32>
    %949 = arith.mulf %948, %947 : vector<1x8xf32>
    %950 = arith.addf %946, %949 : vector<1x8xf32>
    %951 = vector.extract_strided_slice %841 {offsets = [27, 0], sizes = [1, 8], strides = [1, 1]} : vector<32x8xf32> to vector<1x8xf32>
    %952 = vector.broadcast %57 : f32 to vector<1x8xf32>
    %953 = arith.mulf %952, %951 : vector<1x8xf32>
    %954 = arith.addf %950, %953 : vector<1x8xf32>
    %955 = vector.extract_strided_slice %841 {offsets = [28, 0], sizes = [1, 8], strides = [1, 1]} : vector<32x8xf32> to vector<1x8xf32>
    %956 = vector.broadcast %59 : f32 to vector<1x8xf32>
    %957 = arith.mulf %956, %955 : vector<1x8xf32>
    %958 = arith.addf %954, %957 : vector<1x8xf32>
    %959 = vector.extract_strided_slice %841 {offsets = [29, 0], sizes = [1, 8], strides = [1, 1]} : vector<32x8xf32> to vector<1x8xf32>
    %960 = vector.broadcast %61 : f32 to vector<1x8xf32>
    %961 = arith.mulf %960, %959 : vector<1x8xf32>
    %962 = arith.addf %958, %961 : vector<1x8xf32>
    %963 = vector.extract_strided_slice %841 {offsets = [30, 0], sizes = [1, 8], strides = [1, 1]} : vector<32x8xf32> to vector<1x8xf32>
    %964 = vector.broadcast %63 : f32 to vector<1x8xf32>
    %965 = arith.mulf %964, %963 : vector<1x8xf32>
    %966 = arith.addf %962, %965 : vector<1x8xf32>
    %967 = vector.extract_strided_slice %841 {offsets = [31, 0], sizes = [1, 8], strides = [1, 1]} : vector<32x8xf32> to vector<1x8xf32>
    %968 = vector.broadcast %65 : f32 to vector<1x8xf32>
    %969 = arith.mulf %968, %967 : vector<1x8xf32>
    %970 = arith.addf %966, %969 : vector<1x8xf32>
    %971 = vector.broadcast %837 : vector<8x1xf32> to vector<8x8xf32>
    %972 = vector.broadcast %970 : vector<1x8xf32> to vector<8x8xf32>
    %973 = arith.addf %971, %972 : vector<8x8xf32>
    %974 = vector.extract_strided_slice %841 {offsets = [0, 0], sizes = [1, 8], strides = [1, 1]} : vector<32x8xf32> to vector<1x8xf32>
    %975 = vector.broadcast %709 : vector<8x1xf32> to vector<8x8xf32>
    %976 = vector.broadcast %974 : vector<1x8xf32> to vector<8x8xf32>
    %977 = arith.addf %975, %976 : vector<8x8xf32>
    %978 = math.absf %977 : vector<8x8xf32>
    %979 = vector.broadcast %67 : f32 to vector<8x8xf32>
    %980 = arith.mulf %979, %978 : vector<8x8xf32>
    %981 = arith.addf %973, %980 : vector<8x8xf32>
    %982 = vector.extract_strided_slice %841 {offsets = [1, 0], sizes = [1, 8], strides = [1, 1]} : vector<32x8xf32> to vector<1x8xf32>
    %983 = vector.broadcast %710 : vector<8x1xf32> to vector<8x8xf32>
    %984 = vector.broadcast %982 : vector<1x8xf32> to vector<8x8xf32>
    %985 = arith.addf %983, %984 : vector<8x8xf32>
    %986 = math.absf %985 : vector<8x8xf32>
    %987 = vector.broadcast %69 : f32 to vector<8x8xf32>
    %988 = arith.mulf %987, %986 : vector<8x8xf32>
    %989 = arith.addf %981, %988 : vector<8x8xf32>
    %990 = vector.extract_strided_slice %841 {offsets = [2, 0], sizes = [1, 8], strides = [1, 1]} : vector<32x8xf32> to vector<1x8xf32>
    %991 = vector.broadcast %711 : vector<8x1xf32> to vector<8x8xf32>
    %992 = vector.broadcast %990 : vector<1x8xf32> to vector<8x8xf32>
    %993 = arith.addf %991, %992 : vector<8x8xf32>
    %994 = math.absf %993 : vector<8x8xf32>
    %995 = vector.broadcast %71 : f32 to vector<8x8xf32>
    %996 = arith.mulf %995, %994 : vector<8x8xf32>
    %997 = arith.addf %989, %996 : vector<8x8xf32>
    %998 = vector.extract_strided_slice %841 {offsets = [3, 0], sizes = [1, 8], strides = [1, 1]} : vector<32x8xf32> to vector<1x8xf32>
    %999 = vector.broadcast %712 : vector<8x1xf32> to vector<8x8xf32>
    %1000 = vector.broadcast %998 : vector<1x8xf32> to vector<8x8xf32>
    %1001 = arith.addf %999, %1000 : vector<8x8xf32>
    %1002 = math.absf %1001 : vector<8x8xf32>
    %1003 = vector.broadcast %73 : f32 to vector<8x8xf32>
    %1004 = arith.mulf %1003, %1002 : vector<8x8xf32>
    %1005 = arith.addf %997, %1004 : vector<8x8xf32>
    %1006 = vector.extract_strided_slice %841 {offsets = [4, 0], sizes = [1, 8], strides = [1, 1]} : vector<32x8xf32> to vector<1x8xf32>
    %1007 = vector.broadcast %713 : vector<8x1xf32> to vector<8x8xf32>
    %1008 = vector.broadcast %1006 : vector<1x8xf32> to vector<8x8xf32>
    %1009 = arith.addf %1007, %1008 : vector<8x8xf32>
    %1010 = math.absf %1009 : vector<8x8xf32>
    %1011 = vector.broadcast %75 : f32 to vector<8x8xf32>
    %1012 = arith.mulf %1011, %1010 : vector<8x8xf32>
    %1013 = arith.addf %1005, %1012 : vector<8x8xf32>
    %1014 = vector.extract_strided_slice %841 {offsets = [5, 0], sizes = [1, 8], strides = [1, 1]} : vector<32x8xf32> to vector<1x8xf32>
    %1015 = vector.broadcast %714 : vector<8x1xf32> to vector<8x8xf32>
    %1016 = vector.broadcast %1014 : vector<1x8xf32> to vector<8x8xf32>
    %1017 = arith.addf %1015, %1016 : vector<8x8xf32>
    %1018 = math.absf %1017 : vector<8x8xf32>
    %1019 = vector.broadcast %77 : f32 to vector<8x8xf32>
    %1020 = arith.mulf %1019, %1018 : vector<8x8xf32>
    %1021 = arith.addf %1013, %1020 : vector<8x8xf32>
    %1022 = vector.extract_strided_slice %841 {offsets = [6, 0], sizes = [1, 8], strides = [1, 1]} : vector<32x8xf32> to vector<1x8xf32>
    %1023 = vector.broadcast %715 : vector<8x1xf32> to vector<8x8xf32>
    %1024 = vector.broadcast %1022 : vector<1x8xf32> to vector<8x8xf32>
    %1025 = arith.addf %1023, %1024 : vector<8x8xf32>
    %1026 = math.absf %1025 : vector<8x8xf32>
    %1027 = vector.broadcast %79 : f32 to vector<8x8xf32>
    %1028 = arith.mulf %1027, %1026 : vector<8x8xf32>
    %1029 = arith.addf %1021, %1028 : vector<8x8xf32>
    %1030 = vector.extract_strided_slice %841 {offsets = [7, 0], sizes = [1, 8], strides = [1, 1]} : vector<32x8xf32> to vector<1x8xf32>
    %1031 = vector.broadcast %716 : vector<8x1xf32> to vector<8x8xf32>
    %1032 = vector.broadcast %1030 : vector<1x8xf32> to vector<8x8xf32>
    %1033 = arith.addf %1031, %1032 : vector<8x8xf32>
    %1034 = math.absf %1033 : vector<8x8xf32>
    %1035 = vector.broadcast %81 : f32 to vector<8x8xf32>
    %1036 = arith.mulf %1035, %1034 : vector<8x8xf32>
    %1037 = arith.addf %1029, %1036 : vector<8x8xf32>
    %1038 = vector.extract_strided_slice %841 {offsets = [8, 0], sizes = [1, 8], strides = [1, 1]} : vector<32x8xf32> to vector<1x8xf32>
    %1039 = vector.broadcast %717 : vector<8x1xf32> to vector<8x8xf32>
    %1040 = vector.broadcast %1038 : vector<1x8xf32> to vector<8x8xf32>
    %1041 = arith.addf %1039, %1040 : vector<8x8xf32>
    %1042 = math.absf %1041 : vector<8x8xf32>
    %1043 = vector.broadcast %83 : f32 to vector<8x8xf32>
    %1044 = arith.mulf %1043, %1042 : vector<8x8xf32>
    %1045 = arith.addf %1037, %1044 : vector<8x8xf32>
    %1046 = vector.extract_strided_slice %841 {offsets = [9, 0], sizes = [1, 8], strides = [1, 1]} : vector<32x8xf32> to vector<1x8xf32>
    %1047 = vector.broadcast %718 : vector<8x1xf32> to vector<8x8xf32>
    %1048 = vector.broadcast %1046 : vector<1x8xf32> to vector<8x8xf32>
    %1049 = arith.addf %1047, %1048 : vector<8x8xf32>
    %1050 = math.absf %1049 : vector<8x8xf32>
    %1051 = vector.broadcast %85 : f32 to vector<8x8xf32>
    %1052 = arith.mulf %1051, %1050 : vector<8x8xf32>
    %1053 = arith.addf %1045, %1052 : vector<8x8xf32>
    %1054 = vector.extract_strided_slice %841 {offsets = [10, 0], sizes = [1, 8], strides = [1, 1]} : vector<32x8xf32> to vector<1x8xf32>
    %1055 = vector.broadcast %719 : vector<8x1xf32> to vector<8x8xf32>
    %1056 = vector.broadcast %1054 : vector<1x8xf32> to vector<8x8xf32>
    %1057 = arith.addf %1055, %1056 : vector<8x8xf32>
    %1058 = math.absf %1057 : vector<8x8xf32>
    %1059 = vector.broadcast %87 : f32 to vector<8x8xf32>
    %1060 = arith.mulf %1059, %1058 : vector<8x8xf32>
    %1061 = arith.addf %1053, %1060 : vector<8x8xf32>
    %1062 = vector.extract_strided_slice %841 {offsets = [11, 0], sizes = [1, 8], strides = [1, 1]} : vector<32x8xf32> to vector<1x8xf32>
    %1063 = vector.broadcast %720 : vector<8x1xf32> to vector<8x8xf32>
    %1064 = vector.broadcast %1062 : vector<1x8xf32> to vector<8x8xf32>
    %1065 = arith.addf %1063, %1064 : vector<8x8xf32>
    %1066 = math.absf %1065 : vector<8x8xf32>
    %1067 = vector.broadcast %89 : f32 to vector<8x8xf32>
    %1068 = arith.mulf %1067, %1066 : vector<8x8xf32>
    %1069 = arith.addf %1061, %1068 : vector<8x8xf32>
    %1070 = vector.extract_strided_slice %841 {offsets = [12, 0], sizes = [1, 8], strides = [1, 1]} : vector<32x8xf32> to vector<1x8xf32>
    %1071 = vector.broadcast %721 : vector<8x1xf32> to vector<8x8xf32>
    %1072 = vector.broadcast %1070 : vector<1x8xf32> to vector<8x8xf32>
    %1073 = arith.addf %1071, %1072 : vector<8x8xf32>
    %1074 = math.absf %1073 : vector<8x8xf32>
    %1075 = vector.broadcast %91 : f32 to vector<8x8xf32>
    %1076 = arith.mulf %1075, %1074 : vector<8x8xf32>
    %1077 = arith.addf %1069, %1076 : vector<8x8xf32>
    %1078 = vector.extract_strided_slice %841 {offsets = [13, 0], sizes = [1, 8], strides = [1, 1]} : vector<32x8xf32> to vector<1x8xf32>
    %1079 = vector.broadcast %722 : vector<8x1xf32> to vector<8x8xf32>
    %1080 = vector.broadcast %1078 : vector<1x8xf32> to vector<8x8xf32>
    %1081 = arith.addf %1079, %1080 : vector<8x8xf32>
    %1082 = math.absf %1081 : vector<8x8xf32>
    %1083 = vector.broadcast %93 : f32 to vector<8x8xf32>
    %1084 = arith.mulf %1083, %1082 : vector<8x8xf32>
    %1085 = arith.addf %1077, %1084 : vector<8x8xf32>
    %1086 = vector.extract_strided_slice %841 {offsets = [14, 0], sizes = [1, 8], strides = [1, 1]} : vector<32x8xf32> to vector<1x8xf32>
    %1087 = vector.broadcast %723 : vector<8x1xf32> to vector<8x8xf32>
    %1088 = vector.broadcast %1086 : vector<1x8xf32> to vector<8x8xf32>
    %1089 = arith.addf %1087, %1088 : vector<8x8xf32>
    %1090 = math.absf %1089 : vector<8x8xf32>
    %1091 = vector.broadcast %95 : f32 to vector<8x8xf32>
    %1092 = arith.mulf %1091, %1090 : vector<8x8xf32>
    %1093 = arith.addf %1085, %1092 : vector<8x8xf32>
    %1094 = vector.extract_strided_slice %841 {offsets = [15, 0], sizes = [1, 8], strides = [1, 1]} : vector<32x8xf32> to vector<1x8xf32>
    %1095 = vector.broadcast %724 : vector<8x1xf32> to vector<8x8xf32>
    %1096 = vector.broadcast %1094 : vector<1x8xf32> to vector<8x8xf32>
    %1097 = arith.addf %1095, %1096 : vector<8x8xf32>
    %1098 = math.absf %1097 : vector<8x8xf32>
    %1099 = vector.broadcast %97 : f32 to vector<8x8xf32>
    %1100 = arith.mulf %1099, %1098 : vector<8x8xf32>
    %1101 = arith.addf %1093, %1100 : vector<8x8xf32>
    %1102 = vector.extract_strided_slice %841 {offsets = [16, 0], sizes = [1, 8], strides = [1, 1]} : vector<32x8xf32> to vector<1x8xf32>
    %1103 = vector.broadcast %725 : vector<8x1xf32> to vector<8x8xf32>
    %1104 = vector.broadcast %1102 : vector<1x8xf32> to vector<8x8xf32>
    %1105 = arith.addf %1103, %1104 : vector<8x8xf32>
    %1106 = math.absf %1105 : vector<8x8xf32>
    %1107 = vector.broadcast %99 : f32 to vector<8x8xf32>
    %1108 = arith.mulf %1107, %1106 : vector<8x8xf32>
    %1109 = arith.addf %1101, %1108 : vector<8x8xf32>
    %1110 = vector.extract_strided_slice %841 {offsets = [17, 0], sizes = [1, 8], strides = [1, 1]} : vector<32x8xf32> to vector<1x8xf32>
    %1111 = vector.broadcast %726 : vector<8x1xf32> to vector<8x8xf32>
    %1112 = vector.broadcast %1110 : vector<1x8xf32> to vector<8x8xf32>
    %1113 = arith.addf %1111, %1112 : vector<8x8xf32>
    %1114 = math.absf %1113 : vector<8x8xf32>
    %1115 = vector.broadcast %101 : f32 to vector<8x8xf32>
    %1116 = arith.mulf %1115, %1114 : vector<8x8xf32>
    %1117 = arith.addf %1109, %1116 : vector<8x8xf32>
    %1118 = vector.extract_strided_slice %841 {offsets = [18, 0], sizes = [1, 8], strides = [1, 1]} : vector<32x8xf32> to vector<1x8xf32>
    %1119 = vector.broadcast %727 : vector<8x1xf32> to vector<8x8xf32>
    %1120 = vector.broadcast %1118 : vector<1x8xf32> to vector<8x8xf32>
    %1121 = arith.addf %1119, %1120 : vector<8x8xf32>
    %1122 = math.absf %1121 : vector<8x8xf32>
    %1123 = vector.broadcast %103 : f32 to vector<8x8xf32>
    %1124 = arith.mulf %1123, %1122 : vector<8x8xf32>
    %1125 = arith.addf %1117, %1124 : vector<8x8xf32>
    %1126 = vector.extract_strided_slice %841 {offsets = [19, 0], sizes = [1, 8], strides = [1, 1]} : vector<32x8xf32> to vector<1x8xf32>
    %1127 = vector.broadcast %728 : vector<8x1xf32> to vector<8x8xf32>
    %1128 = vector.broadcast %1126 : vector<1x8xf32> to vector<8x8xf32>
    %1129 = arith.addf %1127, %1128 : vector<8x8xf32>
    %1130 = math.absf %1129 : vector<8x8xf32>
    %1131 = vector.broadcast %105 : f32 to vector<8x8xf32>
    %1132 = arith.mulf %1131, %1130 : vector<8x8xf32>
    %1133 = arith.addf %1125, %1132 : vector<8x8xf32>
    %1134 = vector.extract_strided_slice %841 {offsets = [20, 0], sizes = [1, 8], strides = [1, 1]} : vector<32x8xf32> to vector<1x8xf32>
    %1135 = vector.broadcast %729 : vector<8x1xf32> to vector<8x8xf32>
    %1136 = vector.broadcast %1134 : vector<1x8xf32> to vector<8x8xf32>
    %1137 = arith.addf %1135, %1136 : vector<8x8xf32>
    %1138 = math.absf %1137 : vector<8x8xf32>
    %1139 = vector.broadcast %107 : f32 to vector<8x8xf32>
    %1140 = arith.mulf %1139, %1138 : vector<8x8xf32>
    %1141 = arith.addf %1133, %1140 : vector<8x8xf32>
    %1142 = vector.extract_strided_slice %841 {offsets = [21, 0], sizes = [1, 8], strides = [1, 1]} : vector<32x8xf32> to vector<1x8xf32>
    %1143 = vector.broadcast %730 : vector<8x1xf32> to vector<8x8xf32>
    %1144 = vector.broadcast %1142 : vector<1x8xf32> to vector<8x8xf32>
    %1145 = arith.addf %1143, %1144 : vector<8x8xf32>
    %1146 = math.absf %1145 : vector<8x8xf32>
    %1147 = vector.broadcast %109 : f32 to vector<8x8xf32>
    %1148 = arith.mulf %1147, %1146 : vector<8x8xf32>
    %1149 = arith.addf %1141, %1148 : vector<8x8xf32>
    %1150 = vector.extract_strided_slice %841 {offsets = [22, 0], sizes = [1, 8], strides = [1, 1]} : vector<32x8xf32> to vector<1x8xf32>
    %1151 = vector.broadcast %731 : vector<8x1xf32> to vector<8x8xf32>
    %1152 = vector.broadcast %1150 : vector<1x8xf32> to vector<8x8xf32>
    %1153 = arith.addf %1151, %1152 : vector<8x8xf32>
    %1154 = math.absf %1153 : vector<8x8xf32>
    %1155 = vector.broadcast %111 : f32 to vector<8x8xf32>
    %1156 = arith.mulf %1155, %1154 : vector<8x8xf32>
    %1157 = arith.addf %1149, %1156 : vector<8x8xf32>
    %1158 = vector.extract_strided_slice %841 {offsets = [23, 0], sizes = [1, 8], strides = [1, 1]} : vector<32x8xf32> to vector<1x8xf32>
    %1159 = vector.broadcast %732 : vector<8x1xf32> to vector<8x8xf32>
    %1160 = vector.broadcast %1158 : vector<1x8xf32> to vector<8x8xf32>
    %1161 = arith.addf %1159, %1160 : vector<8x8xf32>
    %1162 = math.absf %1161 : vector<8x8xf32>
    %1163 = vector.broadcast %113 : f32 to vector<8x8xf32>
    %1164 = arith.mulf %1163, %1162 : vector<8x8xf32>
    %1165 = arith.addf %1157, %1164 : vector<8x8xf32>
    %1166 = vector.extract_strided_slice %841 {offsets = [24, 0], sizes = [1, 8], strides = [1, 1]} : vector<32x8xf32> to vector<1x8xf32>
    %1167 = vector.broadcast %733 : vector<8x1xf32> to vector<8x8xf32>
    %1168 = vector.broadcast %1166 : vector<1x8xf32> to vector<8x8xf32>
    %1169 = arith.addf %1167, %1168 : vector<8x8xf32>
    %1170 = math.absf %1169 : vector<8x8xf32>
    %1171 = vector.broadcast %115 : f32 to vector<8x8xf32>
    %1172 = arith.mulf %1171, %1170 : vector<8x8xf32>
    %1173 = arith.addf %1165, %1172 : vector<8x8xf32>
    %1174 = vector.extract_strided_slice %841 {offsets = [25, 0], sizes = [1, 8], strides = [1, 1]} : vector<32x8xf32> to vector<1x8xf32>
    %1175 = vector.broadcast %734 : vector<8x1xf32> to vector<8x8xf32>
    %1176 = vector.broadcast %1174 : vector<1x8xf32> to vector<8x8xf32>
    %1177 = arith.addf %1175, %1176 : vector<8x8xf32>
    %1178 = math.absf %1177 : vector<8x8xf32>
    %1179 = vector.broadcast %117 : f32 to vector<8x8xf32>
    %1180 = arith.mulf %1179, %1178 : vector<8x8xf32>
    %1181 = arith.addf %1173, %1180 : vector<8x8xf32>
    %1182 = vector.extract_strided_slice %841 {offsets = [26, 0], sizes = [1, 8], strides = [1, 1]} : vector<32x8xf32> to vector<1x8xf32>
    %1183 = vector.broadcast %735 : vector<8x1xf32> to vector<8x8xf32>
    %1184 = vector.broadcast %1182 : vector<1x8xf32> to vector<8x8xf32>
    %1185 = arith.addf %1183, %1184 : vector<8x8xf32>
    %1186 = math.absf %1185 : vector<8x8xf32>
    %1187 = vector.broadcast %119 : f32 to vector<8x8xf32>
    %1188 = arith.mulf %1187, %1186 : vector<8x8xf32>
    %1189 = arith.addf %1181, %1188 : vector<8x8xf32>
    %1190 = vector.extract_strided_slice %841 {offsets = [27, 0], sizes = [1, 8], strides = [1, 1]} : vector<32x8xf32> to vector<1x8xf32>
    %1191 = vector.broadcast %736 : vector<8x1xf32> to vector<8x8xf32>
    %1192 = vector.broadcast %1190 : vector<1x8xf32> to vector<8x8xf32>
    %1193 = arith.addf %1191, %1192 : vector<8x8xf32>
    %1194 = math.absf %1193 : vector<8x8xf32>
    %1195 = vector.broadcast %121 : f32 to vector<8x8xf32>
    %1196 = arith.mulf %1195, %1194 : vector<8x8xf32>
    %1197 = arith.addf %1189, %1196 : vector<8x8xf32>
    %1198 = vector.extract_strided_slice %841 {offsets = [28, 0], sizes = [1, 8], strides = [1, 1]} : vector<32x8xf32> to vector<1x8xf32>
    %1199 = vector.broadcast %737 : vector<8x1xf32> to vector<8x8xf32>
    %1200 = vector.broadcast %1198 : vector<1x8xf32> to vector<8x8xf32>
    %1201 = arith.addf %1199, %1200 : vector<8x8xf32>
    %1202 = math.absf %1201 : vector<8x8xf32>
    %1203 = vector.broadcast %123 : f32 to vector<8x8xf32>
    %1204 = arith.mulf %1203, %1202 : vector<8x8xf32>
    %1205 = arith.addf %1197, %1204 : vector<8x8xf32>
    %1206 = vector.extract_strided_slice %841 {offsets = [29, 0], sizes = [1, 8], strides = [1, 1]} : vector<32x8xf32> to vector<1x8xf32>
    %1207 = vector.broadcast %738 : vector<8x1xf32> to vector<8x8xf32>
    %1208 = vector.broadcast %1206 : vector<1x8xf32> to vector<8x8xf32>
    %1209 = arith.addf %1207, %1208 : vector<8x8xf32>
    %1210 = math.absf %1209 : vector<8x8xf32>
    %1211 = vector.broadcast %125 : f32 to vector<8x8xf32>
    %1212 = arith.mulf %1211, %1210 : vector<8x8xf32>
    %1213 = arith.addf %1205, %1212 : vector<8x8xf32>
    %1214 = vector.extract_strided_slice %841 {offsets = [30, 0], sizes = [1, 8], strides = [1, 1]} : vector<32x8xf32> to vector<1x8xf32>
    %1215 = vector.broadcast %739 : vector<8x1xf32> to vector<8x8xf32>
    %1216 = vector.broadcast %1214 : vector<1x8xf32> to vector<8x8xf32>
    %1217 = arith.addf %1215, %1216 : vector<8x8xf32>
    %1218 = math.absf %1217 : vector<8x8xf32>
    %1219 = vector.broadcast %127 : f32 to vector<8x8xf32>
    %1220 = arith.mulf %1219, %1218 : vector<8x8xf32>
    %1221 = arith.addf %1213, %1220 : vector<8x8xf32>
    %1222 = vector.extract_strided_slice %841 {offsets = [31, 0], sizes = [1, 8], strides = [1, 1]} : vector<32x8xf32> to vector<1x8xf32>
    %1223 = vector.broadcast %740 : vector<8x1xf32> to vector<8x8xf32>
    %1224 = vector.broadcast %1222 : vector<1x8xf32> to vector<8x8xf32>
    %1225 = arith.addf %1223, %1224 : vector<8x8xf32>
    %1226 = math.absf %1225 : vector<8x8xf32>
    %1227 = vector.broadcast %129 : f32 to vector<8x8xf32>
    %1228 = arith.mulf %1227, %1226 : vector<8x8xf32>
    %1229 = arith.addf %1221, %1228 : vector<8x8xf32>
    %cst_147 = arith.constant 1.250000e-01 : f32
    %1230 = vector.broadcast %cst_147 : f32 to vector<8x8xf32>
    %1231 = arith.mulf %1229, %1230 : vector<8x8xf32>
    %1232 = math.tanh %1231 : vector<8x8xf32>
    %cst_148 = arith.constant 8.000000e+00 : f32
    %1233 = vector.broadcast %cst_148 : f32 to vector<8x8xf32>
    %1234 = arith.mulf %1232, %1233 : vector<8x8xf32>
    %c1_149 = arith.constant 1 : index
    %c0_150 = arith.constant 0 : index
    %c0_151 = arith.constant 0 : index
    %1235 = vector.load %arg7[%c1_149, %c0_150, %c0_151] : memref<2x8x8xf32, #tpu.memory_space<vmem>>, vector<1x8x8xf32>
    %1236 = vector.shape_cast %1235 : vector<1x8x8xf32> to vector<8x8xf32>
    %1237 = math.exp %1234 : vector<8x8xf32>
    %cst_152 = arith.constant 1.000000e-32 : f32
    %1238 = vector.broadcast %cst_152 : f32 to vector<8x8xf32>
    %1239 = arith.addf %1236, %1238 : vector<8x8xf32>
    %1240 = arith.mulf %1237, %1239 : vector<8x8xf32>
    %c1_153 = arith.constant 1 : index
    %c0_154 = arith.constant 0 : index
    %c0_155 = arith.constant 0 : index
    %1241 = vector.load %arg8[%c1_153, %c0_154, %c0_155] : memref<2x8x8xf32, #tpu.memory_space<vmem>>, vector<1x8x8xf32>
    %1242 = vector.shape_cast %1241 : vector<1x8x8xf32> to vector<8x8xf32>
    %1243 = vector.shape_cast %1240 : vector<8x8xf32> to vector<1x8x8xf32>
    tpu.vector_store %arg8[%c1_153, %c0_154, %c0_155], %1243 {strides = array<i32>} : memref<2x8x8xf32, #tpu.memory_space<vmem>>, vector<1x8x8xf32>,
    %cst_156 = arith.constant dense<0.000000e+00> : vector<8xf32>
    %1244 = vector.multi_reduction <add>, %1240, %cst_156 [1] : vector<8x8xf32> to vector<8xf32>
    %1245 = vector.shape_cast %1244 : vector<8xf32> to vector<8x1xf32>
    %1246 = arith.addf %838, %1245 : vector<8x1xf32>
    %c1_157 = arith.constant 1 : index
    %c0_158 = arith.constant 0 : index
    %c0_159 = arith.constant 0 : index
    %1247 = vector.load %arg6[%c1_157, %c0_158, %c0_159] : memref<2x8x8xf32, #tpu.memory_space<vmem>>, vector<1x8x8xf32>
    %1248 = vector.shape_cast %1247 : vector<1x8x8xf32> to vector<8x8xf32>
    %cst_160 = arith.constant dense<0.000000e+00> : vector<8xf32>
    %1249 = vector.multi_reduction <add>, %1248, %cst_160 [1] : vector<8x8xf32> to vector<8xf32>
    %1250 = vector.shape_cast %1249 : vector<8xf32> to vector<8x1xf32>
    %1251 = arith.addf %839, %1250 : vector<8x1xf32>
    %cst_161 = arith.constant 1.000000e+00 : f32
    %1252 = vector.broadcast %cst_161 : f32 to vector<8x1xf32>
    %1253 = arith.divf %1252, %1246 : vector<8x1xf32>
    %cst_162 = arith.constant 1.000000e+00 : f32
    %1254 = vector.broadcast %cst_162 : f32 to vector<8x1xf32>
    %1255 = arith.divf %1254, %1251 : vector<8x1xf32>
    %c1_163 = arith.constant 1 : index
    %c0_164 = arith.constant 0 : index
    %c0_165 = arith.constant 0 : index
    %1256 = vector.load %arg8[%c1_163, %c0_164, %c0_165] : memref<2x8x8xf32, #tpu.memory_space<vmem>>, vector<1x8x8xf32>
    %1257 = vector.shape_cast %1256 : vector<1x8x8xf32> to vector<8x8xf32>
    %1258 = vector.broadcast %1253 : vector<8x1xf32> to vector<8x8xf32>
    %1259 = arith.mulf %1257, %1258 : vector<8x8xf32>
    %cst_166 = arith.constant 0.0183156393 : f32
    %1260 = vector.broadcast %cst_166 : f32 to vector<8x8xf32>
    %1261 = arith.cmpf ogt, %1259, %1260 : vector<8x8xf32>
    %1262 = math.log %1259 : vector<8x8xf32>
    %cst_167 = arith.constant 5.000000e+00 : f32
    %1263 = vector.broadcast %cst_167 : f32 to vector<8x8xf32>
    %1264 = arith.addf %1262, %1263 : vector<8x8xf32>
    %cst_168 = arith.constant 54.5981483 : f32
    %1265 = vector.broadcast %cst_168 : f32 to vector<8x8xf32>
    %1266 = arith.mulf %1265, %1259 : vector<8x8xf32>
    %1267 = arith.select %1261, %1264, %1266 : vector<8x8xi1>, vector<8x8xf32>
    %cst_169 = arith.constant dense<0.000000e+00> : vector<8xf32>
    %1268 = vector.multi_reduction <add>, %1267, %cst_169 [1] : vector<8x8xf32> to vector<8xf32>
    %1269 = vector.shape_cast %1268 : vector<8xf32> to vector<8x1xf32>
    %1270 = arith.addf %694, %1269 : vector<8x1xf32>
    %c1_170 = arith.constant 1 : index
    %c0_171 = arith.constant 0 : index
    %c0_172 = arith.constant 0 : index
    %1271 = vector.load %arg6[%c1_170, %c0_171, %c0_172] : memref<2x8x8xf32, #tpu.memory_space<vmem>>, vector<1x8x8xf32>
    %1272 = vector.shape_cast %1271 : vector<1x8x8xf32> to vector<8x8xf32>
    %1273 = vector.broadcast %1255 : vector<8x1xf32> to vector<8x8xf32>
    %1274 = arith.mulf %1272, %1273 : vector<8x8xf32>
    %1275 = vector.broadcast %1 : f32 to vector<8x8xf32>
    %1276 = arith.mulf %1275, %1274 : vector<8x8xf32>
    %1277 = vector.broadcast %0 : f32 to vector<8x8xf32>
    %1278 = arith.mulf %1277, %1259 : vector<8x8xf32>
    %1279 = arith.addf %1276, %1278 : vector<8x8xf32>
    %c1_173 = arith.constant 1 : index
    %c0_174 = arith.constant 0 : index
    %c0_175 = arith.constant 0 : index
    %1280 = vector.load %arg8[%c1_173, %c0_174, %c0_175] : memref<2x8x8xf32, #tpu.memory_space<vmem>>, vector<1x8x8xf32>
    %1281 = vector.shape_cast %1280 : vector<1x8x8xf32> to vector<8x8xf32>
    %1282 = vector.shape_cast %1279 : vector<8x8xf32> to vector<1x8x8xf32>
    tpu.vector_store %arg8[%c1_173, %c0_174, %c0_175], %1282 {strides = array<i32>} : memref<2x8x8xf32, #tpu.memory_space<vmem>>, vector<1x8x8xf32>,
    %1283 = vector.shape_cast %1270 : vector<8x1xf32> to vector<1x8x1xf32>
    %cst_176 = arith.constant dense<0.000000e+00> : vector<1xf32>
    %1284 = vector.multi_reduction <add>, %1283, %cst_176 [1, 2] : vector<1x8x1xf32> to vector<1xf32>
    %1285 = vector.shape_cast %1284 : vector<1xf32> to vector<1x1x1xf32>
    %1286 = vector.extract %1285[0, 0, 0] : f32 from vector<1x1x1xf32>
    %c0_177 = arith.constant 0 : index
    %c0_178 = arith.constant 0 : index
    %1287 = memref.load %arg9[%c0_177, %c0_178] : memref<1x1xf32, #tpu.memory_space<smem>>
    memref.store %1286, %arg9[%c0_177, %c0_178] : memref<1x1xf32, #tpu.memory_space<smem>>
    return
  }
  func.func @transform_0(%arg0: i32, %arg1: i32) -> i32 {
    %c0_i32 = arith.constant 0 : i32
    %c0_i32_0 = arith.constant 0 : i32
    return %c0_i32 : i32
  }
  func.func @transform_1(%arg0: i32, %arg1: i32) -> i32 {
    %c0_i32 = arith.constant 0 : i32
    %c0_i32_0 = arith.constant 0 : i32
    return %c0_i32 : i32
  }
  func.func @transform_2(%arg0: i32, %arg1: i32) -> (i32, i32, i32) {
    %c0_i32 = arith.constant 0 : i32
    %c0_i32_0 = arith.constant 0 : i32
    return %arg0, %arg1, %c0_i32 : i32, i32, i32
  }
  func.func @transform_3(%arg0: i32, %arg1: i32) -> (i32, i32, i32) {
    %c0_i32 = arith.constant 0 : i32
    %c0_i32_0 = arith.constant 0 : i32
    %c0_i32_1 = arith.constant 0 : i32
    return %arg0, %c0_i32, %c0_i32_0 : i32, i32, i32
  }
  func.func @transform_4(%arg0: i32, %arg1: i32) -> (i32, i32, i32) {
    %c0_i32 = arith.constant 0 : i32
    %c0_i32_0 = arith.constant 0 : i32
    return %arg0, %arg1, %c0_i32 : i32, i32, i32
  }
  func.func @transform_5(%arg0: i32, %arg1: i32) -> (i32, i32, i32) {
    %c0_i32 = arith.constant 0 : i32
    %c0_i32_0 = arith.constant 0 : i32
    return %arg0, %arg1, %c0_i32 : i32, i32, i32
  }
  func.func @transform_6(%arg0: i32, %arg1: i32) -> (i32, i32, i32) {
    %c0_i32 = arith.constant 0 : i32
    %c0_i32_0 = arith.constant 0 : i32
    return %arg0, %arg1, %c0_i32 : i32, i32, i32
  }
  func.func @transform_7(%arg0: i32, %arg1: i32) -> (i32, i32) {
    %c0_i32 = arith.constant 0 : i32
    return %arg0, %arg1 : i32, i32
  }
}

</mosaic_0001>

<bundles_post_ra>
// kernel: tpu_custom_call.1
= control target key start
LH: loop header
LB: loop body
LE: loop exit
PB: predicated region body
PF: predicated region fallthrough
CT: control target
= control target key end

     0   :  { %s3149_s0 = inlined_call_operand.<no memory space> [shape: f32[1], index: 0, kind: input, shape index: {}]   ;;  %s3150_s1 = inlined_call_operand.vmem [shape: f32[32], index: 1, kind: input, shape index: {}]   ;;  %s3151_s2 = inlined_call_operand.vmem [shape: f32[2,8,32], index: 2, kind: input, shape index: {}]   ;;  %s3152_s3 = inlined_call_operand.vmem [shape: f32[2,32,8], index: 3, kind: input, shape index: {}]   ;;  %s3153_s4 = inlined_call_operand.vmem [shape: f32[2,8,8], index: 4, kind: input, shape index: {}]   ;;  %s3154_s5 = inlined_call_operand.vmem [shape: f32[2,8,8], index: 5, kind: input, shape index: {}]   ;;  %s3155_s6 = inlined_call_operand.hbm [shape: f32[2,8,8], index: 6, kind: output, shape index: {0}]   ;;  %s3156_s7 = inlined_call_operand.hbm [shape: f32[1,1], index: 7, kind: output, shape index: {1}]  }
   0x1   :  { %3181 = sst [smem:[#allocation26_spill]] %s3149_s0 }
   0x2   :  { %3182 = sst [smem:[#allocation27_spill]] %s3153_s4 }
   0x3   :  { %3183 = sst [smem:[#allocation28_spill]] %s3154_s5 }
   0x4   :  { %3184 = sst [smem:[#allocation29_spill]] %s3155_s6 }
   0x5   :  { %3185 = sst [smem:[#allocation30_spill]] %s3156_s7 }
   0x6   :  { %14 = vsyncpa [#allocation6], 0 }
   0x7   :  { %15 = vsyncpa [#allocation4], 0 }
   0x8   :  { %16 = vsyncpa [#allocation5], 0  ;;  %s25_s26 = sshll.u32 %s3150_s1, 4  ;;  %s26_s26 = int_to_ptr.vmem [resolvable:$true] %s25_s26 }
   0x9   :  { %s1997_s27 = scalar_lea.vmem %s26_s26, 16  ;;  %p2002_p1 = scmp.lt.s32.totalorder %s26_s26, %s26_s26 }
   0xa   :  { %p1998_p0 = scmp.ne.s32.totalorder %s26_s26, %s1997_s27  ;;  %p2003_p2 = scmp.lt.s32.totalorder %s1997_s27, %s1997_s27 }
   0xc   :  { %p2004_p3 = por %p2003_p2, %p2002_p1 }
   0xe   :  { %p2005_p4 = pnand %p2004_p3, %p1998_p0 }
  0x10   :  { %2008 = shalt.err (!%p2005_p4)
}
  0x11   :  { %s2047_s28 = smov [#allocation3]  }
  0x12   :  { %28 = dma.vmem_to_smem %s26_s26, 16, %s2047_s28, [#allocation6]  }
  0x13   :  { %2041 = dma.done.wait [#allocation6], 16  }
  0x14   :  { %2042 = vsyncadd [#allocation6], 4294967280 }
  0x15   :  { %40 = sfence }
  0x16   :  { %s2158_s29 = sld [smem:[#allocation3 + $0x2]]  ;;  %s2160_s30 = sld [smem:[#allocation3 + $0x1]]  ;;  %v2174_v0 = vld [vmem:[%s3151_s2] sm:$0xff]  ;;  %v2196_v8 = vld [vmem:[%s3151_s2 + $0x8] sm:$0xff]  ;;  %vm947_vm0 = vcmask 64512   ;;  %vm1761_vm3 = vcmask 7168  }
  0x17   :  { %s2162_s1 = sld [smem:[#allocation3]]  ;;  %s2164_s8 = sld [smem:[#allocation3 + $0x3]]  ;;  %v2179_v1 = vld [vmem:[%s3152_s3] sm:$0xff]  ;;  %v2244_v55 = vld [vmem:[%s3152_s3 + $0x8] sm:$0xff] }
  0x18   :  { %s2166_s9 = sld [smem:[#allocation3 + $0x4]]  ;;  %s2168_s10 = sld [smem:[#allocation3 + $0x5]]  ;;  %v2187_v3 = vld [vmem:[%s3152_s3 + $0x20] sm:$0xff]  ;;  %v2253_v60 = vld [vmem:[%s3152_s3 + $0x28] sm:$0xff] }
  0x19   :  { %s2182_s17 = sld [smem:[#allocation3 + $0x6]]  ;;  %s2199_s24 = sld [smem:[#allocation3 + $0x7]] }
  0x1a   :  { %s2048_s26 = smov 126   ;;  %s2049_s28 = smov 127  }
  0x1b   :  { %s2216_s12 = sld [smem:[#allocation3 + $0x9]]  ;;  %s2225_s14 = sld [smem:[#allocation3 + $0xa]] }
  0x1c   :  { %s48_s11 = smul.f32 0.55, %s2158_s29  ;;  %s2050_s18 = smov 125  }
  0x1d   :  { %s46_s16 = smul.f32 0.55, %s2160_s30  ;;  %s2266_s22 = sld [smem:[#allocation3 + $0xf]] }
  0x1e   :  { %v150_v2 = vstv %s48_s11  ;;  %s44_s20 = smul.f32 0.55, %s2162_s1  ;;  %s2214_s11 = sld [smem:[#allocation3 + $0x8]] }
  0x1f   :  { %v151_v4 = vmul.f32 %v150_v2, %v2174_v0  ;;  %v371_v5 = vmul.f32 %v2179_v1, %v150_v2  ;;  %v1183_v6 = vmul.f32 %v2187_v3, %v150_v2  ;;  %v143_v7 = vstv %s46_s16  ;;  %s50_s23 = smul.f32 0.55, %s2164_s8  ;;  %s2229_s16 = sld [smem:[#allocation3 + $0xb]] }
  0x20   :  { %v144_v9 = vmul.f32 %v143_v7, %v2174_v0  ;;  %v366_v10 = vmul.f32 %v2179_v1, %v143_v7  ;;  %v1178_v11 = vmul.f32 %v2187_v3, %v143_v7  ;;  %v2204_v12 = vstv %s44_s20  ;;  %s52_s25 = smul.f32 0.55, %s2166_s9  ;;  %s2236_s20 = sld [smem:[#allocation3 + $0xc]] }
  0x21   :  { %v373_v13 = vrot.slane %v371_v5, 2  ;;  %v1185_v14 = vrot.slane %v1183_v6, 2  ;;  %153 = vrot.lane.b32.xlu1 %v151_v4, %s2048_s26  ;;  %v364_v15 = vmul.f32 %v2179_v1, %v2204_v12  ;;  %v1176_v16 = vmul.f32 %v2187_v3, %v2204_v12  ;;  %s54_s27 = smul.f32 0.55, %s2168_s10  ;;  %s2055_s7 = smov 120  }
  0x22   :  { %v368_v17 = vrot.slane %v366_v10, 1  ;;  %v1180_v18 = vrot.slane %v1178_v11, 1  ;;  %146 = vrot.lane.b32.xlu0 %v144_v9, %s2049_s28  ;;  %v991_v19 = vmul.f32 %v2196_v8, %v150_v2  ;;  %v985_v20 = vmul.f32 %v2196_v8, %v143_v7  ;;  %s56_s13 = smul.f32 0.55, %s2182_s17  ;;  %s2333_s4 = sld [smem:[#allocation3 + $0x15]] }
  0x23   :  { %v157_v21 = vstv %s50_s23  ;;  %v164_v22 = vstv %s52_s25  ;;  %v171_v26 = vstv %s54_s27  ;;  %s58_s15 = smul.f32 0.55, %s2199_s24  ;;  %s2246_s25 = sld [smem:[#allocation3 + $0xd]] }
  0x24   :  { %v370_v23 = vadd.f32 %v368_v17, %v364_v15  ;;  %v1182_v24 = vadd.f32 %v1180_v18, %v1176_v16  ;;  %v376_v25 = vmul.f32 %v2179_v1, %v157_v21  ;;  %v997_v27 = vmul.f32 %v2196_v8, %v157_v21  ;;  %s60_s19 = smul.f32 0.55, %s2214_s11  ;;  %s2279_s23 = sld [smem:[#allocation3 + $0x10]] }
  0x25   :  { %993 = vrot.lane.b32.xlu1 %v991_v19, %s2048_s26  ;;  %v1188_v28 = vmul.f32 %v2187_v3, %v157_v21  ;;  %v158_v29 = vmul.f32 %v157_v21, %v2174_v0  ;;  %v381_v30 = vmul.f32 %v2179_v1, %v164_v22  ;;  %v1193_v34 = vmul.f32 %v2187_v3, %v164_v22  ;;  %s62_s21 = smul.f32 0.55, %s2216_s12  ;;  %s2051_s26 = smov 124  }
  0x26   :  { %v375_v31 = vadd.f32 %v373_v13, %v370_v23  ;;  %v1187_v32 = vadd.f32 %v1185_v14, %v1182_v24  ;;  %987 = vrot.lane.b32.xlu0 %v985_v20, %s2049_s28  ;;  %v378_v33 = vrot.slane %v376_v25, 3  ;;  %v386_v37 = vmul.f32 %v2179_v1, %v171_v26  ;;  %s2053_s27 = smov 122   ;;  %s2289_s28 = sld [smem:[#allocation3 + $0x11]] }
  0x27   :  { %v1190_v35 = vrot.slane %v1188_v28, 3  ;;  %v383_v36 = vrot.slane %v381_v30, 4  ;;  %v1195_v39 = vrot.slane %v1193_v34, 4  ;;  %v1198_v40 = vmul.f32 %v2187_v3, %v171_v26  ;;  %s2364_s5 = sld [smem:[#allocation3 + $0x17]] }
  0x28   :  { %v380_v38 = vadd.f32 %v378_v33, %v375_v31  ;;  %v1003_v42 = vmul.f32 %v2196_v8, %v164_v22  ;;  %v388_v43 = vrot.slane %v386_v37, 5  ;;  %v178_v44 = vstv %s56_s13  ;;  %s64_s13 = smul.f32 0.55, %s2225_s14 }
  0x29   :  { %999 = vrot.lane.b32.xlu1 %v997_v27, %s2050_s18  ;;  %v1192_v41 = vadd.f32 %v1190_v35, %v1187_v32  ;;  %v165_v46 = vmul.f32 %v164_v22, %v2174_v0  ;;  %v1200_v47 = vrot.slane %v1198_v40, 5  ;;  %v391_v48 = vmul.f32 %v2179_v1, %v178_v44 }
  0x2a   :  { %160 = vrot.lane.b32.xlu0 %v158_v29, %s2050_s18  ;;  %v385_v45 = vadd.f32 %v383_v36, %v380_v38  ;;  %v1203_v50 = vmul.f32 %v2187_v3, %v178_v44  ;;  %v185_v51 = vstv %s58_s15  ;;  %v1009_v56 = vmul.f32 %v2196_v8, %v171_v26  ;;  %s66_s15 = smul.f32 0.55, %s2229_s16  ;;  %s2261_s18 = sld [smem:[#allocation3 + $0xe]] }
  0x2b   :  { %v1197_v49 = vadd.f32 %v1195_v39, %v1192_v41  ;;  %v393_v53 = vrot.slane %v391_v48, 6  ;;  %v396_v54 = vmul.f32 %v2179_v1, %v185_v51  ;;  %v1208_v59 = vmul.f32 %v2187_v3, %v185_v51 }
  0x2c   :  { %v390_v52 = vadd.f32 %v388_v43, %v385_v45  ;;  %v1205_v58 = vrot.slane %v1203_v50, 6  ;;  %v172_v61 = vmul.f32 %v171_v26, %v2174_v0  ;;  %v192_v1 = vstv %s60_s19  ;;  %s2052_s19 = smov 123  }
  0x2d   :  { %1005 = vrot.lane.b32.xlu1 %v1003_v42, %s2051_s26  ;;  %v1202_v57 = vadd.f32 %v1200_v47, %v1197_v49  ;;  %v398_v63 = vrot.slane %v396_v54, 7  ;;  %v1210_v4 = vrot.slane %v1208_v59, 7  ;;  %v401_v5 = vmul.f32 %v2244_v55, %v192_v1  ;;  %v2330_v59 = vld [vmem:[%s3152_s3 + $0x10] sm:$0xff]  ;;  %3188 = sst [smem:[#allocation14_spill]] %s2364_s5 }
  0x2e   :  { %167 = vrot.lane.b32.xlu0 %v165_v46, %s2051_s26  ;;  %v395_v62 = vadd.f32 %v393_v53, %v390_v52  ;;  %v2258_v6 = vstv %s62_s21  ;;  %v1213_v7 = vmul.f32 %v2253_v60, %v192_v1  ;;  %v1015_v10 = vmul.f32 %v2196_v8, %v178_v44  ;;  %s68_s21 = smul.f32 0.55, %s2236_s20 }
  0x2f   :  { %v1207_v2 = vadd.f32 %v1205_v58, %v1202_v57  ;;  %v403_v9 = vmul.f32 %v2244_v55, %v2258_v6  ;;  %v1215_v13 = vmul.f32 %v2253_v60, %v2258_v6  ;;  %v179_v14 = vmul.f32 %v178_v44, %v2174_v0  ;;  %s70_s26 = smul.f32 0.55, %s2246_s25 }
  0x30   :  { %v400_v3 = vadd.f32 %v398_v63, %v395_v62  ;;  %v2272_v17 = vstv %s64_s13  ;;  %v2277_v21 = vstv %s66_s15  ;;  %v1021_v25 = vmul.f32 %v2196_v8, %v185_v51  ;;  %s72_s13 = smul.f32 0.55, %s2261_s18  ;;  %s2297_s15 = sld [smem:[#allocation3 + $0x12]] }
  0x31   :  { %1011 = vrot.lane.b32.xlu1 %v1009_v56, %s2052_s19  ;;  %v1212_v11 = vadd.f32 %v1210_v4, %v1207_v2  ;;  %v405_v16 = vrot.slane %v403_v9, 1  ;;  %v1217_v19 = vrot.slane %v1215_v13, 1  ;;  %v408_v20 = vmul.f32 %v2244_v55, %v2272_v17 }
  0x32   :  { %174 = vrot.lane.b32.xlu0 %v172_v61, %s2052_s19  ;;  %v402_v15 = vadd.f32 %v401_v5, %v400_v3  ;;  %v1220_v23 = vmul.f32 %v2253_v60, %v2272_v17  ;;  %v413_v24 = vmul.f32 %v2244_v55, %v2277_v21  ;;  %v1225_v28 = vmul.f32 %v2253_v60, %v2277_v21  ;;  %s74_s19 = smul.f32 0.55, %s2266_s22 }
  0x33   :  { %v1214_v18 = vadd.f32 %v1213_v7, %v1212_v11  ;;  %v410_v27 = vrot.slane %v408_v20, 2  ;;  %v186_v29 = vmul.f32 %v185_v51, %v2174_v0  ;;  %v2292_v32 = vstv %s68_s21  ;;  %s2307_s21 = sld [smem:[#allocation3 + $0x13]] }
  0x34   :  { %v407_v22 = vadd.f32 %v405_v16, %v402_v15  ;;  %v1222_v30 = vrot.slane %v1220_v23, 2  ;;  %v415_v31 = vrot.slane %v413_v24, 3  ;;  %v1227_v34 = vrot.slane %v1225_v28, 3 }
  0x35   :  { %1017 = vrot.lane.b32.xlu1 %v1015_v10, %s2053_s27  ;;  %v1219_v26 = vadd.f32 %v1217_v19, %v1214_v18  ;;  %v418_v35 = vmul.f32 %v2244_v55, %v2292_v32  ;;  %v1230_v37 = vmul.f32 %v2253_v60, %v2292_v32  ;;  %v2301_v38 = vstv %s70_s26  ;;  %s76_s26 = smul.f32 0.55, %s2279_s23 }
  0x36   :  { %181 = vrot.lane.b32.xlu0 %v179_v14, %s2053_s27  ;;  %v412_v33 = vadd.f32 %v410_v27, %v407_v22  ;;  %s2054_s27 = smov 121   ;;  %v1027_v39 = vmul.f32 %v2196_v8, %v192_v1  ;;  %v423_v42 = vmul.f32 %v2244_v55, %v2301_v38  ;;  %v193_v43 = vmul.f32 %v192_v1, %v2174_v0  ;;  %s80_s6 = smul.f32 0.55, %s2297_s15 }
  0x37   :  { %v1224_v36 = vadd.f32 %v1222_v30, %v1219_v26  ;;  %v420_v41 = vrot.slane %v418_v35, 4  ;;  %v1232_v45 = vrot.slane %v1230_v37, 4  ;;  %v1235_v46 = vmul.f32 %v2253_v60, %v2301_v38 }
  0x38   :  { %v417_v40 = vadd.f32 %v415_v31, %v412_v33  ;;  %v425_v48 = vrot.slane %v423_v42, 5  ;;  %v2312_v49 = vstv %s72_s13  ;;  %v2317_v53 = vstv %s74_s19  ;;  %s78_s19 = smul.f32 0.55, %s2289_s28  ;;  %s2056_s13 = smov 119  }
  0x39   :  { %1023 = vrot.lane.b32.xlu1 %v1021_v25, %s2054_s27  ;;  %v1229_v44 = vadd.f32 %v1227_v34, %v1224_v36  ;;  %v1237_v51 = vrot.slane %v1235_v46, 5  ;;  %v428_v52 = vmul.f32 %v2244_v55, %v2312_v49  ;;  %v1033_v54 = vmul.f32 %v2196_v8, %v2258_v6  ;;  %s82_s0 = smul.f32 0.55, %s2307_s21 }
  0x3a   :  { %188 = vrot.lane.b32.xlu0 %v186_v29, %s2054_s27  ;;  %v422_v47 = vadd.f32 %v420_v41, %v417_v40  ;;  %s2319_s27 = sld [smem:[#allocation3 + $0x14]]  ;;  %v1240_v57 = vmul.f32 %v2253_v60, %v2312_v49  ;;  %v433_v58 = vmul.f32 %v2244_v55, %v2317_v53  ;;  %v200_v61 = vmul.f32 %v2258_v6, %v2174_v0  ;;  %v2342_v55 = vld [vmem:[%s3152_s3 + $0x30] sm:$0xff] }
  0x3b   :  { %v1234_v50 = vadd.f32 %v1232_v45, %v1229_v44  ;;  %v430_v63 = vrot.slane %v428_v52, 6  ;;  %v1245_v1 = vmul.f32 %v2253_v60, %v2317_v53  ;;  %v2344_v5 = vstv %s76_s26 }
  0x3c   :  { %v427_v56 = vadd.f32 %v425_v48, %v422_v47  ;;  %v1242_v2 = vrot.slane %v1240_v57, 6  ;;  %v435_v4 = vrot.slane %v433_v58, 7  ;;  %v438_v6 = vmul.f32 %v2330_v59, %v2344_v5 }
  0x3d   :  { %1029 = vrot.lane.b32.xlu1 %v1027_v39, %s2055_s7  ;;  %v1239_v62 = vadd.f32 %v1237_v51, %v1234_v50  ;;  %v1247_v7 = vrot.slane %v1245_v1, 7  ;;  %v1039_v60 = vmul.f32 %v2196_v8, %v2272_v17  ;;  %v1250_v10 = vmul.f32 %v2342_v55, %v2344_v5 }
  0x3e   :  { %195 = vrot.lane.b32.xlu0 %v193_v43, %s2055_s7  ;;  %v432_v3 = vadd.f32 %v430_v63, %v427_v56  ;;  %s2349_s7 = sld [smem:[#allocation3 + $0x16]]  ;;  %v2355_v11 = vstv %s78_s19  ;;  %v207_v13 = vmul.f32 %v2272_v17, %v2174_v0  ;;  %v2366_v19 = vstv %s80_s6  ;;  %s2057_s19 = smov 118  }
  0x3f   :  { %v1244_v9 = vadd.f32 %v1242_v2, %v1239_v62  ;;  %v440_v15 = vmul.f32 %v2330_v59, %v2355_v11  ;;  %v1252_v16 = vmul.f32 %v2342_v55, %v2355_v11  ;;  %v445_v24 = vmul.f32 %v2330_v59, %v2366_v19  ;;  %s86_s6 = smul.f32 0.55, %s2333_s4 }
  0x40   :  { %3186 = sst [smem:[#allocation12_spill]] %s2319_s27  ;;  %v437_v14 = vadd.f32 %v435_v4, %v432_v3  ;;  %s84_s26 = smul.f32 0.55, %s2319_s27  ;;  %v1045_v17 = vmul.f32 %v2196_v8, %v2277_v21  ;;  %v1257_v26 = vmul.f32 %v2342_v55, %v2366_v19  ;;  %v2375_v27 = vstv %s82_s0 }
  0x41   :  { %1035 = vrot.lane.b32.xlu1 %v1033_v54, %s2056_s13  ;;  %v1249_v18 = vadd.f32 %v1247_v7, %v1244_v9  ;;  %v442_v22 = vrot.slane %v440_v15, 1  ;;  %v1254_v23 = vrot.slane %v1252_v16, 1  ;;  %v214_v28 = vmul.f32 %v2277_v21, %v2174_v0  ;;  %s2384_s27 = sld [smem:[#allocation3 + $0x19]] }
  0x42   :  { %202 = vrot.lane.b32.xlu0 %v200_v61, %s2056_s13  ;;  %v439_v20 = vadd.f32 %v438_v6, %v437_v14  ;;  %s2378_s13 = sld [smem:[#allocation3 + $0x18]]  ;;  %v447_v30 = vrot.slane %v445_v24, 2  ;;  %v450_v31 = vmul.f32 %v2330_v59, %v2375_v27  ;;  %v1259_v34 = vrot.slane %v1257_v26, 2  ;;  %v2425_v6 = vld [vmem:[%s3152_s3 + $0x18] sm:$0xff] }
  0x43   :  { %v1251_v25 = vadd.f32 %v1250_v10, %v1249_v18  ;;  %v1262_v35 = vmul.f32 %v2342_v55, %v2375_v27  ;;  %v1051_v36 = vmul.f32 %v2196_v8, %v2292_v32  ;;  %v2390_v40 = vstv %s84_s26  ;;  %s90_s26 = smul.f32 0.55, %s2364_s5  ;;  %s2063_s5 = smov 112  }
  0x44   :  { %3187 = sst [smem:[#allocation13_spill]] %s2349_s7  ;;  %v444_v29 = vadd.f32 %v442_v22, %v439_v20  ;;  %v452_v39 = vrot.slane %v450_v31, 3  ;;  %s88_s0 = smul.f32 0.55, %s2349_s7  ;;  %v455_v42 = vmul.f32 %v2330_v59, %v2390_v40  ;;  %v2395_v43 = vstv %s86_s6 }
  0x45   :  { %1041 = vrot.lane.b32.xlu1 %v1039_v60, %s2057_s19  ;;  %v1256_v33 = vadd.f32 %v1254_v23, %v1251_v25  ;;  %v1264_v41 = vrot.slane %v1262_v35, 3  ;;  %v221_v44 = vmul.f32 %v2292_v32, %v2174_v0  ;;  %v1267_v46 = vmul.f32 %v2342_v55, %v2390_v40  ;;  %s2059_s6 = smov 116   ;;  %s2061_s7 = smov 114  }
  0x46   :  { %209 = vrot.lane.b32.xlu0 %v207_v13, %s2057_s19  ;;  %v449_v37 = vadd.f32 %v447_v30, %v444_v29  ;;  %s2058_s19 = smov 117   ;;  %v460_v47 = vmul.f32 %v2330_v59, %v2395_v43  ;;  %v457_v50 = vrot.slane %v455_v42, 4  ;;  %v1272_v51 = vmul.f32 %v2342_v55, %v2395_v43  ;;  %v2434_v13 = vld [vmem:[%s3152_s3 + $0x38] sm:$0xff] }
  0x47   :  { %3190 = sst [smem:[#allocation16_spill]] %s2384_s27  ;;  %v1261_v21 = vadd.f32 %v1259_v34, %v1256_v33  ;;  %v1269_v52 = vrot.slane %v1267_v46, 4  ;;  %v2406_v56 = vstv %s88_s0  ;;  %v1057_v32 = vmul.f32 %v2196_v8, %v2301_v38  ;;  %s94_s0 = smul.f32 0.55, %s2384_s27 }
  0x48   :  { %3189 = sst [smem:[#allocation15_spill]] %s2378_s13  ;;  %v454_v45 = vadd.f32 %v452_v39, %v449_v37  ;;  %v462_v54 = vrot.slane %v460_v47, 5  ;;  %v1274_v58 = vrot.slane %v1272_v51, 5  ;;  %v465_v61 = vmul.f32 %v2330_v59, %v2406_v56  ;;  %s2060_s27 = smov 115  }
  0x49   :  { %1047 = vrot.lane.b32.xlu1 %v1045_v17, %s2058_s19  ;;  %v1266_v48 = vadd.f32 %v1264_v41, %v1261_v21  ;;  %v228_v62 = vmul.f32 %v2301_v38, %v2174_v0  ;;  %v1277_v1 = vmul.f32 %v2342_v55, %v2406_v56  ;;  %v2417_v2 = vstv %s90_s26  ;;  %s2068_s26 = smov 109  }
  0x4a   :  { %216 = vrot.lane.b32.xlu0 %v214_v28, %s2058_s19  ;;  %v459_v57 = vadd.f32 %v457_v50, %v454_v45  ;;  %s92_s19 = smul.f32 0.55, %s2378_s13  ;;  %v467_v3 = vrot.slane %v465_v61, 6  ;;  %v470_v7 = vmul.f32 %v2330_v59, %v2417_v2  ;;  %v1063_v38 = vmul.f32 %v2196_v8, %v2312_v49  ;;  %s2074_s13 = smov 103  }
  0x4b   :  { %v1271_v63 = vadd.f32 %v1269_v52, %v1266_v48  ;;  %v1279_v9 = vrot.slane %v1277_v1, 6  ;;  %v1282_v10 = vmul.f32 %v2342_v55, %v2417_v2  ;;  %v235_v59 = vmul.f32 %v2312_v49, %v2174_v0 }
  0x4c   :  { %v464_v4 = vadd.f32 %v462_v54, %v459_v57  ;;  %v472_v15 = vrot.slane %v470_v7, 7  ;;  %v2438_v16 = vstv %s92_s19  ;;  %v2442_v22 = vstv %s94_s0  ;;  %s2066_s19 = smov 111   ;;  %s2067_s0 = smov 110  }
  0x4d   :  { %1053 = vrot.lane.b32.xlu1 %v1051_v36, %s2059_s6  ;;  %v1276_v60 = vadd.f32 %v1274_v58, %v1271_v63  ;;  %v1284_v20 = vrot.slane %v1282_v10, 7  ;;  %v475_v55 = vmul.f32 %v2425_v6, %v2438_v16  ;;  %v1287_v24 = vmul.f32 %v2434_v13, %v2438_v16 }
  0x4e   :  { %223 = vrot.lane.b32.xlu0 %v221_v44, %s2059_s6  ;;  %v469_v14 = vadd.f32 %v467_v3, %v464_v4  ;;  %v477_v17 = vmul.f32 %v2425_v6, %v2442_v22  ;;  %v1289_v25 = vmul.f32 %v2434_v13, %v2442_v22  ;;  %v1069_v26 = vmul.f32 %v2196_v8, %v2317_v53  ;;  %s2069_s6 = smov 108  }
  0x4f   :  { %v1281_v18 = vadd.f32 %v1279_v9, %v1276_v60  ;;  %v242_v30 = vmul.f32 %v2317_v53, %v2174_v0  ;;  %v1075_v36 = vmul.f32 %v2196_v8, %v2344_v5  ;;  %v249_v37 = vmul.f32 %v2344_v5, %v2174_v0 }
  0x50   :  { %v474_v23 = vadd.f32 %v472_v15, %v469_v14  ;;  %v479_v29 = vrot.slane %v477_v17, 1  ;;  %v1291_v33 = vrot.slane %v1289_v25, 1  ;;  %v1081_v53 = vmul.f32 %v2196_v8, %v2355_v11 }
  0x51   :  { %1059 = vrot.lane.b32.xlu1 %v1057_v32, %s2060_s27  ;;  %v1286_v49 = vadd.f32 %v1284_v20, %v1281_v18  ;;  %v256_v39 = vmul.f32 %v2355_v11, %v2174_v0  ;;  %v2064_v21 = vmov 0   ;;  %v2065_v41 = vmov 1  }
  0x52   :  { %230 = vrot.lane.b32.xlu0 %v228_v62, %s2060_s27  ;;  %v476_v28 = vadd.f32 %v475_v55, %v474_v23  ;;  %s2062_s27 = smov 113   ;;  %1912 = vset.pattern.permute.xlu1 %v2064_v21  ;;  %v1087_v5 = vmul.f32 %v2196_v8, %v2366_v19  ;;  %v263_v42 = vmul.f32 %v2366_v19, %v2174_v0  ;;  %v2081_v17 = vmov 3  }
  0x53   :  { %v1288_v31 = vadd.f32 %v1287_v24, %v1286_v49  ;;  %1914 = vset.pattern.permute.xlu0 %v2065_v41  ;;  %v1093_v11 = vmul.f32 %v2196_v8, %v2375_v27  ;;  %v270_v44 = vmul.f32 %v2375_v27, %v2174_v0  ;;  %v1099_v45 = vmul.f32 %v2196_v8, %v2390_v40 }
  0x54   :  { %v2454_v34 = vadd.f32 %v479_v29, %v476_v28  ;;  %v277_v46 = vmul.f32 %v2390_v40, %v2174_v0  ;;  %v1105_v19 = vmul.f32 %v2196_v8, %v2395_v43  ;;  %v284_v47 = vmul.f32 %v2395_v43, %v2174_v0 }
  0x55   :  { %1065 = vrot.lane.b32.xlu1 %v1063_v38, %s2061_s7  ;;  %v2456_v35 = vadd.f32 %v1291_v33, %v1288_v31  ;;  %v1111_v27 = vmul.f32 %v2196_v8, %v2406_v56  ;;  %v291_v48 = vmul.f32 %v2406_v56, %v2174_v0  ;;  %v1117_v40 = vmul.f32 %v2196_v8, %v2417_v2 }
  0x56   :  { %237 = vrot.lane.b32.xlu0 %v235_v59, %s2061_s7  ;;  %s2070_s7 = smov 107   ;;  %v298_v43 = vmul.f32 %v2417_v2, %v2174_v0  ;;  %v1123_v50 = vmul.f32 %v2196_v8, %v2438_v16  ;;  %v305_v51 = vmul.f32 %v2438_v16, %v2174_v0  ;;  %v1129_v52 = vmul.f32 %v2196_v8, %v2442_v22 }
  0x57   :  { %v312_v54 = vmul.f32 %v2442_v22, %v2174_v0  ;;  %v2083_v29 = vmov 5  }
  0x59   :  { %1071 = vrot.lane.b32.xlu1 %v1069_v26, %s2062_s27  ;;  %v2082_v26 = vmov 2  }
  0x5a   :  { %244 = vrot.lane.b32.xlu0 %v242_v30, %s2062_s27  ;;  %s2488_s27 = sld [smem:[#allocation3 + $0x1a]] }
  0x5d   :  { %1077 = vrot.lane.b32.xlu1 %v1075_v36, %s2063_s5  ;;  %v2084_v36 = vmov 6  }
  0x5e   :  { %251 = vrot.lane.b32.xlu0 %v249_v37, %s2063_s5  ;;  %s2071_s5 = smov 106  }
  0x60   :  { %3191 = sst [smem:[#allocation17_spill]] %s2488_s27 }
  0x61   :  { %1083 = vrot.lane.b32.xlu1 %v1081_v53, %s2066_s19 }
  0x62   :  { %258 = vrot.lane.b32.xlu0 %v256_v39, %s2066_s19  ;;  %s2494_s19 = sld [smem:[#allocation3 + $0x1b]]  ;;  %v2085_v39 = vmov 8  }
  0x65   :  { %1089 = vrot.lane.b32.xlu1 %v1087_v5, %s2067_s0 }
  0x66   :  { %265 = vrot.lane.b32.xlu0 %v263_v42, %s2067_s0  ;;  %s2072_s0 = smov 105   ;;  %v2086_v42 = vmov 4  }
  0x68   :  { %3192 = sst [smem:[#allocation18_spill]] %s2494_s19 }
  0x69   :  { %1095 = vrot.lane.b32.xlu1 %v1093_v11, %s2068_s26  ;;  %v2087_v11 = vmov 9  }
  0x6a   :  { %272 = vrot.lane.b32.xlu0 %v270_v44, %s2068_s26  ;;  %s96_s26 = smul.f32 0.55, %s2488_s27  ;;  %s2519_s27 = sld [smem:[#allocation3 + $0x1e]] }
  0x6c   :  { %v2507_v56 = vstv %s96_s26  ;;  %s2075_s26 = smov 102  }
  0x6d   :  { %1101 = vrot.lane.b32.xlu1 %v1099_v45, %s2069_s6  ;;  %v1135_v32 = vmul.f32 %v2196_v8, %v2507_v56  ;;  %v319_v57 = vmul.f32 %v2507_v56, %v2174_v0 }
  0x6e   :  { %279 = vrot.lane.b32.xlu0 %v277_v46, %s2069_s6  ;;  %s2501_s6 = sld [smem:[#allocation3 + $0x1c]] }
  0x71   :  { %1107 = vrot.lane.b32.xlu1 %v1105_v19, %s2070_s7 }
  0x72   :  { %286 = vrot.lane.b32.xlu0 %v284_v47, %s2070_s7  ;;  %s2073_s7 = smov 104  }
  0x74   :  { %3193 = sst [smem:[#allocation19_spill]] %s2501_s6 }
  0x75   :  { %1113 = vrot.lane.b32.xlu1 %v1111_v27, %s2071_s5 }
  0x76   :  { %293 = vrot.lane.b32.xlu0 %v291_v48, %s2071_s5  ;;  %s98_s5 = smul.f32 0.55, %s2494_s19  ;;  %s2528_s19 = sld [smem:[#allocation3 + $0x1f]] }
  0x78   :  { %v2516_v58 = vstv %s98_s5  ;;  %s2076_s5 = smov 101  }
  0x79   :  { %1119 = vrot.lane.b32.xlu1 %v1117_v40, %s2072_s0  ;;  %v1141_v61 = vmul.f32 %v2196_v8, %v2516_v58  ;;  %v326_v62 = vmul.f32 %v2516_v58, %v2174_v0 }
  0x7a   :  { %300 = vrot.lane.b32.xlu0 %v298_v43, %s2072_s0  ;;  %s2510_s0 = sld [smem:[#allocation3 + $0x1d]] }
  0x7d   :  { %1125 = vrot.lane.b32.xlu1 %v1123_v50, %s2073_s7  ;;  %v2088_v50 = vmov 7  }
  0x7e   :  { %307 = vrot.lane.b32.xlu0 %v305_v51, %s2073_s7  ;;  %s100_s7 = smul.f32 0.55, %s2501_s6  ;;  %s2077_s6 = smov 100   ;;  %v983_v51 = vmul.f32 %v2196_v8, %v2204_v12 }
  0x80   :  { %3194 = sst [smem:[#allocation20_spill]] %s2510_s0  ;;  %v2525_v63 = vstv %s100_s7  ;;  %s106_s7 = smul.f32 0.55, %s2528_s19 }
  0x81   :  { %1131 = vrot.lane.b32.xlu1 %v1129_v52, %s2074_s13  ;;  %v1147_v1 = vmul.f32 %v2196_v8, %v2525_v63  ;;  %v333_v2 = vmul.f32 %v2525_v63, %v2174_v0 }
  0x82   :  { %314 = vrot.lane.b32.xlu0 %v312_v54, %s2074_s13  ;;  %s102_s13 = smul.f32 0.55, %s2510_s0  ;;  %s2078_s0 = smov 99   ;;  %v2548_v10 = vstv %s106_s7  ;;  %v141_v54 = vmul.f32 %v2204_v12, %v2174_v0 }
  0x83   :  { %v1165_v15 = vmul.f32 %v2196_v8, %v2548_v10  ;;  %v354_v16 = vmul.f32 %v2548_v10, %v2174_v0  ;;  %s113_s7 = smul.f32 0.45, %s2182_s17 }
  0x84   :  { %v2534_v4 = vstv %s102_s13 }
  0x85   :  { %1137 = vrot.lane.b32.xlu1 %v1135_v32, %s2075_s26  ;;  %v1153_v3 = vmul.f32 %v2196_v8, %v2534_v4  ;;  %v340_v7 = vmul.f32 %v2534_v4, %v2174_v0 }
  0x86   :  { %321 = vrot.lane.b32.xlu0 %v319_v57, %s2075_s26  ;;  %s104_s26 = smul.f32 0.55, %s2519_s27 }
  0x88   :  { %v2541_v38 = vstv %s104_s26  ;;  %s111_s26 = smul.f32 0.45, %s2166_s9 }
  0x89   :  { %1143 = vrot.lane.b32.xlu1 %v1141_v61, %s2076_s5  ;;  %v1159_v60 = vmul.f32 %v2196_v8, %v2541_v38  ;;  %v347_v9 = vmul.f32 %v2541_v38, %v2174_v0  ;;  %s114_s9 = smul.f32 0.45, %s2199_s24 }
  0x8a   :  { %328 = vrot.lane.b32.xlu0 %v326_v62, %s2076_s5  ;;  %s3218_s5 = sld [smem:[#allocation20_spill]] }
  0x8d   :  { %1149 = vrot.lane.b32.xlu1 %v1147_v1, %s2077_s6 }
  0x8e   :  { %335 = vrot.lane.b32.xlu0 %v333_v2, %s2077_s6  ;;  %s2079_s6 = smov 98  }
  0x91   :  { %1155 = vrot.lane.b32.xlu1 %v1153_v3, %s2078_s0 }
  0x92   :  { %342 = vrot.lane.b32.xlu0 %v340_v7, %s2078_s0  ;;  %s2080_s0 = smov 97  }
  0x93   :  { %v2550_v59 = vpop.permute.xlu1 %153 }
  0x94   :  { %v2552_v14 = vpop.permute.xlu0 %146 }
  0x95   :  { %1161 = vrot.lane.b32.xlu1 %v1159_v60, %s2079_s6  ;;  %v149_v62 = vadd.f32 %v2552_v14, %v141_v54 }
  0x96   :  { %349 = vrot.lane.b32.xlu0 %v347_v9, %s2079_s6  ;;  %s108_s6 = smul.f32 0.45, %s2160_s30  ;;  %s3219_s30 = sld [smem:[#allocation28_spill]] }
  0x97   :  { %v2558_v18 = vpop.permute.xlu1 %993  ;;  %v156_v7 = vadd.f32 %v2550_v59, %v149_v62 }
  0x98   :  { %v2560_v20 = vpop.permute.xlu0 %987 }
  0x99   :  { %1167 = vrot.lane.b32.xlu1 %v1165_v15, %s2080_s0  ;;  %v990_v57 = vadd.f32 %v2560_v20, %v983_v51 }
  0x9a   :  { %356 = vrot.lane.b32.xlu0 %v354_v16, %s2080_s0  ;;  %s109_s0 = smul.f32 0.45, %s2158_s29 }
  0x9b   :  { %v2562_v55 = vpop.permute.xlu1 %999  ;;  %v996_v2 = vadd.f32 %v2558_v18, %v990_v57  ;;  %s138_s29 = smul.f32 0.45, %s2528_s19 }
  0x9c   :  { %v2564_v22 = vpop.permute.xlu0 %160 }
  0x9d   :  { %1336 = vperm.xlu1 %1912, %v2196_v8   ;;  %v1002_v12 = vadd.f32 %v2562_v55, %v996_v2  ;;  %v163_v15 = vadd.f32 %v2564_v22, %v156_v7 }
  0x9e   :  { %1348 = vperm.xlu0 %1914, %v2196_v8  }
  0x9f   :  { %v2568_v23 = vpop.permute.xlu1 %1005 }
  0xa0   :  { %v2570_v24 = vpop.permute.xlu0 %167  ;;  %v1008_v16 = vadd.f32 %v2568_v23, %v1002_v12 }
  0xa1   :  { %1913 = vset.pattern.permute.xlu1 %v2065_v41  ;;  %v170_v14 = vadd.f32 %v2570_v24, %v163_v15 }
  0xa2   :  { %537 = vperm.xlu1 %1913, %v2174_v0   ;;  %1917 = vset.pattern.permute.xlu0 %v2081_v17 }
  0xa3   :  { %v2574_v49 = vpop.permute.xlu1 %1011  ;;  %1372 = vperm.xlu0 %1917, %v2196_v8  }
  0xa4   :  { %v2577_v25 = vpop.permute.xlu0 %174  ;;  %v1014_v20 = vadd.f32 %v2574_v49, %v1008_v16 }
  0xa6   :  { %1915 = vset.pattern.permute.xlu1 %v2082_v26  ;;  %v177_v26 = vadd.f32 %v2577_v25, %v170_v14 }
  0xa7   :  { %v2579_v28 = vpop.permute.xlu1 %1017  ;;  %550 = vperm.xlu1 %1915, %v2174_v0   ;;  %1919 = vset.pattern.permute.xlu0 %v2083_v29 }
  0xa8   :  { %v2582_v30 = vpop.permute.xlu0 %181  ;;  %589 = vperm.xlu0 %1919, %v2174_v0   ;;  %v1020_v59 = vadd.f32 %v2579_v28, %v1014_v20 }
  0xa9   :  { %v184_v55 = vadd.f32 %v2582_v30, %v177_v26 }
  0xab   :  { %v2585_v31 = vpop.permute.xlu1 %1023  ;;  %1360 = vperm.xlu1 %1915, %v2196_v8  }
  0xac   :  { %v2588_v33 = vpop.permute.xlu0 %188  ;;  %1922 = vset.pattern.permute.xlu0 %v2084_v36  ;;  %v1026_v23 = vadd.f32 %v2585_v31, %v1020_v59 }
  0xad   :  { %1408 = vperm.xlu0 %1922, %v2196_v8   ;;  %v191_v24 = vadd.f32 %v2588_v33, %v184_v55 }
  0xaf   :  { %v2591_v37 = vpop.permute.xlu1 %1029  ;;  %1916 = vset.pattern.permute.xlu1 %v2081_v17 }
  0xb0   :  { %v2593_v53 = vpop.permute.xlu0 %195  ;;  %563 = vperm.xlu1 %1916, %v2174_v0  }
  0xb1   :  { %1924 = vset.pattern.permute.xlu0 %v2085_v39  ;;  %v198_v49 = vadd.f32 %v2593_v53, %v191_v24 }
  0xb2   :  { %628 = vperm.xlu0 %1924, %v2174_v0  }
  0xb3   :  { %v2597_v41 = vpop.permute.xlu1 %1035 }
  0xb4   :  { %v2599_v5 = vpop.permute.xlu0 %202  ;;  %1918 = vset.pattern.permute.xlu1 %v2086_v42 }
  0xb5   :  { %576 = vperm.xlu1 %1918, %v2174_v0   ;;  %v205_v30 = vadd.f32 %v2599_v5, %v198_v49 }
  0xb6   :  { %1927 = vset.pattern.permute.xlu0 %v2087_v11 }
  0xb7   :  { %v1042_v44 = vpop.permute.xlu1 %1041  ;;  %1444 = vperm.xlu0 %1927, %v2196_v8  }
  0xb8   :  { %v210_v45 = vpop.permute.xlu0 %209 }
  0xb9   :  { %1384 = vperm.xlu1 %1918, %v2196_v8  }
  0xbb   :  { %v1048_v46 = vpop.permute.xlu1 %1047  ;;  %1928 = vset.pattern.permute.xlu0 %v2064_v21 }
  0xbc   :  { %v217_v19 = vpop.permute.xlu0 %216  ;;  %524 = vperm.xlu0 %1928, %v2174_v0  }
  0xbd   :  { %1920 = vset.pattern.permute.xlu1 %v2083_v29  ;;  %v2089_v29 = vmov 10  }
  0xbe   :  { %1396 = vperm.xlu1 %1920, %v2196_v8  }
  0xbf   :  { %v1054_v47 = vpop.permute.xlu1 %1053 }
  0xc0   :  { %v224_v27 = vpop.permute.xlu0 %223 }
  0xc2   :  { %1921 = vset.pattern.permute.xlu1 %v2084_v36 }
  0xc3   :  { %v1060_v48 = vpop.permute.xlu1 %1059  ;;  %602 = vperm.xlu1 %1921, %v2174_v0  }
  0xc4   :  { %v231_v40 = vpop.permute.xlu0 %230 }
  0xc7   :  { %v1066_v43 = vpop.permute.xlu1 %1065  ;;  %1923 = vset.pattern.permute.xlu1 %v2088_v50  ;;  %v212_v50 = vadd.f32 %v210_v45, %v205_v30 }
  0xc8   :  { %v238_v52 = vpop.permute.xlu0 %237  ;;  %615 = vperm.xlu1 %1923, %v2174_v0  }
  0xc9   :  { %v219_v33 = vadd.f32 %v217_v19, %v212_v50 }
  0xcb   :  { %v1072_v32 = vpop.permute.xlu1 %1071 }
  0xcc   :  { %v245_v61 = vpop.permute.xlu0 %244  ;;  %1420 = vperm.xlu1 %1923, %v2196_v8  }
  0xcf   :  { %v1078_v1 = vpop.permute.xlu1 %1077 }
  0xd0   :  { %v252_v3 = vpop.permute.xlu0 %251  ;;  %1925 = vset.pattern.permute.xlu1 %v2085_v39  ;;  %v1032_v39 = vadd.f32 %v2591_v37, %v1026_v23  ;;  %v226_v37 = vadd.f32 %v224_v27, %v219_v33 }
  0xd1   :  { %1432 = vperm.xlu1 %1925, %v2196_v8  }
  0xd2   :  { %v1038_v25 = vadd.f32 %v2597_v41, %v1032_v39  ;;  %v233_v2 = vadd.f32 %v231_v40, %v226_v37 }
  0xd3   :  { %v1084_v60 = vpop.permute.xlu1 %1083 }
  0xd4   :  { %v259_v9 = vpop.permute.xlu0 %258  ;;  %v240_v7 = vadd.f32 %v238_v52, %v233_v2 }
  0xd5   :  { %1926 = vset.pattern.permute.xlu1 %v2087_v11  ;;  %v1044_v11 = vadd.f32 %v1042_v44, %v1038_v25 }
  0xd6   :  { %641 = vperm.xlu1 %1926, %v2174_v0   ;;  %v247_v5 = vadd.f32 %v245_v61, %v240_v7 }
  0xd7   :  { %v1090_v18 = vpop.permute.xlu1 %1089  ;;  %v1050_v31 = vadd.f32 %v1048_v46, %v1044_v11 }
  0xd8   :  { %v266_v17 = vpop.permute.xlu0 %265  ;;  %v254_v45 = vadd.f32 %v252_v3, %v247_v5 }
  0xd9   :  { %v1056_v54 = vadd.f32 %v1054_v47, %v1050_v31 }
  0xda   :  { %1929 = vset.pattern.permute.xlu1 %v2089_v29  ;;  %v261_v46 = vadd.f32 %v259_v9, %v254_v45 }
  0xdb   :  { %v1096_v22 = vpop.permute.xlu1 %1095  ;;  %654 = vperm.xlu1 %1929, %v2174_v0   ;;  %v1062_v53 = vadd.f32 %v1060_v48, %v1056_v54 }
  0xdc   :  { %v273_v36 = vpop.permute.xlu0 %272  ;;  %v268_v19 = vadd.f32 %v266_v17, %v261_v46  ;;  %v487_v17 = vmul.f32 %v2425_v6, %v2516_v58 }
  0xde   :  { %v275_v48 = vadd.f32 %v273_v36, %v268_v19  ;;  %v489_v30 = vrot.slane %v487_v17, 3  ;;  %v2090_v19 = vmov 11   ;;  %v2103_v17 = vmov 26  }
  0xdf   :  { %v1102_v42 = vpop.permute.xlu1 %1101  ;;  %1456 = vperm.xlu1 %1929, %v2196_v8   ;;  %v1068_v8 = vadd.f32 %v1066_v43, %v1062_v53 }
  0xe0   :  { %v280_v28 = vpop.permute.xlu0 %279 }
  0xe1   :  { %v1074_v12 = vadd.f32 %v1072_v32, %v1068_v8  ;;  %v282_v40 = vadd.f32 %v280_v28, %v275_v48  ;;  %v1294_v32 = vmul.f32 %v2434_v13, %v2507_v56  ;;  %v2092_v48 = vmov 14  }
  0xe3   :  { %v1108_v0 = vpop.permute.xlu1 %1107  ;;  %1930 = vset.pattern.permute.xlu1 %v2064_v21  ;;  %v1080_v44 = vadd.f32 %v1078_v1, %v1074_v12  ;;  %v482_v1 = vmul.f32 %v2425_v6, %v2507_v56  ;;  %v1296_v23 = vrot.slane %v1294_v32, 2  ;;  %v1304_v56 = vmul.f32 %v2434_v13, %v2525_v63 }
  0xe4   :  { %v287_v51 = vpop.permute.xlu0 %286  ;;  %v2098_v32 = vmov 20  }
  0xe5   :  { %v1086_v14 = vadd.f32 %v1084_v60, %v1080_v44  ;;  %v289_v61 = vadd.f32 %v287_v51, %v282_v40  ;;  %v1299_v60 = vmul.f32 %v2434_v13, %v2516_v58  ;;  %v484_v24 = vrot.slane %v482_v1, 2 }
  0xe6   :  { %v1298_v58 = vadd.f32 %v1296_v23, %v2456_v35  ;;  %v2094_v40 = vmov 15   ;;  %v2100_v1 = vmov 23  }
  0xe7   :  { %v1114_v57 = vpop.permute.xlu1 %1113  ;;  %v1092_v20 = vadd.f32 %v1090_v18, %v1086_v14  ;;  %v1301_v49 = vrot.slane %v1299_v60, 3  ;;  %v486_v51 = vadd.f32 %v484_v24, %v2454_v34  ;;  %v2101_v60 = vmov 24  }
  0xe8   :  { %v294_v62 = vpop.permute.xlu0 %293 }
  0xe9   :  { %v1098_v27 = vadd.f32 %v1096_v22, %v1092_v20  ;;  %v296_v9 = vadd.f32 %v294_v62, %v289_v61  ;;  %v1303_v37 = vadd.f32 %v1301_v49, %v1298_v58  ;;  %v491_v8 = vadd.f32 %v489_v30, %v486_v51 }
  0xea   :  { %v2099_v61 = vmov 21   ;;  %v2107_v49 = vmov 22  }
  0xeb   :  { %v1120_v41 = vpop.permute.xlu1 %1119  ;;  %v1104_v59 = vadd.f32 %v1102_v42, %v1098_v27  ;;  %v492_v42 = vmul.f32 %v2425_v6, %v2525_v63  ;;  %v2664_v27 = vld [vmem:[%s3151_s2 + $0x8] sm:$0xff] }
  0xec   :  { %v301_v15 = vpop.permute.xlu0 %300 }
  0xed   :  { %v1110_v52 = vadd.f32 %v1108_v0, %v1104_v59  ;;  %v303_v36 = vadd.f32 %v301_v15, %v296_v9  ;;  %v494_v53 = vrot.slane %v492_v42, 4  ;;  %v2093_v59 = vmov 13  }
  0xef   :  { %v1126_v16 = vpop.permute.xlu1 %1125  ;;  %v1116_v3 = vadd.f32 %v1114_v57, %v1110_v52  ;;  %v1306_v57 = vrot.slane %v1304_v56, 4  ;;  %v2653_v12 = vadd.f32 %v494_v53, %v491_v8  ;;  %v2096_v52 = vmov 18  }
  0xf0   :  { %v308_v21 = vpop.permute.xlu0 %307  ;;  %v3171_v56 = vmov 31   ;;  %v1309_v53 = vmul.f32 %v2434_v13, %v2534_v4 }
  0xf1   :  { %v1122_v55 = vadd.f32 %v1120_v41, %v1116_v3  ;;  %v310_v25 = vadd.f32 %v308_v21, %v303_v36  ;;  %v2651_v7 = vadd.f32 %v1306_v57, %v1303_v37  ;;  %v2105_v36 = vmov 29  }
  0xf3   :  { %v1132_v47 = vpop.permute.xlu1 %1131  ;;  %v1128_v39 = vadd.f32 %v1126_v16, %v1122_v55 }
  0xf4   :  { %v315_v26 = vpop.permute.xlu0 %314 }
  0xf5   :  { %v1134_v11 = vadd.f32 %v1132_v47, %v1128_v39  ;;  %v317_v0 = vadd.f32 %v315_v26, %v310_v25  ;;  %v2658_v47 = vld [vmem:[%s3151_s2] sm:$0xff]  ;;  %v2091_v26 = vmov 12   ;;  %v2106_v39 = vmov 30   ;;  %s107_s2 = smul.f32 0.45, %s2162_s1 }
  0xf6   :  { %s110_s1 = smul.f32 0.45, %s2164_s8 }
  0xf7   :  { %v1138_v43 = vpop.permute.xlu1 %1137  ;;  %s112_s8 = smul.f32 0.45, %s2168_s10 }
  0xf8   :  { %v322_v29 = vpop.permute.xlu0 %321  ;;  %v1140_v31 = vadd.f32 %v1138_v43, %v1134_v11  ;;  %v2095_v43 = vmov 17  }
  0xf9   :  { %v324_v33 = vadd.f32 %v322_v29, %v317_v0  ;;  %v2097_v29 = vmov 16   ;;  %v2109_v0 = vmov 25  }
  0xfb   :  { %v1144_v18 = vpop.permute.xlu1 %1143 }
  0xfc   :  { %v329_v22 = vpop.permute.xlu0 %328  ;;  %v1146_v62 = vadd.f32 %v1144_v18, %v1140_v31  ;;  %v2102_v18 = vmov 19  }
  0xfd   :  { %v331_v63 = vadd.f32 %v329_v22, %v324_v33  ;;  %v2104_v22 = vmov 27   ;;  %v517_v33 = vlaneseq }
  0xff   :  { %v1150_v28 = vpop.permute.xlu1 %1149  ;;  %v518_v37 = vshrl.u32 %v517_v33, 7 }
 0x100   :  { %v336_v50 = vpop.permute.xlu0 %335  ;;  %v1152_v41 = vadd.f32 %v1150_v28, %v1146_v62  ;;  %v497_v62 = vmul.f32 %v2425_v6, %v2534_v4 }
 0x101   :  { %v338_v15 = vadd.f32 %v336_v50, %v331_v63  ;;  %v2742_v8 = vsub.s32 0, %v518_v37  ;;  %v1311_v63 = vrot.slane %v1309_v53, 5  ;;  %v2812_v53 = vstv %s110_s1  ;;  %s126_s1 = smul.f32 0.45, %s2307_s21  ;;  %s3211_s21 = sld [smem:[#allocation13_spill]] }
 0x103   :  { %v1156_v54 = vpop.permute.xlu1 %1155  ;;  %3195 = vst [vmem:[#allocation21_spill] sm:$0xff] %v2742_v8 }
 0x104   :  { %v343_v2 = vpop.permute.xlu0 %342  ;;  %v1158_v35 = vadd.f32 %v1156_v54, %v1152_v41  ;;  %v1314_v41 = vmul.f32 %v2434_v13, %v2541_v38 }
 0x105   :  { %v345_v45 = vadd.f32 %v343_v2, %v338_v15  ;;  %v499_v15 = vrot.slane %v497_v62, 5 }
 0x107   :  { %v1162_v5 = vpop.permute.xlu1 %1161 }
 0x108   :  { %v350_v44 = vpop.permute.xlu0 %349  ;;  %v1164_v34 = vadd.f32 %v1162_v5, %v1158_v35  ;;  %v502_v5 = vmul.f32 %v2425_v6, %v2541_v38  ;;  %v2749_v35 = vsub.s32 1, %v518_v37 }
 0x109   :  { %v352_v16 = vadd.f32 %v350_v44, %v345_v45  ;;  %v2110_v44 = vmov 28   ;;  %v2755_v45 = vsub.s32 2, %v518_v37 }
 0x10b   :  { %v1168_v14 = vpop.permute.xlu1 %1167 }
 0x10c   :  { %v1170_v21 = vadd.f32 %v1168_v14, %v1164_v34  ;;  %v357_v46 = vpop.permute.xlu0 %356  ;;  %v2761_v34 = vld [vmem:[%s3152_s3 + $0x20] sm:$0xff]  ;;  %v1313_v14 = vadd.f32 %v1311_v63, %v2651_v7 }
 0x10d   :  { %v359_v20 = vadd.f32 %v357_v46, %v352_v16  ;;  %v1342_v38 = vrot.slane %v2761_v34, %v2742_v8  ;;  %v1319_v46 = vmul.f32 %v2434_v13, %v2548_v10  ;;  %v2785_v13 = vsub.s32 3, %v518_v37 }
 0x10e   :  { %1326 = vperm.xlu0 %1928, %v1170_v21   ;;  %v1316_v21 = vrot.slane %v1314_v41, 6 }
 0x10f   :  { %514 = vperm.xlu1 %1930, %v359_v20   ;;  %v2770_v20 = vstv %s107_s2 }
 0x112   :  { %1931 = vset.pattern.permute.xlu0 %v2090_v19 }
 0x113   :  { %1932 = vset.pattern.permute.xlu1 %v2090_v19  ;;  %667 = vperm.xlu0 %1931, %v2658_v47   ;;  %v501_v19 = vadd.f32 %v499_v15, %v2653_v12  ;;  %v1354_v12 = vrot.slane %v2761_v34, %v2749_v35  ;;  %v2820_v15 = vstv %s111_s26  ;;  %s128_s26 = smul.f32 0.45, %s2333_s4  ;;  %s3213_s4 = sld [smem:[#allocation15_spill]] }
 0x114   :  { %1468 = vperm.xlu1 %1932, %v2664_v27  }
 0x117   :  { %1934 = vset.pattern.permute.xlu0 %v2091_v26 }
 0x118   :  { %1933 = vset.pattern.permute.xlu1 %v2091_v26  ;;  %1480 = vperm.xlu0 %1934, %v2664_v27   ;;  %v504_v26 = vrot.slane %v502_v5, 6 }
 0x119   :  { %680 = vperm.xlu1 %1933, %v2658_v47   ;;  %s131_s24 = smul.f32 0.45, %s3213_s4 }
 0x11c   :  { %1936 = vset.pattern.permute.xlu0 %v2092_v48  ;;  %v2683_v3 = vpop.permute.xlu1 %1336 }
 0x11d   :  { %1935 = vset.pattern.permute.xlu1 %v2093_v59  ;;  %706 = vperm.xlu0 %1936, %v2658_v47   ;;  %v2712_v28 = vpop.permute.xlu0 %1348  ;;  %v2778_v59 = vld [vmem:[%s3152_s3] sm:$0xff] }
 0x11e   :  { %693 = vperm.xlu1 %1935, %v2658_v47   ;;  %v543_v7 = vrot.slane %v2778_v59, %v2749_v35  ;;  %v569_v33 = vrot.slane %v2778_v59, %v2785_v13  ;;  %v1355_v62 = vadd.f32 %v1354_v12, %v2712_v28 }
 0x120   :  { %v1356_v12 = vand.u32 2147483647, %v1355_v62 }
 0x121   :  { %1939 = vset.pattern.permute.xlu0 %v2094_v40  ;;  %v2687_v9 = vpop.permute.xlu1 %537 }
 0x122   :  { %1492 = vperm.xlu1 %1935, %v2664_v27   ;;  %1516 = vperm.xlu0 %1939, %v2664_v27   ;;  %v2717_v11 = vpop.permute.xlu0 %1372 }
 0x126   :  { %1937 = vset.pattern.permute.xlu1 %v2092_v48  ;;  %1941 = vset.pattern.permute.xlu0 %v2095_v43  ;;  %v2692_v55 = vpop.permute.xlu1 %550  ;;  %v507_v48 = vmul.f32 %v2425_v6, %v2548_v10  ;;  %v556_v6 = vrot.slane %v2778_v59, %v2755_v45  ;;  %v2791_v10 = vstv %s109_s0  ;;  %s116_s0 = smul.f32 0.45, %s2216_s12 }
 0x127   :  { %1504 = vperm.xlu1 %1937, %v2664_v27   ;;  %745 = vperm.xlu0 %1941, %v2658_v47   ;;  %v2723_v58 = vpop.permute.xlu0 %589  ;;  %s118_s12 = smul.f32 0.45, %s2229_s16 }
 0x128   :  { %s120_s16 = smul.f32 0.45, %s2246_s25 }
 0x129   :  { %s122_s25 = smul.f32 0.45, %s2266_s22 }
 0x12a   :  { %v2696_v23 = vpop.permute.xlu1 %1360  ;;  %s124_s22 = smul.f32 0.45, %s2289_s28  ;;  %s3210_s28 = sld [smem:[#allocation12_spill]] }
 0x12b   :  { %1938 = vset.pattern.permute.xlu1 %v2094_v40  ;;  %1944 = vset.pattern.permute.xlu0 %v2096_v52  ;;  %v2782_v40 = vstv %s108_s6  ;;  %s115_s6 = smul.f32 0.45, %s2214_s11 }
 0x12c   :  { %719 = vperm.xlu1 %1938, %v2658_v47   ;;  %1552 = vperm.xlu0 %1944, %v2664_v27   ;;  %v2728_v51 = vpop.permute.xlu0 %1408  ;;  %s117_s11 = smul.f32 0.45, %s2225_s14 }
 0x12d   :  { %s119_s14 = smul.f32 0.45, %s2236_s20 }
 0x12e   :  { %s121_s20 = smul.f32 0.45, %s2261_s18 }
 0x12f   :  { %v2701_v24 = vpop.permute.xlu1 %563  ;;  %s123_s18 = smul.f32 0.45, %s2279_s23 }
 0x130   :  { %1940 = vset.pattern.permute.xlu1 %v2097_v29  ;;  %1946 = vset.pattern.permute.xlu0 %v2098_v32  ;;  %v1366_v29 = vrot.slane %v2761_v34, %v2755_v45  ;;  %s125_s23 = smul.f32 0.45, %s2297_s15 }
 0x131   :  { %732 = vperm.xlu1 %1940, %v2658_v47   ;;  %784 = vperm.xlu0 %1946, %v2658_v47   ;;  %v2733_v57 = vpop.permute.xlu0 %628  ;;  %s127_s15 = smul.f32 0.45, %s3210_s28 }
 0x134   :  { %v2706_v42 = vpop.permute.xlu1 %576 }
 0x135   :  { %1528 = vperm.xlu1 %1940, %v2664_v27   ;;  %1949 = vset.pattern.permute.xlu0 %v2099_v61 }
 0x136   :  { %1588 = vperm.xlu0 %1949, %v2664_v27   ;;  %v2752_v4 = vpop.permute.xlu0 %1444 }
 0x138   :  { %v2710_v25 = vpop.permute.xlu1 %1384 }
 0x139   :  { %1942 = vset.pattern.permute.xlu1 %v2095_v43  ;;  %v2794_v43 = vsub.s32 4, %v518_v37 }
 0x13a   :  { %1540 = vperm.xlu1 %1942, %v2664_v27   ;;  %1951 = vset.pattern.permute.xlu0 %v2100_v1 }
 0x13b   :  { %823 = vperm.xlu0 %1951, %v2658_v47   ;;  %3196 = vst [vmem:[#allocation22_spill] sm:$0xff] %v2794_v43  ;;  %v582_v41 = vrot.slane %v2778_v59, %v2794_v43  ;;  %v1390_v5 = vrot.slane %v2761_v34, %v2794_v43 }
 0x13d   :  { %v2715_v30 = vpop.permute.xlu1 %1396 }
 0x13e   :  { %1943 = vset.pattern.permute.xlu1 %v2096_v52  ;;  %v530_v52 = vrot.slane %v2778_v59, %v2742_v8 }
 0x13f   :  { %758 = vperm.xlu1 %1943, %v2658_v47   ;;  %1954 = vset.pattern.permute.xlu0 %v2101_v60 }
 0x140   :  { %1624 = vperm.xlu0 %1954, %v2664_v27  }
 0x142   :  { %v2720_v50 = vpop.permute.xlu1 %602 }
 0x143   :  { %1945 = vset.pattern.permute.xlu1 %v2102_v18  ;;  %v2805_v18 = vsub.s32 6, %v518_v37 }
 0x144   :  { %771 = vperm.xlu1 %1945, %v2658_v47   ;;  %1956 = vset.pattern.permute.xlu0 %v2103_v17 }
 0x145   :  { %862 = vperm.xlu0 %1956, %v2658_v47   ;;  %3198 = vst [vmem:[#allocation24_spill] sm:$0xff] %v2805_v18 }
 0x147   :  { %v2725_v31 = vpop.permute.xlu1 %615 }
 0x148   :  { %1564 = vperm.xlu1 %1945, %v2664_v27  }
 0x149   :  { %1959 = vset.pattern.permute.xlu0 %v2104_v22 }
 0x14a   :  { %1660 = vperm.xlu0 %1959, %v2664_v27  }
 0x14b   :  { %v2731_v54 = vpop.permute.xlu1 %1420 }
 0x14c   :  { %1947 = vset.pattern.permute.xlu1 %v2098_v32  ;;  %v2802_v32 = vsub.s32 5, %v518_v37 }
 0x14d   :  { %1576 = vperm.xlu1 %1947, %v2664_v27  }
 0x14e   :  { %1961 = vset.pattern.permute.xlu0 %v2105_v36  ;;  %3197 = vst [vmem:[#allocation23_spill] sm:$0xff] %v2802_v32  ;;  %v1402_v28 = vrot.slane %v2761_v34, %v2802_v32 }
 0x14f   :  { %901 = vperm.xlu0 %1961, %v2658_v47  }
 0x150   :  { %v2740_v2 = vpop.permute.xlu1 %1432 }
 0x151   :  { %1948 = vset.pattern.permute.xlu1 %v2099_v61  ;;  %v525_v61 = vpop.permute.xlu0 %524 }
 0x152   :  { %797 = vperm.xlu1 %1948, %v2658_v47  }
 0x153   :  { %1964 = vset.pattern.permute.xlu0 %v2106_v39 }
 0x154   :  { %1696 = vperm.xlu0 %1964, %v2664_v27  }
 0x155   :  { %v2765_v16 = vpop.permute.xlu1 %641 }
 0x156   :  { %1950 = vset.pattern.permute.xlu1 %v2107_v49  ;;  %v509_v49 = vrot.slane %v507_v48, 7 }
 0x157   :  { %810 = vperm.xlu1 %1950, %v2658_v47  }
 0x158   :  { %1966 = vset.pattern.permute.xlu0 %v3171_v56 }
 0x15a   :  { %v2816_v63 = vpop.permute.xlu1 %654 }
 0x15b   :  { %1600 = vperm.xlu1 %1950, %v2664_v27  }
 0x15f   :  { %1952 = vset.pattern.permute.xlu1 %v2100_v1  ;;  %v1318_v1 = vadd.f32 %v1316_v21, %v1313_v14  ;;  %v608_v14 = vrot.slane %v2778_v59, %v2805_v18  ;;  %v2834_v21 = vstv %s113_s7  ;;  %s129_s7 = smul.f32 0.45, %s3211_s21 }
 0x160   :  { %1612 = vperm.xlu1 %1952, %v2664_v27  }
 0x164   :  { %1953 = vset.pattern.permute.xlu1 %v2101_v60  ;;  %v1321_v60 = vrot.slane %v1319_v46, 7 }
 0x165   :  { %836 = vperm.xlu1 %1953, %v2658_v47  }
 0x169   :  { %1955 = vset.pattern.permute.xlu1 %v2109_v0  ;;  %v1343_v0 = vadd.f32 %v1342_v38, %v2683_v3  ;;  %v531_v3 = vadd.f32 %v530_v52, %v525_v61  ;;  %v1323_v38 = vadd.f32 %v1321_v60, %v1318_v1  ;;  %v544_v52 = vadd.f32 %v543_v7, %v2687_v9  ;;  %v2847_v1 = vld [vmem:[%s3152_s3 + $0x28] sm:$0xff]  ;;  %v2861_v7 = vpop.permute.xlu1 %1456 }
 0x16a   :  { %849 = vperm.xlu1 %1955, %v2658_v47   ;;  %v1438_v60 = vrot.slane %v2847_v1, %v2742_v8  ;;  %v2857_v9 = vld [vmem:[%s3152_s3 + $0x8] sm:$0xff] }
 0x16b   :  { %v1332_v62 = vrot.slane %v1323_v38, %v2742_v8 }
 0x16e   :  { %1636 = vperm.xlu1 %1955, %v2664_v27  }
 0x172   :  { %1957 = vset.pattern.permute.xlu1 %v2103_v17  ;;  %v2807_v17 = vsub.s32 7, %v518_v37  ;;  %v1378_v37 = vrot.slane %v2761_v34, %v2785_v13 }
 0x173   :  { %1648 = vperm.xlu1 %1957, %v2664_v27  }
 0x174   :  { %v1426_v48 = vrot.slane %v2761_v34, %v2807_v17  ;;  %v1379_v61 = vadd.f32 %v1378_v37, %v2717_v11  ;;  %v557_v37 = vadd.f32 %v556_v6, %v2692_v55  ;;  %v545_v6 = vand.u32 2147483647, %v544_v52 }
 0x175   :  { %v1450_v55 = vrot.slane %v2847_v1, %v2749_v35 }
 0x176   :  { %v1380_v38 = vand.u32 2147483647, %v1379_v61  ;;  %v558_v43 = vand.u32 2147483647, %v557_v37 }
 0x177   :  { %1958 = vset.pattern.permute.xlu1 %v2104_v22  ;;  %v506_v22 = vadd.f32 %v504_v26, %v501_v19  ;;  %v1344_v19 = vand.u32 2147483647, %v1343_v0  ;;  %v2838_v26 = vstv %s114_s9  ;;  %v595_v0 = vrot.slane %v2778_v59, %v2802_v32 }
 0x178   :  { %875 = vperm.xlu1 %1958, %v2658_v47   ;;  %3199 = vst [vmem:[#allocation25_spill] sm:$0xff] %v2838_v26  ;;  %v3200_v26 = vmov 31  }
 0x179   :  { %v511_v46 = vadd.f32 %v509_v49, %v506_v22  ;;  %v532_v22 = vand.u32 2147483647, %v531_v3  ;;  %v1367_v49 = vadd.f32 %v1366_v29, %v2696_v23  ;;  %v1414_v23 = vrot.slane %v2761_v34, %v2805_v18 }
 0x17a   :  { %v1345_v11 = vmul.f32 %v1344_v19, %v2770_v20  ;;  %v570_v34 = vadd.f32 %v569_v33, %v2701_v24  ;;  %v596_v19 = vadd.f32 %v595_v0, %v2723_v58  ;;  %v1403_v24 = vadd.f32 %v1402_v28, %v2715_v30 }
 0x17b   :  { %v520_v3 = vrot.slane %v511_v46, %v2742_v8  ;;  %v534_v29 = vmul.f32 %v2770_v20, %v532_v22  ;;  %v1368_v18 = vand.u32 2147483647, %v1367_v49  ;;  %v1391_v46 = vadd.f32 %v1390_v5, %v2710_v25 }
 0x17c   :  { %1960 = vset.pattern.permute.xlu1 %v2110_v44  ;;  %v2827_v44 = vstv %s112_s8  ;;  %v1415_v20 = vadd.f32 %v1414_v23, %v2728_v51  ;;  %v547_v25 = vmul.f32 %v2782_v40, %v545_v6  ;;  %v571_v58 = vand.u32 2147483647, %v570_v34  ;;  %s3212_s8 = sld [smem:[#allocation14_spill]] }
 0x17d   :  { %888 = vperm.xlu1 %1960, %v2658_v47   ;;  %v1369_v5 = vmul.f32 %v1368_v18, %v2791_v10  ;;  %v1392_v61 = vand.u32 2147483647, %v1391_v46  ;;  %v560_v30 = vmul.f32 %v2791_v10, %v558_v43  ;;  %v1404_v49 = vand.u32 2147483647, %v1403_v24 }
 0x17e   :  { %v1416_v0 = vand.u32 2147483647, %v1415_v20  ;;  %v573_v18 = vmul.f32 %v2812_v53, %v571_v58  ;;  %v3201_v10 = vrot.slane %v2778_v59, %v2807_v17  ;;  %v637_v46 = vstv %s115_s6 }
 0x17f   :  { %v1405_v59 = vmul.f32 %v1404_v49, %v2827_v44  ;;  %v650_v20 = vstv %s116_s0  ;;  %s3214_s0 = sld [smem:[#allocation16_spill]] }
 0x181   :  { %1672 = vperm.xlu1 %1960, %v2664_v27  }
 0x182   :  { %s130_s9 = smul.f32 0.45, %s3212_s8  ;;  %s3221_s8 = sld [smem:[#allocation27_spill]] }
 0x185   :  { %1962 = vset.pattern.permute.xlu1 %v2105_v36  ;;  %v1357_v36 = vmul.f32 %v1356_v12, %v2782_v40  ;;  %v1427_v40 = vadd.f32 %v1426_v48, %v2731_v54  ;;  %v1451_v54 = vadd.f32 %v1450_v55, %v2752_v4  ;;  %v3202_v4 = vrot.slane %v2857_v9, %v2749_v35 }
 0x186   :  { %1684 = vperm.xlu1 %1962, %v2664_v27  }
 0x187   :  { %v1452_v6 = vand.u32 2147483647, %v1451_v54 }
 0x18a   :  { %1963 = vset.pattern.permute.xlu1 %v2106_v39  ;;  %v634_v39 = vrot.slane %v2857_v9, %v2742_v8  ;;  %v583_v8 = vadd.f32 %v582_v41, %v2706_v42  ;;  %v1381_v42 = vmul.f32 %v1380_v38, %v2812_v53 }
 0x18b   :  { %914 = vperm.xlu1 %1963, %v2658_v47  }
 0x18c   :  { %v584_v51 = vand.u32 2147483647, %v583_v8  ;;  %v622_v8 = vadd.f32 %v3201_v10, %v2725_v31  ;;  %v1428_v31 = vand.u32 2147483647, %v1427_v40  ;;  %v676_v40 = vstv %s118_s12 }
 0x18d   :  { %v1327_v56 = vpop.permute.xlu0 %1326 }
 0x18e   :  { %v1333_v32 = vadd.f32 %v1332_v62, %v1327_v56  ;;  %v515_v12 = vpop.permute.xlu1 %514  ;;  %v1474_v56 = vrot.slane %v2847_v1, %v2785_v13 }
 0x18f   :  { %v521_v52 = vadd.f32 %v520_v3, %v515_v12  ;;  %1965 = vset.pattern.permute.xlu1 %v3200_v26  ;;  %v597_v26 = vand.u32 2147483647, %v596_v19  ;;  %v3204_v19 = vrot.slane %v2857_v9, %v2755_v45 }
 0x190   :  { %v1346_v33 = vadd.f32 %v1345_v11, %v1333_v32  ;;  %927 = vperm.xlu1 %1965, %v2658_v47   ;;  %v609_v32 = vadd.f32 %v608_v14, %v2720_v50  ;;  %v635_v50 = vadd.f32 %v634_v39, %v2733_v57  ;;  %v1393_v14 = vmul.f32 %v1392_v61, %v2820_v15 }
 0x191   :  { %v535_v41 = vadd.f32 %v534_v29, %v521_v52  ;;  %v599_v53 = vmul.f32 %v2827_v44, %v597_v26  ;;  %v1417_v57 = vmul.f32 %v1416_v0, %v2834_v21  ;;  %v3203_v44 = vrot.slane %v2847_v1, %v2755_v45  ;;  %v3205_v52 = vld [vmem:[#allocation25_spill] sm:$0xff] }
 0x192   :  { %v1358_v22 = vadd.f32 %v1357_v36, %v1346_v33  ;;  %v1439_v36 = vadd.f32 %v1438_v60, %v2740_v2  ;;  %v610_v62 = vand.u32 2147483647, %v609_v32  ;;  %v623_v2 = vand.u32 2147483647, %v622_v8 }
 0x193   :  { %v548_v47 = vadd.f32 %v547_v25, %v535_v41  ;;  %v1469_v28 = vpop.permute.xlu1 %1468  ;;  %v636_v60 = vand.u32 2147483647, %v635_v50  ;;  %v1463_v55 = vadd.f32 %v3203_v44, %v2861_v7  ;;  %v1429_v24 = vmul.f32 %v1428_v31, %v3205_v52  ;;  %v668_v31 = vpop.permute.xlu0 %667 }
 0x194   :  { %v1370_v11 = vadd.f32 %v1369_v5, %v1358_v22  ;;  %1708 = vperm.xlu1 %1965, %v2664_v27   ;;  %v586_v27 = vmul.f32 %v2820_v15, %v584_v51  ;;  %v648_v15 = vadd.f32 %v3202_v4, %v2765_v16  ;;  %v1440_v39 = vand.u32 2147483647, %v1439_v36 }
 0x195   :  { %v561_v43 = vadd.f32 %v560_v30, %v548_v47  ;;  %v612_v38 = vmul.f32 %v2834_v21, %v610_v62  ;;  %v661_v16 = vadd.f32 %v3204_v19, %v2816_v63  ;;  %v1475_v25 = vadd.f32 %v1474_v56, %v1469_v28  ;;  %v3208_v19 = vld [vmem:[#allocation24_spill] sm:$0xff] }
 0x196   :  { %v1382_v48 = vadd.f32 %v1381_v42, %v1370_v11  ;;  %v625_v7 = vmul.f32 %v3205_v52, %v623_v2  ;;  %v649_v58 = vand.u32 2147483647, %v648_v15  ;;  %v638_v42 = vmul.f32 %v637_v46, %v636_v60  ;;  %v3206_v60 = vld [vmem:[#allocation22_spill] sm:$0xff] }
 0x197   :  { %v574_v37 = vadd.f32 %v573_v18, %v561_v43  ;;  %v1441_v5 = vmul.f32 %v1440_v39, %v637_v46  ;;  %v1464_v61 = vand.u32 2147483647, %v1463_v55  ;;  %v1453_v26 = vmul.f32 %v1452_v6, %v650_v20  ;;  %v1481_v4 = vpop.permute.xlu0 %1480  ;;  %v3207_v55 = vld [vmem:[#allocation23_spill] sm:$0xff] }
 0x198   :  { %v1394_v23 = vadd.f32 %v1393_v14, %v1382_v48  ;;  %v2913_v29 = vpop.permute.xlu1 %680  ;;  %v663_v30 = vstv %s117_s11  ;;  %v662_v51 = vand.u32 2147483647, %v661_v16  ;;  %v1476_v47 = vand.u32 2147483647, %v1475_v25  ;;  %s132_s11 = smul.f32 0.45, %s3214_s0 }
 0x199   :  { %v587_v3 = vadd.f32 %v586_v27, %v574_v37  ;;  %v651_v49 = vmul.f32 %v650_v20, %v649_v58  ;;  %v1465_v28 = vmul.f32 %v1464_v61, %v663_v30  ;;  %v1486_v39 = vrot.slane %v2847_v1, %v3206_v60 }
 0x19a   :  { %v1406_v34 = vadd.f32 %v1405_v59, %v1394_v23  ;;  %v664_v18 = vmul.f32 %v663_v30, %v662_v51  ;;  %v1477_v50 = vmul.f32 %v1476_v47, %v676_v40  ;;  %v699_v6 = vrot.slane %v2857_v9, %v3207_v55 }
 0x19b   :  { %v600_v12 = vadd.f32 %v599_v53, %v587_v3  ;;  %v686_v3 = vrot.slane %v2857_v9, %v3206_v60  ;;  %v712_v16 = vrot.slane %v2857_v9, %v3208_v19  ;;  %v702_v30 = vstv %s120_s16  ;;  %s3217_s16 = sld [smem:[#allocation19_spill]] }
 0x19c   :  { %v1418_v33 = vadd.f32 %v1417_v57, %v1406_v34  ;;  %v673_v57 = vrot.slane %v2857_v9, %v2785_v13 }
 0x19d   :  { %v613_v41 = vadd.f32 %v612_v38, %v600_v12  ;;  %v694_v21 = vpop.permute.xlu1 %693  ;;  %v687_v34 = vadd.f32 %v686_v3, %v2913_v29  ;;  %v1487_v38 = vadd.f32 %v1486_v39, %v1481_v4  ;;  %v707_v12 = vpop.permute.xlu0 %706  ;;  %v1510_v29 = vrot.slane %v2847_v1, %v3208_v19 }
 0x19e   :  { %v1430_v22 = vadd.f32 %v1429_v24, %v1418_v33  ;;  %v674_v2 = vadd.f32 %v673_v57, %v668_v31  ;;  %v1498_v24 = vrot.slane %v2847_v1, %v3207_v55  ;;  %v700_v20 = vadd.f32 %v699_v6, %v694_v21  ;;  %v2973_v21 = vld [vmem:[%s3152_s3 + $0x10] sm:$0xff] }
 0x19f   :  { %v626_v63 = vadd.f32 %v625_v7, %v613_v41  ;;  %v688_v33 = vand.u32 2147483647, %v687_v34  ;;  %v1488_v25 = vand.u32 2147483647, %v1487_v38  ;;  %v725_v7 = vrot.slane %v2857_v9, %v2807_v17 }
 0x1a0   :  { %v1442_v32 = vadd.f32 %v1441_v5, %v1430_v22  ;;  %v675_v44 = vand.u32 2147483647, %v674_v2  ;;  %v713_v41 = vadd.f32 %v712_v16, %v707_v12  ;;  %v701_v51 = vand.u32 2147483647, %v700_v20 }
 0x1a1   :  { %v639_v0 = vadd.f32 %v638_v42, %v626_v63  ;;  %v1493_v56 = vpop.permute.xlu1 %1492  ;;  %v689_v42 = vstv %s119_s14  ;;  %v1522_v9 = vrot.slane %v2847_v1, %v2807_v17  ;;  %v1517_v63 = vpop.permute.xlu0 %1516  ;;  %v2988_v1 = vld [vmem:[%s3152_s3 + $0x30] sm:$0xff]  ;;  %v728_v4 = vstv %s122_s25  ;;  %s3216_s14 = sld [smem:[#allocation18_spill]]  ;;  %s135_s13 = smul.f32 0.45, %s3217_s16 }
 0x1a2   :  { %v1454_v11 = vadd.f32 %v1453_v26, %v1442_v32  ;;  %v677_v52 = vmul.f32 %v676_v40, %v675_v44  ;;  %v1499_v61 = vadd.f32 %v1498_v24, %v1493_v56  ;;  %v3209_v26 = vld [vmem:[#allocation21_spill] sm:$0xff]  ;;  %v690_v32 = vmul.f32 %v689_v42, %v688_v33  ;;  %s136_s25 = smul.f32 0.45, %s3218_s5 }
 0x1a3   :  { %v652_v10 = vadd.f32 %v651_v49, %v639_v0  ;;  %v738_v22 = vrot.slane %v2973_v21, %v3209_v26  ;;  %v1489_v47 = vmul.f32 %v1488_v25, %v689_v42  ;;  %v715_v0 = vstv %s121_s20 }
 0x1a4   :  { %v1466_v8 = vadd.f32 %v1465_v28, %v1454_v11  ;;  %v714_v56 = vand.u32 2147483647, %v713_v41  ;;  %v1523_v57 = vadd.f32 %v1522_v9, %v1517_v63  ;;  %v1546_v3 = vrot.slane %v2988_v1, %v2749_v35 }
 0x1a5   :  { %v665_v43 = vadd.f32 %v664_v18, %v652_v10  ;;  %v1500_v18 = vand.u32 2147483647, %v1499_v61  ;;  %v764_v39 = vrot.slane %v2973_v21, %v2755_v45  ;;  %v741_v12 = vstv %s123_s18  ;;  %s137_s18 = smul.f32 0.45, %s2519_s27 }
 0x1a6   :  { %v1478_v14 = vadd.f32 %v1477_v50, %v1466_v8  ;;  %v1505_v36 = vpop.permute.xlu1 %1504  ;;  %v751_v8 = vrot.slane %v2973_v21, %v2749_v35  ;;  %v703_v50 = vmul.f32 %v702_v30, %v701_v51  ;;  %v777_v20 = vrot.slane %v2973_v21, %v2785_v13 }
 0x1a7   :  { %v678_v5 = vadd.f32 %v677_v52, %v665_v43  ;;  %v1511_v49 = vadd.f32 %v1510_v29, %v1505_v36  ;;  %v746_v43 = vpop.permute.xlu0 %745  ;;  %v1534_v36 = vrot.slane %v2988_v1, %v3209_v26  ;;  %v1501_v6 = vmul.f32 %v1500_v18, %v702_v30  ;;  %s134_s20 = smul.f32 0.45, %s3216_s14 }
 0x1a8   :  { %v752_v38 = vadd.f32 %v751_v8, %v746_v43  ;;  %v1558_v52 = vrot.slane %v2988_v1, %v2755_v45  ;;  %v1524_v29 = vand.u32 2147483647, %v1523_v57  ;;  %v754_v30 = vstv %s124_s22 }
 0x1a9   :  { %v691_v11 = vadd.f32 %v690_v32, %v678_v5  ;;  %v1512_v31 = vand.u32 2147483647, %v1511_v49  ;;  %v1570_v32 = vrot.slane %v2988_v1, %v2785_v13  ;;  %v767_v8 = vstv %s125_s23 }
 0x1ab   :  { %v720_v54 = vpop.permute.xlu1 %719  ;;  %v704_v44 = vadd.f32 %v703_v50, %v691_v11  ;;  %v1553_v24 = vpop.permute.xlu0 %1552  ;;  %v1513_v25 = vmul.f32 %v1512_v31, %v715_v0  ;;  %v1582_v11 = vrot.slane %v2988_v1, %v3206_v60  ;;  %v816_v31 = vrot.slane %v2973_v21, %v3208_v19 }
 0x1ac   :  { %v726_v40 = vadd.f32 %v725_v7, %v720_v54  ;;  %v1490_v54 = vadd.f32 %v1489_v47, %v1478_v14  ;;  %v1525_v47 = vmul.f32 %v1524_v29, %v728_v4 }
 0x1ae   :  { %v727_v2 = vand.u32 2147483647, %v726_v40  ;;  %v1502_v33 = vadd.f32 %v1501_v6, %v1490_v54  ;;  %v1559_v40 = vadd.f32 %v1558_v52, %v1553_v24  ;;  %v829_v52 = vrot.slane %v2973_v21, %v2807_v17 }
 0x1b0   :  { %v733_v48 = vpop.permute.xlu1 %732  ;;  %v729_v7 = vmul.f32 %v728_v4, %v727_v2  ;;  %v785_v63 = vpop.permute.xlu0 %784  ;;  %v780_v4 = vstv %s126_s1 }
 0x1b1   :  { %v739_v10 = vadd.f32 %v738_v22, %v733_v48  ;;  %v716_v48 = vmul.f32 %v715_v0, %v714_v56  ;;  %v753_v22 = vand.u32 2147483647, %v752_v38 }
 0x1b3   :  { %v740_v34 = vand.u32 2147483647, %v739_v10  ;;  %v717_v5 = vadd.f32 %v716_v48, %v704_v44  ;;  %v755_v10 = vmul.f32 %v754_v30, %v753_v22  ;;  %v1560_v48 = vand.u32 2147483647, %v1559_v40 }
 0x1b4   :  { %v2932_v27 = vpop.permute.xlu1 %1528 }
 0x1b5   :  { %v1535_v14 = vadd.f32 %v1534_v36, %v2932_v27  ;;  %v742_v61 = vmul.f32 %v741_v12, %v740_v34  ;;  %v790_v27 = vrot.slane %v2973_v21, %v3206_v60  ;;  %v730_v49 = vadd.f32 %v729_v7, %v717_v5 }
 0x1b6   :  { %v1561_v29 = vmul.f32 %v1560_v48, %v767_v8 }
 0x1b7   :  { %v1536_v51 = vand.u32 2147483647, %v1535_v14  ;;  %v743_v18 = vadd.f32 %v742_v61, %v730_v49  ;;  %v791_v50 = vadd.f32 %v790_v27, %v785_v63  ;;  %v806_v27 = vstv %s128_s26 }
 0x1b9   :  { %v2934_v62 = vpop.permute.xlu1 %1540  ;;  %v1537_v43 = vmul.f32 %v1536_v51, %v741_v12  ;;  %v793_v12 = vstv %s127_s15  ;;  %v792_v14 = vand.u32 2147483647, %v791_v50  ;;  %s3220_s15 = sld [smem:[#allocation26_spill]] }
 0x1ba   :  { %v1547_v42 = vadd.f32 %v1546_v3, %v2934_v62  ;;  %v1594_v3 = vrot.slane %v2988_v1, %v3207_v55 }
 0x1bb   :  { %v794_v22 = vmul.f32 %v793_v12, %v792_v14 }
 0x1bc   :  { %v1548_v0 = vand.u32 2147483647, %v1547_v42 }
 0x1be   :  { %v2936_v53 = vpop.permute.xlu1 %758  ;;  %v1549_v44 = vmul.f32 %v1548_v0, %v754_v30  ;;  %v3044_v30 = vld [vmem:[%s3152_s3 + $0x18] sm:$0xff] }
 0x1bf   :  { %v765_v41 = vadd.f32 %v764_v39, %v2936_v53  ;;  %v1514_v53 = vadd.f32 %v1513_v25, %v1502_v33  ;;  %v1589_v39 = vpop.permute.xlu0 %1588  ;;  %v842_v51 = vrot.slane %v3044_v30, %v3209_v26  ;;  %v881_v14 = vrot.slane %v3044_v30, %v2785_v13  ;;  %s42_s17 = ssub.f32 1.0, %s3220_s15 }
 0x1c0   :  { %v1595_v7 = vadd.f32 %v1594_v3, %v1589_v39 }
 0x1c1   :  { %v766_v56 = vand.u32 2147483647, %v765_v41  ;;  %v1526_v2 = vadd.f32 %v1525_v47, %v1514_v53  ;;  %v819_v47 = vstv %s129_s7 }
 0x1c3   :  { %v2938_v37 = vpop.permute.xlu1 %771  ;;  %v768_v6 = vmul.f32 %v767_v8, %v766_v56  ;;  %v1538_v24 = vadd.f32 %v1537_v43, %v1526_v2  ;;  %v824_v42 = vpop.permute.xlu0 %823  ;;  %v855_v56 = vrot.slane %v3044_v30, %v2749_v35 }
 0x1c4   :  { %v778_v9 = vadd.f32 %v777_v20, %v2938_v37  ;;  %v803_v37 = vrot.slane %v2973_v21, %v3207_v55  ;;  %v830_v53 = vadd.f32 %v829_v52, %v824_v42  ;;  %v894_v42 = vrot.slane %v3044_v30, %v3206_v60 }
 0x1c5   :  { %v1550_v41 = vadd.f32 %v1549_v44, %v1538_v24 }
 0x1c6   :  { %v779_v36 = vand.u32 2147483647, %v778_v9  ;;  %v831_v2 = vand.u32 2147483647, %v830_v53 }
 0x1c7   :  { %v2940_v59 = vpop.permute.xlu1 %1564  ;;  %v1625_v0 = vpop.permute.xlu0 %1624 }
 0x1c8   :  { %v1571_v54 = vadd.f32 %v1570_v32, %v2940_v59  ;;  %v756_v59 = vadd.f32 %v755_v10, %v743_v18  ;;  %v781_v20 = vmul.f32 %v780_v4, %v779_v36  ;;  %v1596_v18 = vand.u32 2147483647, %v1595_v7 }
 0x1c9   :  { %v868_v36 = vrot.slane %v3044_v30, %v2755_v45 }
 0x1ca   :  { %v1572_v33 = vand.u32 2147483647, %v1571_v54  ;;  %v769_v5 = vadd.f32 %v768_v6, %v756_v59  ;;  %v1597_v6 = vmul.f32 %v1596_v18, %v806_v27 }
 0x1cb   :  { %v863_v39 = vpop.permute.xlu0 %862 }
 0x1cc   :  { %v2944_v23 = vpop.permute.xlu1 %1576  ;;  %v782_v9 = vadd.f32 %v781_v20, %v769_v5  ;;  %v1573_v63 = vmul.f32 %v1572_v33, %v780_v4  ;;  %v845_v4 = vstv %s131_s24  ;;  %v858_v20 = vstv %s132_s11  ;;  %s2111_s24 = smov [#allocation7]  }
 0x1cd   :  { %v1583_v34 = vadd.f32 %v1582_v11, %v2944_v23  ;;  %v1606_v23 = vrot.slane %v2988_v1, %v3208_v19  ;;  %v1562_v11 = vadd.f32 %v1561_v29, %v1550_v41  ;;  %v869_v33 = vadd.f32 %v868_v36, %v863_v39  ;;  %s1779_s2 = sshll.u32 %s2111_s24, 4  ;;  %s1780_s2 = int_to_ptr.vmem [resolvable:$true] %s1779_s2 }
 0x1ce   :  { %s2009_s6 = scalar_lea.vmem %s1780_s2, 256  ;;  %p2014_p6 = scmp.lt.s32.totalorder %s1780_s2, %s1780_s2 }
 0x1cf   :  { %v1584_v61 = vand.u32 2147483647, %v1583_v34  ;;  %v1574_v54 = vadd.f32 %v1573_v63, %v1562_v11  ;;  %v1661_v7 = vpop.permute.xlu0 %1660  ;;  %p2010_p5 = scmp.ne.s32.totalorder %s1780_s2, %s2009_s6  ;;  %p2015_p7 = scmp.lt.s32.totalorder %s2009_s6, %s2009_s6 }
 0x1d1   :  { %v2946_v15 = vpop.permute.xlu1 %797  ;;  %p2016_p8 = por %p2015_p7, %p2014_p6 }
 0x1d2   :  { %v804_v38 = vadd.f32 %v803_v37, %v2946_v15  ;;  %v1585_v37 = vmul.f32 %v1584_v61, %v793_v12 }
 0x1d3   :  { %p2017_p9 = pnand %p2016_p8, %p2010_p5 }
 0x1d4   :  { %v805_v21 = vand.u32 2147483647, %v804_v38 }
 0x1d6   :  { %v2955_v46 = vpop.permute.xlu1 %810  ;;  %v807_v10 = vmul.f32 %v806_v27, %v805_v21 }
 0x1d7   :  { %v817_v25 = vadd.f32 %v816_v31, %v2955_v46  ;;  %v1618_v46 = vrot.slane %v2988_v1, %v2807_v17  ;;  %v3053_v1 = vld [vmem:[%s3152_s3 + $0x38] sm:$0xff]  ;;  %s3215_s3 = sld [smem:[#allocation17_spill]] }
 0x1d8   :  { %v1630_v40 = vrot.slane %v3053_v1, %v3209_v26  ;;  %v795_v26 = vadd.f32 %v794_v22, %v782_v9  ;;  %v1642_v44 = vrot.slane %v3053_v1, %v2749_v35  ;;  %v1654_v12 = vrot.slane %v3053_v1, %v2755_v45 }
 0x1d9   :  { %v818_v32 = vand.u32 2147483647, %v817_v25  ;;  %v1666_v5 = vrot.slane %v3053_v1, %v2785_v13  ;;  %v870_v9 = vand.u32 2147483647, %v869_v33  ;;  %v1678_v63 = vrot.slane %v3053_v1, %v3206_v60 }
 0x1da   :  { %v2967_v58 = vpop.permute.xlu1 %1600  ;;  %v1631_v34 = vadd.f32 %v1630_v40, %v1625_v0 }
 0x1db   :  { %v1607_v49 = vadd.f32 %v1606_v23, %v2967_v58  ;;  %v832_v58 = vstv %s130_s9  ;;  %v820_v31 = vmul.f32 %v819_v47, %v818_v32  ;;  %v1667_v0 = vadd.f32 %v1666_v5, %v1661_v7 }
 0x1dc   :  { %v1632_v41 = vand.u32 2147483647, %v1631_v34 }
 0x1dd   :  { %v1608_v48 = vand.u32 2147483647, %v1607_v49  ;;  %s133_s12 = smul.f32 0.45, %s3215_s3  ;;  %v902_v49 = vpop.permute.xlu0 %901 }
 0x1de   :  { %v1633_v40 = vmul.f32 %v1632_v41, %v845_v4 }
 0x1df   :  { %v2980_v28 = vpop.permute.xlu1 %1612  ;;  %v1609_v25 = vmul.f32 %v1608_v48, %v819_v47  ;;  %v871_v45 = vstv %s133_s12 }
 0x1e0   :  { %v1619_v50 = vadd.f32 %v1618_v46, %v2980_v28  ;;  %v1586_v28 = vadd.f32 %v1585_v37, %v1574_v54  ;;  %v1668_v54 = vand.u32 2147483647, %v1667_v0 }
 0x1e2   :  { %v1620_v38 = vand.u32 2147483647, %v1619_v50  ;;  %v1598_v23 = vadd.f32 %v1597_v6, %v1586_v28 }
 0x1e4   :  { %v2996_v16 = vpop.permute.xlu1 %836  ;;  %v1621_v61 = vmul.f32 %v1620_v38, %v832_v58  ;;  %v1610_v32 = vadd.f32 %v1609_v25, %v1598_v23 }
 0x1e5   :  { %v843_v43 = vadd.f32 %v842_v51, %v2996_v16  ;;  %v808_v16 = vadd.f32 %v807_v10, %v795_v26  ;;  %v872_v10 = vmul.f32 %v871_v45, %v870_v9 }
 0x1e7   :  { %v844_v59 = vand.u32 2147483647, %v843_v43  ;;  %v821_v24 = vadd.f32 %v820_v31, %v808_v16  ;;  %v897_v31 = vstv %s135_s13 }
 0x1e9   :  { %v3012_v62 = vpop.permute.xlu1 %849  ;;  %v846_v21 = vmul.f32 %v845_v4, %v844_v59 }
 0x1ea   :  { %v856_v3 = vadd.f32 %v855_v56, %v3012_v62  ;;  %v833_v62 = vmul.f32 %v832_v58, %v831_v2  ;;  %v1622_v56 = vadd.f32 %v1621_v61, %v1610_v32  ;;  %v1702_v2 = vrot.slane %v3053_v1, %v3208_v19 }
 0x1ec   :  { %v857_v35 = vand.u32 2147483647, %v856_v3  ;;  %v834_v51 = vadd.f32 %v833_v62, %v821_v24  ;;  %v1634_v48 = vadd.f32 %v1633_v40, %v1622_v56  ;;  %v933_v24 = vrot.slane %v3044_v30, %v2807_v17 }
 0x1ed   :  { %v3023_v57 = vpop.permute.xlu1 %1636 }
 0x1ee   :  { %v1643_v29 = vadd.f32 %v1642_v44, %v3023_v57  ;;  %v907_v57 = vrot.slane %v3044_v30, %v3207_v55  ;;  %v859_v53 = vmul.f32 %v858_v20, %v857_v35  ;;  %v847_v11 = vadd.f32 %v846_v21, %v834_v51  ;;  %v1697_v44 = vpop.permute.xlu0 %1696 }
 0x1f0   :  { %v1644_v47 = vand.u32 2147483647, %v1643_v29  ;;  %v908_v58 = vadd.f32 %v907_v57, %v902_v49  ;;  %v860_v50 = vadd.f32 %v859_v53, %v847_v11 }
 0x1f2   :  { %v3036_v15 = vpop.permute.xlu1 %1648  ;;  %v1645_v43 = vmul.f32 %v1644_v47, %v858_v20  ;;  %v909_v28 = vand.u32 2147483647, %v908_v58  ;;  %v873_v6 = vadd.f32 %v872_v10, %v860_v50  ;;  %v942_v58 = vld [vmem:[%s3219_s30] sm:$0xff]  ;;  %v1840_v50 = vld [vmem:[%s3219_s30 + $0x8] sm:$0xff] }
 0x1f3   :  { %v1655_v22 = vadd.f32 %v1654_v12, %v3036_v15  ;;  %v1690_v15 = vrot.slane %v3053_v1, %v3207_v55  ;;  %v920_v55 = vrot.slane %v3044_v30, %v3208_v19  ;;  %v910_v12 = vstv %s136_s25 }
 0x1f4   :  { %v1646_v16 = vadd.f32 %v1645_v43, %v1634_v48  ;;  %v911_v29 = vmul.f32 %v910_v12, %v909_v28  ;;  %v936_v30 = vstv %s138_s29 }
 0x1f5   :  { %v1656_v37 = vand.u32 2147483647, %v1655_v22 }
 0x1f7   :  { %v876_v8 = vpop.permute.xlu1 %875  ;;  %v1657_v4 = vmul.f32 %v1656_v37, %v871_v45  ;;  %v1714_v45 = vrot.slane %v3053_v1, %v2807_v17 }
 0x1f8   :  { %v882_v27 = vadd.f32 %v881_v14, %v876_v8  ;;  %v884_v8 = vstv %s134_s20  ;;  %v1703_v14 = vadd.f32 %v1702_v2, %v1697_v44 }
 0x1f9   :  { %v1658_v19 = vadd.f32 %v1657_v4, %v1646_v16  ;;  %v1669_v62 = vmul.f32 %v1668_v54, %v884_v8 }
 0x1fa   :  { %v883_v18 = vand.u32 2147483647, %v882_v27  ;;  %v1704_v23 = vand.u32 2147483647, %v1703_v14 }
 0x1fb   :  { %v1670_v5 = vadd.f32 %v1669_v62, %v1658_v19 }
 0x1fc   :  { %v889_v52 = vpop.permute.xlu1 %888  ;;  %v885_v3 = vmul.f32 %v884_v8, %v883_v18 }
 0x1fd   :  { %v895_v13 = vadd.f32 %v894_v42, %v889_v52  ;;  %v923_v42 = vstv %s137_s18 }
 0x1fe   :  { %v886_v20 = vadd.f32 %v885_v3, %v873_v6  ;;  %v1705_v9 = vmul.f32 %v1704_v23, %v923_v42 }
 0x1ff   :  { %v896_v36 = vand.u32 2147483647, %v895_v13 }
 0x200   :  { %v1673_v46 = vpop.permute.xlu1 %1672 }
 0x201   :  { %v1679_v26 = vadd.f32 %v1678_v63, %v1673_v46  ;;  %v898_v34 = vmul.f32 %v897_v31, %v896_v36 }
 0x203   :  { %v1680_v38 = vand.u32 2147483647, %v1679_v26  ;;  %v899_v35 = vadd.f32 %v898_v34, %v886_v20  ;;  %v1726_v26 = vadd.f32 1e-32, %v1840_v50  ;;  %v977_v34 = vstv %s3220_s15 }
 0x205   :  { %v1685_v60 = vpop.permute.xlu1 %1684  ;;  %v1681_v7 = vmul.f32 %v1680_v38, %v897_v31  ;;  %v912_v27 = vadd.f32 %v911_v29, %v899_v35  ;;  %v953_v29 = vld [vmem:[%s3221_s8] sm:$0xff] }
 0x206   :  { %v1691_v39 = vadd.f32 %v1690_v15, %v1685_v60  ;;  %v945_v60 = vadd.f32 1e-32, %v942_v58 }
 0x207   :  { %v1682_v46 = vadd.f32 %v1681_v7, %v1670_v5  ;;  %v1841_v5 = vld [vmem:[%s3221_s8 + $0x8] sm:$0xff] }
 0x208   :  { %v1692_v33 = vand.u32 2147483647, %v1691_v39 }
 0x20a   :  { %v915_v59 = vpop.permute.xlu1 %914  ;;  %v1693_v61 = vmul.f32 %v1692_v33, %v910_v12 }
 0x20b   :  { %v921_v52 = vadd.f32 %v920_v55, %v915_v59 }
 0x20c   :  { %v1694_v63 = vadd.f32 %v1693_v61, %v1682_v46 }
 0x20d   :  { %v922_v25 = vand.u32 2147483647, %v921_v52 }
 0x20e   :  { %v1706_v40 = vadd.f32 %v1705_v9, %v1694_v63 }
 0x20f   :  { %v928_v41 = vpop.permute.xlu1 %927  ;;  %v924_v21 = vmul.f32 %v923_v42, %v922_v25  ;;  %v954_v42 = vsel %vm947_vm0, %v953_v29, 0.0 }
 0x210   :  { %v934_v22 = vadd.f32 %v933_v24, %v928_v41 }
 0x211   :  { %v925_v32 = vadd.f32 %v924_v21, %v912_v27  ;;  %v975_v27 = vstv %s42_s17 }
 0x212   :  { %v935_v51 = vand.u32 2147483647, %v934_v22  ;;  %v1736_v22 = vsel %vm947_vm0, %v1841_v5, 0.0 }
 0x213   :  { %v1709_v57 = vpop.permute.xlu1 %1708 }
 0x214   :  { %v937_v53 = vmul.f32 %v936_v30, %v935_v51  ;;  %v1715_v47 = vadd.f32 %v1714_v45, %v1709_v57 }
 0x216   :  { %v938_v13 = vadd.f32 %v937_v53, %v925_v32  ;;  %v1716_v49 = vand.u32 2147483647, %v1715_v47 }
 0x218   :  { %v939_v0 = vmul.f32 0.125, %v938_v13  ;;  %v1717_v15 = vmul.f32 %v1716_v49, %v936_v30 }
 0x21a   :  { %1967 = vtanh.f32 %v939_v0  ;;  %v1718_v17 = vadd.f32 %v1717_v15, %v1706_v40 }
 0x21c   :  { %v1719_v1 = vmul.f32 0.125, %v1718_v17 }
 0x21e   :  { %1969 = vtanh.f32 %v1719_v1 }
 0x224   :  { %v1968_v56 = vpop.eup %1967 }
 0x225   :  { %v941_v11 = vmul.f32 8.0, %v1968_v56 }
 0x227   :  { %v943_v37 = vmul.f32 1.442695, %v941_v11 }
 0x228   :  { %v1970_v18 = vpop.eup %1969 }
 0x229   :  { %1971 = vpow2.f32 %v943_v37  ;;  %v1721_v10 = vmul.f32 8.0, %v1970_v18 }
 0x22b   :  { %v1724_v8 = vmul.f32 1.442695, %v1721_v10 }
 0x22d   :  { %1973 = vpow2.f32 %v1724_v8 }
 0x233   :  { %v1972_v43 = vpop.eup %1971 }
 0x234   :  { %v946_v36 = vmul.f32 %v1972_v43, %v945_v60 }
 0x236   :  { %v949_v54 = vsel %vm947_vm0, %v946_v36, 0.0  ;;  %948 = vst.msk [vmem:[#allocation7] sm:$0xff] %vm947_vm0, %v946_v36 }
 0x237   :  { %v1974_v31 = vpop.eup %1973  ;;  %950 = vadd.xlane.f32.xlu0 %v949_v54 }
 0x238   :  { %v1727_v2 = vmul.f32 %v1974_v31, %v1726_v26 }
 0x23a   :  { %v1730_v55 = vsel %vm947_vm0, %v1727_v2, 0.0  ;;  %1729 = vst.msk [vmem:[#allocation7 + $0x8] sm:$0xff] %vm947_vm0, %v1727_v2 }
 0x23b   :  { %1731 = vadd.xlane.f32.xlu1 %v1730_v55 }
 0x23d   :  { %v962_v39 = vld [vmem:[#allocation7] sm:$0xff] }
 0x241   :  { %v1744_v6 = vld [vmem:[#allocation7 + $0x8] sm:$0xff] }
 0x2c4   :  { %v951_v48 = vpop.xlane.xlu0 %950 }
 0x2c5   :  { %1975 = vrcp.f32 %v951_v48 }
 0x2c8   :  { %v1732_v4 = vpop.xlane.xlu1 %1731 }
 0x2c9   :  { %1977 = vrcp.f32 %v1732_v4 }
 0x2cf   :  { %v1976_v3 = vpop.eup %1975 }
 0x2d0   :  { %v963_v44 = vmul.f32 %v1976_v3, %v962_v39 }
 0x2d2   :  { %1979 = vlog2.f32 %v963_v44  ;;  %v968_v52 = vmul.f32 54.59815, %v963_v44  ;;  %vm964_vm1 = vcmp.gt.f32.partialorder %v963_v44, 0.01831564  ;;  %v978_v9 = vmul.f32 %v977_v34, %v963_v44 }
 0x2d3   :  { %v1978_v28 = vpop.eup %1977 }
 0x2d4   :  { %v1745_v16 = vmul.f32 %v1978_v28, %v1744_v6 }
 0x2d6   :  { %1981 = vlog2.f32 %v1745_v16  ;;  %v1758_v38 = vmul.f32 %v1745_v16, %v977_v34  ;;  %v1750_v25 = vmul.f32 54.59815, %v1745_v16  ;;  %vm1746_vm2 = vcmp.gt.f32.partialorder %v1745_v16, 0.01831564 }
 0x2dc   :  { %v1980_v59 = vpop.eup %1979 }
 0x2dd   :  { %v966_v12 = vmul.f32 0.6931472, %v1980_v59 }
 0x2df   :  { %v967_v14 = vadd.f32 5.0, %v966_v12 }
 0x2e0   :  { %v1982_v24 = vpop.eup %1981 }
 0x2e1   :  { %v969_v19 = vsel %vm964_vm1, %v967_v14, %v968_v52  ;;  %v1748_v62 = vmul.f32 0.6931472, %v1982_v24 }
 0x2e2   :  { %v970_v20 = vsel %vm947_vm0, %v969_v19, 0.0 }
 0x2e3   :  { %971 = vadd.xlane.f32.xlu0 %v970_v20  ;;  %v1749_v33 = vadd.f32 5.0, %v1748_v62 }
 0x2e5   :  { %v1751_v35 = vsel %vm1746_vm2, %v1749_v33, %v1750_v25 }
 0x2e6   :  { %v1752_v7 = vsel %vm947_vm0, %v1751_v35, 0.0 }
 0x2e7   :  { %1753 = vadd.xlane.f32.xlu0 %v1752_v7 }
 0x2eb   :  { %955 = vadd.xlane.f32.xlu0 %v954_v42 }
 0x370   :  { %v972_v23 = vpop.xlane.xlu0 %971 }
 0x374   :  { %v1754_v41 = vpop.xlane.xlu0 %1753 }
 0x375   :  { %v1755_v45 = vadd.f32 %v1754_v41, %v972_v23 }
 0x377   :  { %v1762_v61 = vsel %vm1761_vm3, %v1755_v45, 0.0 }
 0x378   :  { %1763 = vadd.xlane.f32.xlu1 %v1762_v61  ;;  %v956_v21 = vpop.xlane.xlu0 %955 }
 0x379   :  { %1983 = vrcp.f32 %v956_v21 }
 0x37c   :  { %1737 = vadd.xlane.f32.xlu1 %v1736_v22 }
 0x383   :  { %v1984_v30 = vpop.eup %1983 }
 0x384   :  { %v974_v46 = vmul.f32 %v1984_v30, %v953_v29 }
 0x386   :  { %v976_v51 = vmul.f32 %v975_v27, %v974_v46 }
 0x388   :  { %v979_v57 = vadd.f32 %v978_v9, %v976_v51 }
 0x38a   :  { %980 = vst.msk [vmem:[#allocation7] sm:$0xff] %vm947_vm0, %v979_v57 }
 0x405   :  { %v1764_v63 = vpop.xlane.xlu1 %1763 }
 0x406   :  { %v1765_v32 = vrot.slane %v1764_v63, 4 }
 0x408   :  { %v1766_v53 = vadd.f32 %v1765_v32, %v1764_v63 }
 0x409   :  { %v1738_v47 = vpop.xlane.xlu1 %1737 }
 0x40a   :  { %v1767_v13 = vrot.slane %v1766_v53, 2  ;;  %1985 = vrcp.f32 %v1738_v47 }
 0x40c   :  { %v1768_v49 = vadd.f32 %v1767_v13, %v1766_v53 }
 0x40e   :  { %v1769_v40 = vrot.slane %v1768_v49, 1 }
 0x410   :  { %v1770_v0 = vadd.f32 %v1769_v40, %v1768_v49 }
 0x412   :  { %1842 = vpush %v1770_v0 }
 0x414   :  { %v1986_v15 = vpop.eup %1985 }
 0x415   :  { %v1756_v17 = vmul.f32 %v1986_v15, %v1841_v5 }
 0x417   :  { %v1757_v1 = vmul.f32 %v1756_v17, %v975_v27 }
 0x419   :  { %v1759_v56 = vadd.f32 %v1758_v38, %v1757_v1 }
 0x41b   :  { %1760 = vst.msk [vmem:[#allocation7 + $0x8] sm:$0xff] %vm947_vm0, %v1759_v56 }
 0x41c   :  { %2020 = shalt.err (!%p2017_p9)
}
 0x41d   :  { %s3222_s11 = sld [smem:[#allocation29_spill]] }
 0x423   :  { %s2021_s12 = scalar_lea.hbm %s3222_s11, 256 }
 0x424   :  { %p2022_p10 = scmp.ne.s32.totalorder %s3222_s11, %s2021_s12  ;;  %p2025_p11 = scmp.lt.u32.totalorder %s2021_s12, %s3222_s11 }
 0x426   :  { %p2027_p12 = pnand %p2025_p11, %p2022_p10 }
 0x428   :  { %2030 = shalt.err (!%p2027_p12)
}
 0x429   :  { %s2112_s5 = smov 128   ;;  %s2113_s25 = smov 8  }
 0x42a   :  { %1785 = dma.vmem_to_hbm [thread:$0]  %s1780_s2, 256, %s3222_s11, [#allocation4], %s2112_s5, %s2112_s5, %s2113_s25  }
 0x42b   :  { %s3223_s22 = sld [smem:[#allocation30_spill]] }
 0x431   :  { %s2031_s23 = scalar_lea.hbm %s3223_s22, 16 }
 0x432   :  { %p2032_p13 = scmp.ne.s32.totalorder %s3223_s22, %s2031_s23  ;;  %p2035_p0 = scmp.lt.u32.totalorder %s2031_s23, %s3223_s22 }
 0x434   :  { %p2037_p1 = pnand %p2035_p0, %p2032_p13 }
 0x443   :  { %s1843_s27 = spop %1842 }
 0x444   :  { %1773 = sst [smem:[#allocation8]] %s1843_s27 }
 0x445   :  { %2040 = shalt.err (!%p2037_p1)
}
 0x446   :  { %s2114_s26 = smov [#allocation8]  }
 0x447   :  { %1793 = dma.smem_to_hbm %s2114_s26, 16, %s3223_s22, [#allocation5]  }
 0x448   :  { %2043 = dma.done.wait [#allocation4], 256  }
 0x449   :  { %2044 = vsyncadd [#allocation4], 4294967040 }
 0x44a   :  { %2045 = dma.done.wait [#allocation5], 16  }
 0x44b   :  { %2046 = vsyncadd [#allocation5], 4294967280 }
 0x44c   :  { %1800 = sfence }
 0x44d   :  { %1801 = vsyncpa [#allocation4], 1 }
 0x44e   :  { %1802 = vsyncpa [#allocation5], 1 }
 0x44f   :  { %1803 = vsyncpa [#allocation6], 1 }

</bundles_post_ra>
